<compile_context>
chip_gen: v7x
topology: tpu7x:2x2x1
jax: 0.10.0
libtpu: 0.0.40
codegen_flags: <defaults>
</compile_context>

<pallas_src>
import functools

import jax
import jax.numpy as jnp
from jax import lax
from jax.experimental import pallas as pl
from jax.experimental.pallas import tpu as pltpu

F32 = jnp.float32
NEG = -1e9
POS = 1e9
BIG = 1e9
LN_EPS = 1e-5


# --------------------------------------------------------------------------
# small in-kernel helpers (2-D elementwise, lane reductions, lane shifts)
# --------------------------------------------------------------------------
def _layernorm(x):
    mean = jnp.mean(x, axis=-1, keepdims=True)
    var = jnp.mean((x - mean) ** 2, axis=-1, keepdims=True)
    return (x - mean) * lax.rsqrt(var + LN_EPS)


def _floordiv_const(x, d):
    """Exact floor division of small non-negative int32 arrays by a static d."""
    if d == 1:
        return x
    if d & (d - 1) == 0:                         # power of two: integer shift (exact)
        return jnp.right_shift(x, int(d).bit_length() - 1)
    # float fallback: exact while values stay well inside f32's 24-bit mantissa
    return jnp.floor((x.astype(F32) + 0.5) * (1.0 / d)).astype(jnp.int32)


def _can_roll(shape):
    # Mosaic's rotate wants (8, 128)-tile-aligned shapes.
    return len(shape) >= 2 and shape[-1] % 128 == 0 and shape[-2] % 8 == 0


def _shift_lanes(x, s, fill):
    """out[..., j] = x[..., j - s]; positions shifted in from outside get `fill`.

    s > 0 shifts toward higher j, s < 0 toward lower j.  Uses pltpu.roll (XLU,
    frees the MXU) on tile-aligned shapes, a one-hot matmul otherwise.
    """
    if s == 0:
        return x
    n = x.shape[-1]
    jr = lax.broadcasted_iota(jnp.int32, x.shape, len(x.shape) - 1)
    if _can_roll(x.shape):
        y = pltpu.roll(x, s % n, axis=len(x.shape) - 1)
    else:
        kk = lax.broadcasted_iota(jnp.int32, (n, n), 0)
        jj = lax.broadcasted_iota(jnp.int32, (n, n), 1)
        sel = (kk == (jj - s)).astype(F32)
        y = jnp.dot(x, sel, preferred_element_type=F32)
    if s > 0:
        return jnp.where(jr < s, fill, y)
    return jnp.where(jr >= n + s, fill, y)


def _shift_rows_up(x):
    """out[p, :] = x[p + 1, :]; last row is zero."""
    m = x.shape[0]
    if _can_roll(x.shape):
        rr = lax.broadcasted_iota(jnp.int32, x.shape, 0)
        y = pltpu.roll(x, (m - 1) % m, axis=0)
        return jnp.where(rr == m - 1, 0.0, y)
    pp = lax.broadcasted_iota(jnp.int32, (m, m), 0)
    kk = lax.broadcasted_iota(jnp.int32, (m, m), 1)
    sel = (kk == pp + 1).astype(F32)             # row p <- row p+1 (last row -> 0)
    return jnp.dot(sel, x, preferred_element_type=F32)


def _prefix_scan(x, op, fill):
    """out[..., j] = op-reduction of x[..., 0:j+1] (log2 doubling steps)."""
    n = x.shape[-1]
    cm, s = x, 1
    while s < n:
        cm = op(cm, _shift_lanes(cm, s, fill))
        s *= 2
    return cm


def _suffix_scan(x, op, fill):
    """out[..., j] = op-reduction of x[..., j:]."""
    n = x.shape[-1]
    cm, s = x, 1
    while s < n:
        cm = op(cm, _shift_lanes(cm, -s, fill))
        s *= 2
    return cm


# --------------------------------------------------------------------------
# kernel 1: distance_ff / height_ff fused with parse(), several samples per
# grid step ("parallel").  FF runs on the stacked (TB*L, H) slab; the parse
# masking / margin max is done block-diagonally over the chunk.
# --------------------------------------------------------------------------
def ff_parse_kernel(ids_ref, h_ref, wc0_ref, wc1_ref, bc_ref, wd_ref,
                    wh1_ref, bh1_ref, wh2_ref, fb_ref, out_ref, *, seq_len):
    L = seq_len
    N = h_ref.shape[1]                           # TB * L positions in this chunk
    h = h_ref[0]                                 # (N, H)

    # ---- distance_ff: Conv1d(H, H, k=2, shift) -> LayerNorm -> tanh -> Linear(H,1)
    # conv-with-shift == h[p] @ W0^T + h[p+1] @ W1^T + b  (h[p+1] = 0 at sample end)
    rr = lax.broadcasted_iota(jnp.int32, (N, 1), 0)
    r_loc = rr - _floordiv_const(rr, L) * L
    hs = jnp.where(r_loc == L - 1, 0.0, _shift_rows_up(h))
    u = (jnp.dot(h, wc0_ref[...], preferred_element_type=F32)
         + jnp.dot(hs, wc1_ref[...], preferred_element_type=F32) + bc_ref[...])
    u = jnp.tanh(_layernorm(u))
    dist_row = lax.dot_general(wd_ref[...], u, (((1,), (1,)), ((), ())),
                               preferred_element_type=F32) + fb_ref[0]     # (1, N)

    # ---- height_ff: Linear(H, H) -> LayerNorm -> tanh -> Linear(H, 1)
    v = jnp.dot(h, wh1_ref[...], preferred_element_type=F32) + bh1_ref[...]
    v = jnp.tanh(_layernorm(v))
    height_row = lax.dot_general(wh2_ref[...], v, (((1,), (1,)), ((), ())),
                                 preferred_element_type=F32) + fb_ref[1]   # (1, N)

    # ---- parse(): per-sample masking + global margin max (block-diagonal) ----
    ii = lax.broadcasted_iota(jnp.int32, (N, N), 0)
    jj = lax.broadcasted_iota(jnp.int32, (N, N), 1)
    i_blk = _floordiv_const(ii, L)
    j_blk = _floordiv_const(jj, L)
    same = i_blk == j_blk                        # (p, q) belong to the same sample
    i_loc = ii - i_blk * L

    cvec = lax.broadcasted_iota(jnp.int32, (1, N), 1)
    c_loc = cvec - _floordiv_const(cvec, L) * L

    mask = (ids_ref[0] != 0).astype(F32)                       # (1, N), pad id == 0
    masks = _shift_lanes(mask, -1, 0.0)                        # mask[q + 1]
    masks = jnp.where(c_loc == L - 1, 0.0, masks)              # no cross-sample leak

    height = jnp.where(mask > 0.5, height_row, NEG)            # (1, N)
    distance = jnp.where(masks > 0.5, dist_row, POS)           # (1, N)

    # height_max[p, q] = max_{p<=k<=q} height[k]  (valid for same-sample p <= q)
    hmax = _prefix_scan(jnp.where(jj >= ii, height, NEG), jnp.maximum, NEG)

    # d_left[p] = +1e9 at the first position of each sample, else distance[p-1]
    dleft = jnp.sum(jnp.where(jj == ii - 1, distance, 0.0), axis=-1, keepdims=True)
    dleft = jnp.where(r_loc == 0, POS, dleft)                  # (N, 1)

    margin = jnp.minimum(jnp.maximum(dleft - hmax, 0.0),
                         jnp.maximum(distance - hmax, 0.0))
    margin = jnp.where(same & (ii <= jj), margin, 0.0)
    mm = jnp.where(i_loc == 0, masks, mask)                    # row 0 uses shifted mask
    margin = jnp.where(mm > 0.5, margin, 0.0)
    mall = jnp.max(jnp.max(margin, axis=1, keepdims=True), axis=0, keepdims=True)

    # one packed lane-dense output block: row 0 = height, 1 = distance, 2 = margin
    out_ref[0, 0:1, :] = height
    out_ref[0, 1:2, :] = distance
    out_ref[0, 2:3, :] = jnp.broadcast_to(mall, (1, N))


# --------------------------------------------------------------------------
# kernel 2: compute_block + compute_head + blij,bijh->blh + head@head^T,
# one grid step per batch element ("parallel").
# --------------------------------------------------------------------------
def blockhead_kernel(sc_ref, d_ref, h_ref,
                     blockp_ref, block_ref, headp_ref, head_ref, cib_ref):
    L = d_ref.shape[-1]
    LL = L * L
    s0 = sc_ref[0]
    s1 = sc_ref[1]
    margin = sc_ref[2]

    d = d_ref[0] - margin                        # (1, L) margin-adjusted distance
    hr = h_ref[0]                                # (1, L) masked height

    ii = lax.broadcasted_iota(jnp.int32, (L, L), 0)
    jj = lax.broadcasted_iota(jnp.int32, (L, L), 1)
    eye = ii == jj

    # height as a column via a masked lane reduction (avoids a transpose)
    hc = jnp.sum(jnp.where(eye, hr, 0.0), axis=-1, keepdims=True)       # (L, 1)

    # gamma = sigmoid(-beta_logits), stable formulation (no inf intermediates)
    beta = (d - hc) * s0                         # (L, L)
    t = jnp.exp(-jnp.abs(beta))
    gamma = jnp.where(beta >= 0, t / (1.0 + t), 1.0 / (1.0 + t))

    # block_mask_left: reverse cummin of (gamma strictly below diag, 1 elsewhere)
    a_left = jnp.where(ii > jj, gamma, 1.0)
    bml_pre = _suffix_scan(a_left, jnp.minimum, BIG)
    bml = bml_pre - _shift_lanes(bml_pre, 1, 0.0)        # minus col j-1 (col 0 -> 0)
    bml = jnp.where(ii >= jj, bml, 0.0)                  # tril(0)

    # block_mask_right: exclusive forward cummin of (gamma on/above diag, 1 elsewhere)
    a_right = jnp.where(ii <= jj, gamma, 1.0)
    bmr_pre = _prefix_scan(_shift_lanes(a_right, 1, 1.0), jnp.minimum, BIG)
    bmr = bmr_pre - _shift_lanes(bmr_pre, -1, 0.0)       # minus col j+1 (last -> 0)
    bmr = jnp.where(ii <= jj, bmr, 0.0)                  # triu(0)

    # block = cumsum(bml).tril(0) + reverse_cumsum(bmr).triu(1) (prefix sums as matmuls)
    upper = (ii <= jj).astype(F32)
    lower = (ii >= jj).astype(F32)
    cs_l = jnp.dot(bml, upper, preferred_element_type=F32)
    cs_r = jnp.dot(bmr, lower, preferred_element_type=F32)
    block_ref[0] = jnp.where(ii >= jj, cs_l, 0.0) + jnp.where(ii < jj, cs_r, 0.0)

    # ---- block_p flattened: bp2[l, i*L + j] = bml[l, i] * bmr[l, j].
    # Written tile-by-tile straight into the output ref with a VPU broadcast
    # (the P/Q one-hot selector matmuls are gone), then read back once for the
    # head contraction.
    for i in range(L):
        col_i = jnp.sum(jnp.where(jj == i, bml, 0.0), axis=-1, keepdims=True)
        blockp_ref[0, :, i * L:(i + 1) * L] = col_i * bmr
    bp2 = blockp_ref[0]                                  # (L, L^2)

    # ---- head_p flattened: row r = i*L + j, masked softmax over k (lane axis)
    r2 = lax.broadcasted_iota(jnp.int32, (LL, L), 0)
    k2 = lax.broadcasted_iota(jnp.int32, (LL, L), 1)
    i_r = _floordiv_const(r2, L)
    j_r = r2 - i_r * L
    hv = hr * s1                                         # (1, L) head logits over k
    logits = jnp.where((k2 >= i_r) & (k2 <= j_r), hv, NEG)
    m = jnp.max(logits, axis=-1, keepdims=True)
    p = jnp.exp(logits - m)
    hp2 = p / jnp.sum(p, axis=-1, keepdims=True)         # (L^2, L)
    headp_ref[0] = hp2

    # ---- head = einsum('blij,bijh->blh'): ONE (L, L^2) @ (L^2, L) MXU matmul
    head = jnp.dot(bp2, hp2, preferred_element_type=F32)
    head = jnp.where(eye, 0.0, head)
    head_ref[0] = head
    cib = lax.dot_general(head, head, (((1,), (1,)), ((), ())),
                          preferred_element_type=F32)    # head @ head^T
    cib_ref[0] = jnp.where(eye, 0.0, cib)


# --------------------------------------------------------------------------
# parameters + wrapper
# --------------------------------------------------------------------------
def init_params(key, H):
    ks = jax.random.split(key, 9)
    return dict(
        conv_w=0.1 * jax.random.normal(ks[0], (H, H, 2), F32),  # Conv1d(H,H,k=2) (out,in,k)
        conv_b=0.1 * jax.random.normal(ks[1], (H,), F32),
        dist_w=0.1 * jax.random.normal(ks[2], (1, H), F32),     # Linear(H, 1)
        dist_b=0.1 * jax.random.normal(ks[3], (1,), F32),
        h1_w=0.1 * jax.random.normal(ks[4], (H, H), F32),       # Linear(H, H)
        h1_b=0.1 * jax.random.normal(ks[5], (H,), F32),
        h2_w=0.1 * jax.random.normal(ks[6], (1, H), F32),       # Linear(H, 1)
        h2_b=0.1 * jax.random.normal(ks[7], (1,), F32),
        scaler_raw=0.1 * jax.random.normal(ks[8], (2,), F32),   # module inits to zeros
    )


def hsi_forward(h, input_ids, params):
    B, L, H = h.shape
    LL = L * L

    # parameter prep (layout only, no activation-sized work)
    wc0 = params["conv_w"][:, :, 0].T                    # (H, H)  h[p]   @ W0^T
    wc1 = params["conv_w"][:, :, 1].T                    # (H, H)  h[p+1] @ W1^T
    bc = params["conv_b"].reshape(1, H)
    wd = params["dist_w"]                                # (1, H) row (NT contraction)
    wh1 = params["h1_w"].T
    bh1 = params["h1_b"].reshape(1, H)
    wh2 = params["h2_w"]                                 # (1, H)
    fb = jnp.stack([params["dist_b"][0], params["h2_b"][0]])     # (2,) SMEM scalars

    # ---- kernel 1: chunk several samples per grid step (fills MXU rows/lanes)
    TB = max(1, min(B, 128 // L))
    nchunk = -(-B // TB)
    B_pad = nchunk * TB
    ids_p = input_ids.astype(jnp.int32)
    h_p = h.astype(F32)
    if B_pad != B:
        ids_p = jnp.pad(ids_p, ((0, B_pad - B), (0, 0)))         # pad id 0 == PAD
        h_p = jnp.pad(h_p, ((0, B_pad - B), (0, 0), (0, 0)))
    N = TB * L
    ids_c = ids_p.reshape(nchunk, 1, N)
    h_c = h_p.reshape(nchunk, N, H)

    def wspec(shape):                 # weights: fetched once (constant block index)
        return pl.BlockSpec(shape, lambda c: (0, 0))

    cparams = pltpu.CompilerParams(
        dimension_semantics=("parallel",),
        vmem_limit_bytes=64 * 1024 * 1024)    # raised from 32 MiB (v5e/v6e headroom)

    packed = pl.pallas_call(
        functools.partial(ff_parse_kernel, seq_len=L),
        grid=(nchunk,),
        in_specs=[pl.BlockSpec((1, 1, N), lambda c: (c, 0, 0)),
                  pl.BlockSpec((1, N, H), lambda c: (c, 0, 0)),
                  wspec((H, H)), wspec((H, H)), wspec((1, H)), wspec((1, H)),
                  wspec((H, H)), wspec((1, H)), wspec((1, H)),
                  pl.BlockSpec(memory_space=pltpu.MemorySpace.SMEM)],
        out_specs=pl.BlockSpec((1, 3, N), lambda c: (c, 0, 0)),
        out_shape=jax.ShapeDtypeStruct((nchunk, 3, N), F32),
        compiler_params=cparams,
    )(ids_c, h_c, wc0, wc1, bc, wd, wh1, bh1, wh2, fb)

    height_full = packed[:, 0, :].reshape(B_pad, L)[:B]
    dist_full = packed[:, 1, :].reshape(B_pad, L)[:B]
    margin = jnp.max(packed[:, 2, 0])        # global (cross-batch) margin maximum

    # ---- kernel 2: per batch element
    scalars = jnp.concatenate([jnp.exp(params["scaler_raw"]), margin.reshape(1)])
    dist3 = dist_full.reshape(B, 1, L)
    height3 = height_full.reshape(B, 1, L)
    row3_spec = pl.BlockSpec((1, 1, L), lambda b: (b, 0, 0))

    blockp2, block, headp2, head, cibling = pl.pallas_call(
        blockhead_kernel,
        grid=(B,),
        in_specs=[pl.BlockSpec(memory_space=pltpu.MemorySpace.SMEM),
                  row3_spec, row3_spec],
        out_specs=(pl.BlockSpec((1, L, LL), lambda b: (b, 0, 0)),
                   pl.BlockSpec((1, L, L), lambda b: (b, 0, 0)),
                   pl.BlockSpec((1, LL, L), lambda b: (b, 0, 0)),
                   pl.BlockSpec((1, L, L), lambda b: (b, 0, 0)),
                   pl.BlockSpec((1, L, L), lambda b: (b, 0, 0))),
        out_shape=(jax.ShapeDtypeStruct((B, L, LL), F32),
                   jax.ShapeDtypeStruct((B, L, L), F32),
                   jax.ShapeDtypeStruct((B, LL, L), F32),
                   jax.ShapeDtypeStruct((B, L, L), F32),
                   jax.ShapeDtypeStruct((B, L, L), F32)),
        compiler_params=cparams,
    )(scalars, dist3, height3)

    distance = dist_full - margin
    height = height_full
    block_p = blockp2.reshape(B, L, L, L)                # free row-major reshape
    head_p = headp2.reshape(B, L, L, L)
    indexes = jnp.arange(L, dtype=jnp.int32)
    return distance, height, cibling, head_p, head, block_p, block, indexes


if __name__ == "__main__":
    B, L, H = 2, 8, 32
    key = jax.random.PRNGKey(0)
    k_h, k_p = jax.random.split(key)
    h = jax.random.normal(k_h, (B, L, H), dtype=F32)
    input_ids = jnp.array([[5, 3, 7, 2, 9, 4, 0, 0],
                           [1, 2, 3, 4, 5, 6, 7, 8]], dtype=jnp.int32)
    params = init_params(k_p, H)

    outs = jax.jit(hsi_forward)(h, input_ids, params)
    outs = jax.block_until_ready(outs)
    distance, height, cibling, head_p, head, block_p, block, indexes = outs

    assert distance.shape == (B, L) and height.shape == (B, L)
    assert cibling.shape == (B, L, L) and head.shape == (B, L, L)
    assert head_p.shape == (B, L, L, L) and block_p.shape == (B, L, L, L)
    assert block.shape == (B, L, L) and indexes.shape == (L,)
    assert all(bool(jnp.all(jnp.isfinite(o))) for o in
               (distance, height, cibling, head_p, head, block_p, block))
    print("KERNEL_OK")
</pallas_src>

<mosaic_0001>
module attributes {stable_mosaic.version = 11 : i64} {
  func.func @ff_parse_kernel(%arg0: i32, %arg1: memref<1x1x16xi32, #tpu.memory_space<vmem>>, %arg2: memref<1x16x32xf32, #tpu.memory_space<vmem>>, %arg3: memref<32x32xf32, #tpu.memory_space<vmem>>, %arg4: memref<32x32xf32, #tpu.memory_space<vmem>>, %arg5: memref<1x32xf32, #tpu.memory_space<vmem>>, %arg6: memref<1x32xf32, #tpu.memory_space<vmem>>, %arg7: memref<32x32xf32, #tpu.memory_space<vmem>>, %arg8: memref<1x32xf32, #tpu.memory_space<vmem>>, %arg9: memref<1x32xf32, #tpu.memory_space<vmem>>, %arg10: memref<2xf32, #tpu.memory_space<smem>>, %arg11: memref<1x3x16xf32, #tpu.memory_space<vmem>>) attributes {dimension_semantics = [#tpu.dimension_semantics<parallel>], iteration_bounds = array<i64: 1>, scalar_prefetch = 0 : i64, scratch_operands = 0 : i64, tpu.core_type = #tpu.core_type<tc>, window_params = [{transform_indices = @transform_0, window_bounds = array<i64: 1, 1, 16>}, {transform_indices = @transform_1, window_bounds = array<i64: 1, 16, 32>}, {pipeline_mode = #tpu.pipeline_mode<synchronous>, transform_indices = @transform_2, window_bounds = array<i64: 32, 32>}, {pipeline_mode = #tpu.pipeline_mode<synchronous>, transform_indices = @transform_3, window_bounds = array<i64: 32, 32>}, {pipeline_mode = #tpu.pipeline_mode<synchronous>, transform_indices = @transform_4, window_bounds = array<i64: 1, 32>}, {pipeline_mode = #tpu.pipeline_mode<synchronous>, transform_indices = @transform_5, window_bounds = array<i64: 1, 32>}, {pipeline_mode = #tpu.pipeline_mode<synchronous>, transform_indices = @transform_6, window_bounds = array<i64: 32, 32>}, {pipeline_mode = #tpu.pipeline_mode<synchronous>, transform_indices = @transform_7, window_bounds = array<i64: 1, 32>}, {pipeline_mode = #tpu.pipeline_mode<synchronous>, transform_indices = @transform_8, window_bounds = array<i64: 1, 32>}, {transform_indices = @transform_9, window_bounds = array<i64: 2>}, {transform_indices = @transform_10, window_bounds = array<i64: 1, 3, 16>}]} {
    %c0 = arith.constant 0 : index
    %c0_0 = arith.constant 0 : index
    %c0_1 = arith.constant 0 : index
    %0 = vector.load %arg2[%c0, %c0_0, %c0_1] : memref<1x16x32xf32, #tpu.memory_space<vmem>>, vector<1x16x32xf32>
    %1 = vector.shape_cast %0 : vector<1x16x32xf32> to vector<16x32xf32>
    %2 = tpu.iota {dimensions = array<i32: 0>} : vector<16x1xi32>
    %c3_i32 = arith.constant 3 : i32
    %3 = vector.broadcast %c3_i32 : i32 to vector<16x1xi32>
    %4 = arith.shrsi %2, %3 : vector<16x1xi32>
    %c8_i32 = arith.constant 8 : i32
    %5 = vector.broadcast %c8_i32 : i32 to vector<16x1xi32>
    %6 = arith.muli %4, %5 : vector<16x1xi32>
    %7 = arith.subi %2, %6 : vector<16x1xi32>
    %c7_i32 = arith.constant 7 : i32
    %8 = vector.broadcast %c7_i32 : i32 to vector<16x1xi32>
    %9 = arith.cmpi eq, %7, %8 : vector<16x1xi32>
    %10 = tpu.iota {dimensions = array<i32: 0>} : vector<16x16xi32>
    %11 = tpu.iota {dimensions = array<i32: 1>} : vector<16x16xi32>
    %c1_i32 = arith.constant 1 : i32
    %12 = vector.broadcast %c1_i32 : i32 to vector<16x16xi32>
    %13 = arith.addi %10, %12 : vector<16x16xi32>
    %14 = arith.cmpi eq, %11, %13 : vector<16x16xi32>
    %15 = arith.extui %14 : vector<16x16xi1> to vector<16x16xi32>
    %16 = arith.sitofp %15 : vector<16x16xi32> to vector<16x16xf32>
    %cst = arith.constant dense<0.000000e+00> : vector<16x32xf32>
    %17 = tpu.matmul %16, %1, %cst {dimension_numbers = #tpu.dot_dimension_numbers<[1], [0], [0], [1], [0, 0, 1, 1], [], []>} : vector<16x16xf32>, vector<16x32xf32>, vector<16x32xf32> -> vector<16x32xf32>
    %cst_2 = arith.constant 0.000000e+00 : f32
    %18 = vector.shape_cast %9 : vector<16x1xi1> to vector<16x1xi1>
    %19 = vector.broadcast %18 : vector<16x1xi1> to vector<16x32xi1>
    %20 = vector.broadcast %cst_2 : f32 to vector<16x32xf32>
    %21 = arith.select %19, %20, %17 : vector<16x32xi1>, vector<16x32xf32>
    %c0_3 = arith.constant 0 : index
    %c0_4 = arith.constant 0 : index
    %22 = vector.load %arg3[%c0_3, %c0_4] : memref<32x32xf32, #tpu.memory_space<vmem>>, vector<32x32xf32>
    %cst_5 = arith.constant dense<0.000000e+00> : vector<16x32xf32>
    %23 = tpu.matmul %1, %22, %cst_5 {dimension_numbers = #tpu.dot_dimension_numbers<[1], [0], [0], [1], [0, 0, 1, 1], [], []>} : vector<16x32xf32>, vector<32x32xf32>, vector<16x32xf32> -> vector<16x32xf32>
    %c0_6 = arith.constant 0 : index
    %c0_7 = arith.constant 0 : index
    %24 = vector.load %arg4[%c0_6, %c0_7] : memref<32x32xf32, #tpu.memory_space<vmem>>, vector<32x32xf32>
    %cst_8 = arith.constant dense<0.000000e+00> : vector<16x32xf32>
    %25 = tpu.matmul %21, %24, %cst_8 {dimension_numbers = #tpu.dot_dimension_numbers<[1], [0], [0], [1], [0, 0, 1, 1], [], []>} : vector<16x32xf32>, vector<32x32xf32>, vector<16x32xf32> -> vector<16x32xf32>
    %26 = arith.addf %23, %25 : vector<16x32xf32>
    %c0_9 = arith.constant 0 : index
    %c0_10 = arith.constant 0 : index
    %27 = vector.load %arg5[%c0_9, %c0_10] : memref<1x32xf32, #tpu.memory_space<vmem>>, vector<1x32xf32>
    %28 = vector.broadcast %27 : vector<1x32xf32> to vector<16x32xf32>
    %29 = arith.addf %26, %28 : vector<16x32xf32>
    %cst_11 = arith.constant dense<0.000000e+00> : vector<16xf32>
    %30 = vector.multi_reduction <add>, %29, %cst_11 [1] : vector<16x32xf32> to vector<16xf32>
    %31 = vector.shape_cast %30 : vector<16xf32> to vector<16x1xf32>
    %cst_12 = arith.constant 3.200000e+01 : f32
    %32 = vector.broadcast %cst_12 : f32 to vector<16x1xf32>
    %33 = arith.divf %31, %32 : vector<16x1xf32>
    %34 = vector.broadcast %33 : vector<16x1xf32> to vector<16x32xf32>
    %35 = arith.subf %29, %34 : vector<16x32xf32>
    %36 = arith.mulf %35, %35 : vector<16x32xf32>
    %cst_13 = arith.constant dense<0.000000e+00> : vector<16xf32>
    %37 = vector.multi_reduction <add>, %36, %cst_13 [1] : vector<16x32xf32> to vector<16xf32>
    %38 = vector.shape_cast %37 : vector<16xf32> to vector<16x1xf32>
    %cst_14 = arith.constant 3.200000e+01 : f32
    %39 = vector.broadcast %cst_14 : f32 to vector<16x1xf32>
    %40 = arith.divf %38, %39 : vector<16x1xf32>
    %41 = vector.broadcast %33 : vector<16x1xf32> to vector<16x32xf32>
    %42 = arith.subf %29, %41 : vector<16x32xf32>
    %cst_15 = arith.constant 9.99999974E-6 : f32
    %43 = vector.broadcast %cst_15 : f32 to vector<16x1xf32>
    %44 = arith.addf %40, %43 : vector<16x1xf32>
    %45 = math.rsqrt %44 : vector<16x1xf32>
    %46 = vector.broadcast %45 : vector<16x1xf32> to vector<16x32xf32>
    %47 = arith.mulf %42, %46 : vector<16x32xf32>
    %48 = math.tanh %47 : vector<16x32xf32>
    %c0_16 = arith.constant 0 : index
    %c0_17 = arith.constant 0 : index
    %49 = vector.load %arg6[%c0_16, %c0_17] : memref<1x32xf32, #tpu.memory_space<vmem>>, vector<1x32xf32>
    %cst_18 = arith.constant dense<0.000000e+00> : vector<1x16xf32>
    %50 = tpu.matmul %49, %48, %cst_18 {dimension_numbers = #tpu.dot_dimension_numbers<[1], [1], [0], [0], [0, 0, 1, 0], [], []>} : vector<1x32xf32>, vector<16x32xf32>, vector<1x16xf32> -> vector<1x16xf32>
    %c0_19 = arith.constant 0 : index
    %51 = memref.load %arg10[%c0_19] : memref<2xf32, #tpu.memory_space<smem>>
    %52 = vector.broadcast %51 : f32 to vector<1x16xf32>
    %53 = arith.addf %50, %52 : vector<1x16xf32>
    %c0_20 = arith.constant 0 : index
    %c0_21 = arith.constant 0 : index
    %54 = vector.load %arg7[%c0_20, %c0_21] : memref<32x32xf32, #tpu.memory_space<vmem>>, vector<32x32xf32>
    %cst_22 = arith.constant dense<0.000000e+00> : vector<16x32xf32>
    %55 = tpu.matmul %1, %54, %cst_22 {dimension_numbers = #tpu.dot_dimension_numbers<[1], [0], [0], [1], [0, 0, 1, 1], [], []>} : vector<16x32xf32>, vector<32x32xf32>, vector<16x32xf32> -> vector<16x32xf32>
    %c0_23 = arith.constant 0 : index
    %c0_24 = arith.constant 0 : index
    %56 = vector.load %arg8[%c0_23, %c0_24] : memref<1x32xf32, #tpu.memory_space<vmem>>, vector<1x32xf32>
    %57 = vector.broadcast %56 : vector<1x32xf32> to vector<16x32xf32>
    %58 = arith.addf %55, %57 : vector<16x32xf32>
    %cst_25 = arith.constant dense<0.000000e+00> : vector<16xf32>
    %59 = vector.multi_reduction <add>, %58, %cst_25 [1] : vector<16x32xf32> to vector<16xf32>
    %60 = vector.shape_cast %59 : vector<16xf32> to vector<16x1xf32>
    %cst_26 = arith.constant 3.200000e+01 : f32
    %61 = vector.broadcast %cst_26 : f32 to vector<16x1xf32>
    %62 = arith.divf %60, %61 : vector<16x1xf32>
    %63 = vector.broadcast %62 : vector<16x1xf32> to vector<16x32xf32>
    %64 = arith.subf %58, %63 : vector<16x32xf32>
    %65 = arith.mulf %64, %64 : vector<16x32xf32>
    %cst_27 = arith.constant dense<0.000000e+00> : vector<16xf32>
    %66 = vector.multi_reduction <add>, %65, %cst_27 [1] : vector<16x32xf32> to vector<16xf32>
    %67 = vector.shape_cast %66 : vector<16xf32> to vector<16x1xf32>
    %cst_28 = arith.constant 3.200000e+01 : f32
    %68 = vector.broadcast %cst_28 : f32 to vector<16x1xf32>
    %69 = arith.divf %67, %68 : vector<16x1xf32>
    %70 = vector.broadcast %62 : vector<16x1xf32> to vector<16x32xf32>
    %71 = arith.subf %58, %70 : vector<16x32xf32>
    %cst_29 = arith.constant 9.99999974E-6 : f32
    %72 = vector.broadcast %cst_29 : f32 to vector<16x1xf32>
    %73 = arith.addf %69, %72 : vector<16x1xf32>
    %74 = math.rsqrt %73 : vector<16x1xf32>
    %75 = vector.broadcast %74 : vector<16x1xf32> to vector<16x32xf32>
    %76 = arith.mulf %71, %75 : vector<16x32xf32>
    %77 = math.tanh %76 : vector<16x32xf32>
    %c0_30 = arith.constant 0 : index
    %c0_31 = arith.constant 0 : index
    %78 = vector.load %arg9[%c0_30, %c0_31] : memref<1x32xf32, #tpu.memory_space<vmem>>, vector<1x32xf32>
    %cst_32 = arith.constant dense<0.000000e+00> : vector<1x16xf32>
    %79 = tpu.matmul %78, %77, %cst_32 {dimension_numbers = #tpu.dot_dimension_numbers<[1], [1], [0], [0], [0, 0, 1, 0], [], []>} : vector<1x32xf32>, vector<16x32xf32>, vector<1x16xf32> -> vector<1x16xf32>
    %c1 = arith.constant 1 : index
    %80 = memref.load %arg10[%c1] : memref<2xf32, #tpu.memory_space<smem>>
    %81 = vector.broadcast %80 : f32 to vector<1x16xf32>
    %82 = arith.addf %79, %81 : vector<1x16xf32>
    %83 = tpu.iota {dimensions = array<i32: 0>} : vector<16x16xi32>
    %84 = tpu.iota {dimensions = array<i32: 1>} : vector<16x16xi32>
    %c3_i32_33 = arith.constant 3 : i32
    %85 = vector.broadcast %c3_i32_33 : i32 to vector<16x16xi32>
    %86 = arith.shrsi %83, %85 : vector<16x16xi32>
    %c3_i32_34 = arith.constant 3 : i32
    %87 = vector.broadcast %c3_i32_34 : i32 to vector<16x16xi32>
    %88 = arith.shrsi %84, %87 : vector<16x16xi32>
    %89 = arith.cmpi eq, %86, %88 : vector<16x16xi32>
    %c8_i32_35 = arith.constant 8 : i32
    %90 = vector.broadcast %c8_i32_35 : i32 to vector<16x16xi32>
    %91 = arith.muli %86, %90 : vector<16x16xi32>
    %92 = arith.subi %83, %91 : vector<16x16xi32>
    %93 = tpu.iota {dimensions = array<i32: 1>} : vector<1x16xi32>
    %c3_i32_36 = arith.constant 3 : i32
    %94 = vector.broadcast %c3_i32_36 : i32 to vector<1x16xi32>
    %95 = arith.shrsi %93, %94 : vector<1x16xi32>
    %c8_i32_37 = arith.constant 8 : i32
    %96 = vector.broadcast %c8_i32_37 : i32 to vector<1x16xi32>
    %97 = arith.muli %95, %96 : vector<1x16xi32>
    %98 = arith.subi %93, %97 : vector<1x16xi32>
    %c0_38 = arith.constant 0 : index
    %c0_39 = arith.constant 0 : index
    %c0_40 = arith.constant 0 : index
    %99 = vector.load %arg1[%c0_38, %c0_39, %c0_40] : memref<1x1x16xi32, #tpu.memory_space<vmem>>, vector<1x1x16xi32>
    %100 = vector.shape_cast %99 : vector<1x1x16xi32> to vector<1x16xi32>
    %c0_i32 = arith.constant 0 : i32
    %101 = vector.broadcast %c0_i32 : i32 to vector<1x16xi32>
    %102 = arith.cmpi ne, %100, %101 : vector<1x16xi32>
    %103 = arith.extui %102 : vector<1x16xi1> to vector<1x16xi32>
    %104 = arith.sitofp %103 : vector<1x16xi32> to vector<1x16xf32>
    %105 = tpu.iota {dimensions = array<i32: 1>} : vector<1x16xi32>
    %106 = tpu.iota {dimensions = array<i32: 0>} : vector<16x16xi32>
    %107 = tpu.iota {dimensions = array<i32: 1>} : vector<16x16xi32>
    %c-1_i32 = arith.constant -1 : i32
    %108 = vector.broadcast %c-1_i32 : i32 to vector<16x16xi32>
    %109 = arith.subi %107, %108 : vector<16x16xi32>
    %110 = arith.cmpi eq, %106, %109 : vector<16x16xi32>
    %111 = arith.extui %110 : vector<16x16xi1> to vector<16x16xi32>
    %112 = arith.sitofp %111 : vector<16x16xi32> to vector<16x16xf32>
    %cst_41 = arith.constant dense<0.000000e+00> : vector<1x16xf32>
    %113 = tpu.matmul %104, %112, %cst_41 {dimension_numbers = #tpu.dot_dimension_numbers<[1], [0], [0], [1], [0, 0, 1, 1], [], []>} : vector<1x16xf32>, vector<16x16xf32>, vector<1x16xf32> -> vector<1x16xf32>
    %c15_i32 = arith.constant 15 : i32
    %114 = vector.broadcast %c15_i32 : i32 to vector<1x16xi32>
    %115 = arith.cmpi sge, %105, %114 : vector<1x16xi32>
    %cst_42 = arith.constant 0.000000e+00 : f32
    %116 = vector.broadcast %cst_42 : f32 to vector<1x16xf32>
    %117 = arith.select %115, %116, %113 : vector<1x16xi1>, vector<1x16xf32>
    %c7_i32_43 = arith.constant 7 : i32
    %118 = vector.broadcast %c7_i32_43 : i32 to vector<1x16xi32>
    %119 = arith.cmpi eq, %98, %118 : vector<1x16xi32>
    %cst_44 = arith.constant 0.000000e+00 : f32
    %120 = vector.broadcast %cst_44 : f32 to vector<1x16xf32>
    %121 = arith.select %119, %120, %117 : vector<1x16xi1>, vector<1x16xf32>
    %cst_45 = arith.constant 5.000000e-01 : f32
    %122 = vector.broadcast %cst_45 : f32 to vector<1x16xf32>
    %123 = arith.cmpf ogt, %104, %122 : vector<1x16xf32>
    %cst_46 = arith.constant -1.000000e+09 : f32
    %124 = vector.broadcast %cst_46 : f32 to vector<1x16xf32>
    %125 = arith.select %123, %82, %124 : vector<1x16xi1>, vector<1x16xf32>
    %cst_47 = arith.constant 5.000000e-01 : f32
    %126 = vector.broadcast %cst_47 : f32 to vector<1x16xf32>
    %127 = arith.cmpf ogt, %121, %126 : vector<1x16xf32>
    %cst_48 = arith.constant 1.000000e+09 : f32
    %128 = vector.broadcast %cst_48 : f32 to vector<1x16xf32>
    %129 = arith.select %127, %53, %128 : vector<1x16xi1>, vector<1x16xf32>
    %130 = arith.cmpi sge, %84, %83 : vector<16x16xi32>
    %cst_49 = arith.constant -1.000000e+09 : f32
    %131 = vector.shape_cast %125 : vector<1x16xf32> to vector<1x16xf32>
    %132 = vector.broadcast %131 : vector<1x16xf32> to vector<16x16xf32>
    %133 = vector.broadcast %cst_49 : f32 to vector<16x16xf32>
    %134 = arith.select %130, %132, %133 : vector<16x16xi1>, vector<16x16xf32>
    %135 = tpu.iota {dimensions = array<i32: 1>} : vector<16x16xi32>
    %136 = tpu.iota {dimensions = array<i32: 0>} : vector<16x16xi32>
    %137 = tpu.iota {dimensions = array<i32: 1>} : vector<16x16xi32>
    %c1_i32_50 = arith.constant 1 : i32
    %138 = vector.broadcast %c1_i32_50 : i32 to vector<16x16xi32>
    %139 = arith.subi %137, %138 : vector<16x16xi32>
    %140 = arith.cmpi eq, %136, %139 : vector<16x16xi32>
    %141 = arith.extui %140 : vector<16x16xi1> to vector<16x16xi32>
    %142 = arith.sitofp %141 : vector<16x16xi32> to vector<16x16xf32>
    %cst_51 = arith.constant dense<0.000000e+00> : vector<16x16xf32>
    %143 = tpu.matmul %134, %142, %cst_51 {dimension_numbers = #tpu.dot_dimension_numbers<[1], [0], [0], [1], [0, 0, 1, 1], [], []>} : vector<16x16xf32>, vector<16x16xf32>, vector<16x16xf32> -> vector<16x16xf32>
    %c1_i32_52 = arith.constant 1 : i32
    %144 = vector.broadcast %c1_i32_52 : i32 to vector<16x16xi32>
    %145 = arith.cmpi slt, %135, %144 : vector<16x16xi32>
    %cst_53 = arith.constant -1.000000e+09 : f32
    %146 = vector.broadcast %cst_53 : f32 to vector<16x16xf32>
    %147 = arith.select %145, %146, %143 : vector<16x16xi1>, vector<16x16xf32>
    %148 = arith.maximumf %134, %147 : vector<16x16xf32>
    %149 = tpu.iota {dimensions = array<i32: 1>} : vector<16x16xi32>
    %150 = tpu.iota {dimensions = array<i32: 0>} : vector<16x16xi32>
    %151 = tpu.iota {dimensions = array<i32: 1>} : vector<16x16xi32>
    %c2_i32 = arith.constant 2 : i32
    %152 = vector.broadcast %c2_i32 : i32 to vector<16x16xi32>
    %153 = arith.subi %151, %152 : vector<16x16xi32>
    %154 = arith.cmpi eq, %150, %153 : vector<16x16xi32>
    %155 = arith.extui %154 : vector<16x16xi1> to vector<16x16xi32>
    %156 = arith.sitofp %155 : vector<16x16xi32> to vector<16x16xf32>
    %cst_54 = arith.constant dense<0.000000e+00> : vector<16x16xf32>
    %157 = tpu.matmul %148, %156, %cst_54 {dimension_numbers = #tpu.dot_dimension_numbers<[1], [0], [0], [1], [0, 0, 1, 1], [], []>} : vector<16x16xf32>, vector<16x16xf32>, vector<16x16xf32> -> vector<16x16xf32>
    %c2_i32_55 = arith.constant 2 : i32
    %158 = vector.broadcast %c2_i32_55 : i32 to vector<16x16xi32>
    %159 = arith.cmpi slt, %149, %158 : vector<16x16xi32>
    %cst_56 = arith.constant -1.000000e+09 : f32
    %160 = vector.broadcast %cst_56 : f32 to vector<16x16xf32>
    %161 = arith.select %159, %160, %157 : vector<16x16xi1>, vector<16x16xf32>
    %162 = arith.maximumf %148, %161 : vector<16x16xf32>
    %163 = tpu.iota {dimensions = array<i32: 1>} : vector<16x16xi32>
    %164 = tpu.iota {dimensions = array<i32: 0>} : vector<16x16xi32>
    %165 = tpu.iota {dimensions = array<i32: 1>} : vector<16x16xi32>
    %c4_i32 = arith.constant 4 : i32
    %166 = vector.broadcast %c4_i32 : i32 to vector<16x16xi32>
    %167 = arith.subi %165, %166 : vector<16x16xi32>
    %168 = arith.cmpi eq, %164, %167 : vector<16x16xi32>
    %169 = arith.extui %168 : vector<16x16xi1> to vector<16x16xi32>
    %170 = arith.sitofp %169 : vector<16x16xi32> to vector<16x16xf32>
    %cst_57 = arith.constant dense<0.000000e+00> : vector<16x16xf32>
    %171 = tpu.matmul %162, %170, %cst_57 {dimension_numbers = #tpu.dot_dimension_numbers<[1], [0], [0], [1], [0, 0, 1, 1], [], []>} : vector<16x16xf32>, vector<16x16xf32>, vector<16x16xf32> -> vector<16x16xf32>
    %c4_i32_58 = arith.constant 4 : i32
    %172 = vector.broadcast %c4_i32_58 : i32 to vector<16x16xi32>
    %173 = arith.cmpi slt, %163, %172 : vector<16x16xi32>
    %cst_59 = arith.constant -1.000000e+09 : f32
    %174 = vector.broadcast %cst_59 : f32 to vector<16x16xf32>
    %175 = arith.select %173, %174, %171 : vector<16x16xi1>, vector<16x16xf32>
    %176 = arith.maximumf %162, %175 : vector<16x16xf32>
    %177 = tpu.iota {dimensions = array<i32: 1>} : vector<16x16xi32>
    %178 = tpu.iota {dimensions = array<i32: 0>} : vector<16x16xi32>
    %179 = tpu.iota {dimensions = array<i32: 1>} : vector<16x16xi32>
    %c8_i32_60 = arith.constant 8 : i32
    %180 = vector.broadcast %c8_i32_60 : i32 to vector<16x16xi32>
    %181 = arith.subi %179, %180 : vector<16x16xi32>
    %182 = arith.cmpi eq, %178, %181 : vector<16x16xi32>
    %183 = arith.extui %182 : vector<16x16xi1> to vector<16x16xi32>
    %184 = arith.sitofp %183 : vector<16x16xi32> to vector<16x16xf32>
    %cst_61 = arith.constant dense<0.000000e+00> : vector<16x16xf32>
    %185 = tpu.matmul %176, %184, %cst_61 {dimension_numbers = #tpu.dot_dimension_numbers<[1], [0], [0], [1], [0, 0, 1, 1], [], []>} : vector<16x16xf32>, vector<16x16xf32>, vector<16x16xf32> -> vector<16x16xf32>
    %c8_i32_62 = arith.constant 8 : i32
    %186 = vector.broadcast %c8_i32_62 : i32 to vector<16x16xi32>
    %187 = arith.cmpi slt, %177, %186 : vector<16x16xi32>
    %cst_63 = arith.constant -1.000000e+09 : f32
    %188 = vector.broadcast %cst_63 : f32 to vector<16x16xf32>
    %189 = arith.select %187, %188, %185 : vector<16x16xi1>, vector<16x16xf32>
    %190 = arith.maximumf %176, %189 : vector<16x16xf32>
    %c1_i32_64 = arith.constant 1 : i32
    %191 = vector.broadcast %c1_i32_64 : i32 to vector<16x16xi32>
    %192 = arith.subi %83, %191 : vector<16x16xi32>
    %193 = arith.cmpi eq, %84, %192 : vector<16x16xi32>
    %cst_65 = arith.constant 0.000000e+00 : f32
    %194 = vector.shape_cast %129 : vector<1x16xf32> to vector<1x16xf32>
    %195 = vector.broadcast %194 : vector<1x16xf32> to vector<16x16xf32>
    %196 = vector.broadcast %cst_65 : f32 to vector<16x16xf32>
    %197 = arith.select %193, %195, %196 : vector<16x16xi1>, vector<16x16xf32>
    %cst_66 = arith.constant dense<0.000000e+00> : vector<16xf32>
    %198 = vector.multi_reduction <add>, %197, %cst_66 [1] : vector<16x16xf32> to vector<16xf32>
    %199 = vector.shape_cast %198 : vector<16xf32> to vector<16x1xf32>
    %c0_i32_67 = arith.constant 0 : i32
    %200 = vector.broadcast %c0_i32_67 : i32 to vector<16x1xi32>
    %201 = arith.cmpi eq, %7, %200 : vector<16x1xi32>
    %cst_68 = arith.constant 1.000000e+09 : f32
    %202 = vector.broadcast %cst_68 : f32 to vector<16x1xf32>
    %203 = arith.select %201, %202, %199 : vector<16x1xi1>, vector<16x1xf32>
    %204 = vector.broadcast %203 : vector<16x1xf32> to vector<16x16xf32>
    %205 = arith.subf %204, %190 : vector<16x16xf32>
    %cst_69 = arith.constant 0.000000e+00 : f32
    %206 = vector.broadcast %cst_69 : f32 to vector<16x16xf32>
    %207 = arith.maximumf %205, %206 : vector<16x16xf32>
    %208 = vector.broadcast %129 : vector<1x16xf32> to vector<16x16xf32>
    %209 = arith.subf %208, %190 : vector<16x16xf32>
    %cst_70 = arith.constant 0.000000e+00 : f32
    %210 = vector.broadcast %cst_70 : f32 to vector<16x16xf32>
    %211 = arith.maximumf %209, %210 : vector<16x16xf32>
    %212 = arith.minimumf %207, %211 : vector<16x16xf32>
    %213 = arith.cmpi sle, %83, %84 : vector<16x16xi32>
    %214 = arith.andi %89, %213 : vector<16x16xi1>
    %cst_71 = arith.constant 0.000000e+00 : f32
    %215 = vector.broadcast %cst_71 : f32 to vector<16x16xf32>
    %216 = arith.select %214, %212, %215 : vector<16x16xi1>, vector<16x16xf32>
    %c0_i32_72 = arith.constant 0 : i32
    %217 = vector.broadcast %c0_i32_72 : i32 to vector<16x16xi32>
    %218 = arith.cmpi eq, %92, %217 : vector<16x16xi32>
    %219 = vector.shape_cast %121 : vector<1x16xf32> to vector<1x16xf32>
    %220 = vector.broadcast %219 : vector<1x16xf32> to vector<16x16xf32>
    %221 = vector.shape_cast %104 : vector<1x16xf32> to vector<1x16xf32>
    %222 = vector.broadcast %221 : vector<1x16xf32> to vector<16x16xf32>
    %223 = arith.select %218, %220, %222 : vector<16x16xi1>, vector<16x16xf32>
    %cst_73 = arith.constant 5.000000e-01 : f32
    %224 = vector.broadcast %cst_73 : f32 to vector<16x16xf32>
    %225 = arith.cmpf ogt, %223, %224 : vector<16x16xf32>
    %cst_74 = arith.constant 0.000000e+00 : f32
    %226 = vector.broadcast %cst_74 : f32 to vector<16x16xf32>
    %227 = arith.select %225, %216, %226 : vector<16x16xi1>, vector<16x16xf32>
    %cst_75 = arith.constant dense<0xFF800000> : vector<16xf32>
    %228 = vector.multi_reduction <maximumf>, %227, %cst_75 [1] : vector<16x16xf32> to vector<16xf32>
    %229 = vector.shape_cast %228 : vector<16xf32> to vector<16x1xf32>
    %cst_76 = arith.constant dense<0xFF800000> : vector<1xf32>
    %230 = vector.multi_reduction <maximumf>, %229, %cst_76 [0] : vector<16x1xf32> to vector<1xf32>
    %231 = vector.shape_cast %230 : vector<1xf32> to vector<1x1xf32>
    %c0_77 = arith.constant 0 : index
    %c0_78 = arith.constant 0 : index
    %c0_79 = arith.constant 0 : index
    %232 = vector.load %arg11[%c0_77, %c0_78, %c0_79] : memref<1x3x16xf32, #tpu.memory_space<vmem>>, vector<1x1x16xf32>
    %233 = vector.shape_cast %232 : vector<1x1x16xf32> to vector<1x16xf32>
    %234 = vector.shape_cast %125 : vector<1x16xf32> to vector<1x1x16xf32>
    tpu.vector_store %arg11[%c0_77, %c0_78, %c0_79], %234 {strides = array<i32>} : memref<1x3x16xf32, #tpu.memory_space<vmem>>, vector<1x1x16xf32>,
    %c0_80 = arith.constant 0 : index
    %c1_81 = arith.constant 1 : index
    %c0_82 = arith.constant 0 : index
    %235 = vector.load %arg11[%c0_80, %c1_81, %c0_82] : memref<1x3x16xf32, #tpu.memory_space<vmem>>, vector<1x1x16xf32>
    %236 = vector.shape_cast %235 : vector<1x1x16xf32> to vector<1x16xf32>
    %237 = vector.shape_cast %129 : vector<1x16xf32> to vector<1x1x16xf32>
    tpu.vector_store %arg11[%c0_80, %c1_81, %c0_82], %237 {strides = array<i32>} : memref<1x3x16xf32, #tpu.memory_space<vmem>>, vector<1x1x16xf32>,
    %238 = vector.shape_cast %231 : vector<1x1xf32> to vector<1x1xf32>
    %239 = vector.broadcast %238 : vector<1x1xf32> to vector<1x16xf32>
    %c0_83 = arith.constant 0 : index
    %c2 = arith.constant 2 : index
    %c0_84 = arith.constant 0 : index
    %240 = vector.load %arg11[%c0_83, %c2, %c0_84] : memref<1x3x16xf32, #tpu.memory_space<vmem>>, vector<1x1x16xf32>
    %241 = vector.shape_cast %240 : vector<1x1x16xf32> to vector<1x16xf32>
    %242 = vector.shape_cast %239 : vector<1x16xf32> to vector<1x1x16xf32>
    tpu.vector_store %arg11[%c0_83, %c2, %c0_84], %242 {strides = array<i32>} : memref<1x3x16xf32, #tpu.memory_space<vmem>>, vector<1x1x16xf32>,
    return
  }
  func.func @transform_0(%arg0: i32) -> (i32, i32, i32) {
    %c0_i32 = arith.constant 0 : i32
    %c0_i32_0 = arith.constant 0 : i32
    %c0_i32_1 = arith.constant 0 : i32
    return %arg0, %c0_i32, %c0_i32_0 : i32, i32, i32
  }
  func.func @transform_1(%arg0: i32) -> (i32, i32, i32) {
    %c0_i32 = arith.constant 0 : i32
    %c0_i32_0 = arith.constant 0 : i32
    %c0_i32_1 = arith.constant 0 : i32
    return %arg0, %c0_i32, %c0_i32_0 : i32, i32, i32
  }
  func.func @transform_2(%arg0: i32) -> (i32, i32) {
    %c0_i32 = arith.constant 0 : i32
    %c0_i32_0 = arith.constant 0 : i32
    %c0_i32_1 = arith.constant 0 : i32
    return %c0_i32, %c0_i32_0 : i32, i32
  }
  func.func @transform_3(%arg0: i32) -> (i32, i32) {
    %c0_i32 = arith.constant 0 : i32
    %c0_i32_0 = arith.constant 0 : i32
    %c0_i32_1 = arith.constant 0 : i32
    return %c0_i32, %c0_i32_0 : i32, i32
  }
  func.func @transform_4(%arg0: i32) -> (i32, i32) {
    %c0_i32 = arith.constant 0 : i32
    %c0_i32_0 = arith.constant 0 : i32
    %c0_i32_1 = arith.constant 0 : i32
    return %c0_i32, %c0_i32_0 : i32, i32
  }
  func.func @transform_5(%arg0: i32) -> (i32, i32) {
    %c0_i32 = arith.constant 0 : i32
    %c0_i32_0 = arith.constant 0 : i32
    %c0_i32_1 = arith.constant 0 : i32
    return %c0_i32, %c0_i32_0 : i32, i32
  }
  func.func @transform_6(%arg0: i32) -> (i32, i32) {
    %c0_i32 = arith.constant 0 : i32
    %c0_i32_0 = arith.constant 0 : i32
    %c0_i32_1 = arith.constant 0 : i32
    return %c0_i32, %c0_i32_0 : i32, i32
  }
  func.func @transform_7(%arg0: i32) -> (i32, i32) {
    %c0_i32 = arith.constant 0 : i32
    %c0_i32_0 = arith.constant 0 : i32
    %c0_i32_1 = arith.constant 0 : i32
    return %c0_i32, %c0_i32_0 : i32, i32
  }
  func.func @transform_8(%arg0: i32) -> (i32, i32) {
    %c0_i32 = arith.constant 0 : i32
    %c0_i32_0 = arith.constant 0 : i32
    %c0_i32_1 = arith.constant 0 : i32
    return %c0_i32, %c0_i32_0 : i32, i32
  }
  func.func @transform_9(%arg0: i32) -> i32 {
    %c0_i32 = arith.constant 0 : i32
    %c0_i32_0 = arith.constant 0 : i32
    return %c0_i32 : i32
  }
  func.func @transform_10(%arg0: i32) -> (i32, i32, i32) {
    %c0_i32 = arith.constant 0 : i32
    %c0_i32_0 = arith.constant 0 : i32
    %c0_i32_1 = arith.constant 0 : i32
    return %arg0, %c0_i32, %c0_i32_0 : i32, i32, i32
  }
}

module attributes {stable_mosaic.version = 11 : i64} {
  func.func @blockhead_kernel(%arg0: i32, %arg1: memref<3xf32, #tpu.memory_space<smem>>, %arg2: memref<1x1x8xf32, #tpu.memory_space<vmem>>, %arg3: memref<1x1x8xf32, #tpu.memory_space<vmem>>, %arg4: memref<1x8x64xf32, #tpu.memory_space<vmem>>, %arg5: memref<1x8x8xf32, #tpu.memory_space<vmem>>, %arg6: memref<1x64x8xf32, #tpu.memory_space<vmem>>, %arg7: memref<1x8x8xf32, #tpu.memory_space<vmem>>, %arg8: memref<1x8x8xf32, #tpu.memory_space<vmem>>) attributes {dimension_semantics = [#tpu.dimension_semantics<parallel>], iteration_bounds = array<i64: 2>, scalar_prefetch = 0 : i64, scratch_operands = 0 : i64, tpu.core_type = #tpu.core_type<tc>, window_params = [{transform_indices = @transform_0, window_bounds = array<i64: 3>}, {transform_indices = @transform_1, window_bounds = array<i64: 1, 1, 8>}, {transform_indices = @transform_2, window_bounds = array<i64: 1, 1, 8>}, {transform_indices = @transform_3, window_bounds = array<i64: 1, 8, 64>}, {transform_indices = @transform_4, window_bounds = array<i64: 1, 8, 8>}, {transform_indices = @transform_5, window_bounds = array<i64: 1, 64, 8>}, {transform_indices = @transform_6, window_bounds = array<i64: 1, 8, 8>}, {transform_indices = @transform_7, window_bounds = array<i64: 1, 8, 8>}]} {
    %c0 = arith.constant 0 : index
    %0 = memref.load %arg1[%c0] : memref<3xf32, #tpu.memory_space<smem>>
    %c1 = arith.constant 1 : index
    %1 = memref.load %arg1[%c1] : memref<3xf32, #tpu.memory_space<smem>>
    %c2 = arith.constant 2 : index
    %2 = memref.load %arg1[%c2] : memref<3xf32, #tpu.memory_space<smem>>
    %c0_0 = arith.constant 0 : index
    %c0_1 = arith.constant 0 : index
    %c0_2 = arith.constant 0 : index
    %3 = vector.load %arg2[%c0_0, %c0_1, %c0_2] : memref<1x1x8xf32, #tpu.memory_space<vmem>>, vector<1x1x8xf32>
    %4 = vector.shape_cast %3 : vector<1x1x8xf32> to vector<1x8xf32>
    %5 = vector.broadcast %2 : f32 to vector<1x8xf32>
    %6 = arith.subf %4, %5 : vector<1x8xf32>
    %c0_3 = arith.constant 0 : index
    %c0_4 = arith.constant 0 : index
    %c0_5 = arith.constant 0 : index
    %7 = vector.load %arg3[%c0_3, %c0_4, %c0_5] : memref<1x1x8xf32, #tpu.memory_space<vmem>>, vector<1x1x8xf32>
    %8 = vector.shape_cast %7 : vector<1x1x8xf32> to vector<1x8xf32>
    %9 = tpu.iota {dimensions = array<i32: 0>} : vector<8x8xi32>
    %10 = tpu.iota {dimensions = array<i32: 1>} : vector<8x8xi32>
    %11 = arith.cmpi eq, %9, %10 : vector<8x8xi32>
    %cst = arith.constant 0.000000e+00 : f32
    %12 = vector.shape_cast %8 : vector<1x8xf32> to vector<1x8xf32>
    %13 = vector.broadcast %12 : vector<1x8xf32> to vector<8x8xf32>
    %14 = vector.broadcast %cst : f32 to vector<8x8xf32>
    %15 = arith.select %11, %13, %14 : vector<8x8xi1>, vector<8x8xf32>
    %cst_6 = arith.constant dense<0.000000e+00> : vector<8xf32>
    %16 = vector.multi_reduction <add>, %15, %cst_6 [1] : vector<8x8xf32> to vector<8xf32>
    %17 = vector.shape_cast %16 : vector<8xf32> to vector<8x1xf32>
    %18 = vector.broadcast %6 : vector<1x8xf32> to vector<8x8xf32>
    %19 = vector.broadcast %17 : vector<8x1xf32> to vector<8x8xf32>
    %20 = arith.subf %18, %19 : vector<8x8xf32>
    %21 = vector.broadcast %0 : f32 to vector<8x8xf32>
    %22 = arith.mulf %20, %21 : vector<8x8xf32>
    %23 = math.absf %22 : vector<8x8xf32>
    %cst_7 = arith.constant 0.000000e+00 : f32
    %24 = vector.broadcast %cst_7 : f32 to vector<8x8xf32>
    %25 = arith.subf %24, %23 : vector<8x8xf32>
    %26 = math.exp %25 : vector<8x8xf32>
    %cst_8 = arith.constant 0.000000e+00 : f32
    %27 = vector.broadcast %cst_8 : f32 to vector<8x8xf32>
    %28 = arith.cmpf oge, %22, %27 : vector<8x8xf32>
    %cst_9 = arith.constant 1.000000e+00 : f32
    %29 = vector.broadcast %cst_9 : f32 to vector<8x8xf32>
    %30 = arith.addf %29, %26 : vector<8x8xf32>
    %31 = arith.divf %26, %30 : vector<8x8xf32>
    %cst_10 = arith.constant 1.000000e+00 : f32
    %32 = vector.broadcast %cst_10 : f32 to vector<8x8xf32>
    %33 = arith.addf %32, %26 : vector<8x8xf32>
    %cst_11 = arith.constant 1.000000e+00 : f32
    %34 = vector.broadcast %cst_11 : f32 to vector<8x8xf32>
    %35 = arith.divf %34, %33 : vector<8x8xf32>
    %36 = arith.select %28, %31, %35 : vector<8x8xi1>, vector<8x8xf32>
    %37 = arith.cmpi sgt, %9, %10 : vector<8x8xi32>
    %cst_12 = arith.constant 1.000000e+00 : f32
    %38 = vector.broadcast %cst_12 : f32 to vector<8x8xf32>
    %39 = arith.select %37, %36, %38 : vector<8x8xi1>, vector<8x8xf32>
    %40 = tpu.iota {dimensions = array<i32: 1>} : vector<8x8xi32>
    %41 = tpu.iota {dimensions = array<i32: 0>} : vector<8x8xi32>
    %42 = tpu.iota {dimensions = array<i32: 1>} : vector<8x8xi32>
    %c-1_i32 = arith.constant -1 : i32
    %43 = vector.broadcast %c-1_i32 : i32 to vector<8x8xi32>
    %44 = arith.subi %42, %43 : vector<8x8xi32>
    %45 = arith.cmpi eq, %41, %44 : vector<8x8xi32>
    %46 = arith.extui %45 : vector<8x8xi1> to vector<8x8xi32>
    %47 = arith.sitofp %46 : vector<8x8xi32> to vector<8x8xf32>
    %cst_13 = arith.constant dense<0.000000e+00> : vector<8x8xf32>
    %48 = tpu.matmul %39, %47, %cst_13 {dimension_numbers = #tpu.dot_dimension_numbers<[1], [0], [0], [1], [0, 0, 1, 1], [], []>} : vector<8x8xf32>, vector<8x8xf32>, vector<8x8xf32> -> vector<8x8xf32>
    %c7_i32 = arith.constant 7 : i32
    %49 = vector.broadcast %c7_i32 : i32 to vector<8x8xi32>
    %50 = arith.cmpi sge, %40, %49 : vector<8x8xi32>
    %cst_14 = arith.constant 1.000000e+09 : f32
    %51 = vector.broadcast %cst_14 : f32 to vector<8x8xf32>
    %52 = arith.select %50, %51, %48 : vector<8x8xi1>, vector<8x8xf32>
    %53 = arith.minimumf %39, %52 : vector<8x8xf32>
    %54 = tpu.iota {dimensions = array<i32: 1>} : vector<8x8xi32>
    %55 = tpu.iota {dimensions = array<i32: 0>} : vector<8x8xi32>
    %56 = tpu.iota {dimensions = array<i32: 1>} : vector<8x8xi32>
    %c-2_i32 = arith.constant -2 : i32
    %57 = vector.broadcast %c-2_i32 : i32 to vector<8x8xi32>
    %58 = arith.subi %56, %57 : vector<8x8xi32>
    %59 = arith.cmpi eq, %55, %58 : vector<8x8xi32>
    %60 = arith.extui %59 : vector<8x8xi1> to vector<8x8xi32>
    %61 = arith.sitofp %60 : vector<8x8xi32> to vector<8x8xf32>
    %cst_15 = arith.constant dense<0.000000e+00> : vector<8x8xf32>
    %62 = tpu.matmul %53, %61, %cst_15 {dimension_numbers = #tpu.dot_dimension_numbers<[1], [0], [0], [1], [0, 0, 1, 1], [], []>} : vector<8x8xf32>, vector<8x8xf32>, vector<8x8xf32> -> vector<8x8xf32>
    %c6_i32 = arith.constant 6 : i32
    %63 = vector.broadcast %c6_i32 : i32 to vector<8x8xi32>
    %64 = arith.cmpi sge, %54, %63 : vector<8x8xi32>
    %cst_16 = arith.constant 1.000000e+09 : f32
    %65 = vector.broadcast %cst_16 : f32 to vector<8x8xf32>
    %66 = arith.select %64, %65, %62 : vector<8x8xi1>, vector<8x8xf32>
    %67 = arith.minimumf %53, %66 : vector<8x8xf32>
    %68 = tpu.iota {dimensions = array<i32: 1>} : vector<8x8xi32>
    %69 = tpu.iota {dimensions = array<i32: 0>} : vector<8x8xi32>
    %70 = tpu.iota {dimensions = array<i32: 1>} : vector<8x8xi32>
    %c-4_i32 = arith.constant -4 : i32
    %71 = vector.broadcast %c-4_i32 : i32 to vector<8x8xi32>
    %72 = arith.subi %70, %71 : vector<8x8xi32>
    %73 = arith.cmpi eq, %69, %72 : vector<8x8xi32>
    %74 = arith.extui %73 : vector<8x8xi1> to vector<8x8xi32>
    %75 = arith.sitofp %74 : vector<8x8xi32> to vector<8x8xf32>
    %cst_17 = arith.constant dense<0.000000e+00> : vector<8x8xf32>
    %76 = tpu.matmul %67, %75, %cst_17 {dimension_numbers = #tpu.dot_dimension_numbers<[1], [0], [0], [1], [0, 0, 1, 1], [], []>} : vector<8x8xf32>, vector<8x8xf32>, vector<8x8xf32> -> vector<8x8xf32>
    %c4_i32 = arith.constant 4 : i32
    %77 = vector.broadcast %c4_i32 : i32 to vector<8x8xi32>
    %78 = arith.cmpi sge, %68, %77 : vector<8x8xi32>
    %cst_18 = arith.constant 1.000000e+09 : f32
    %79 = vector.broadcast %cst_18 : f32 to vector<8x8xf32>
    %80 = arith.select %78, %79, %76 : vector<8x8xi1>, vector<8x8xf32>
    %81 = arith.minimumf %67, %80 : vector<8x8xf32>
    %82 = tpu.iota {dimensions = array<i32: 1>} : vector<8x8xi32>
    %83 = tpu.iota {dimensions = array<i32: 0>} : vector<8x8xi32>
    %84 = tpu.iota {dimensions = array<i32: 1>} : vector<8x8xi32>
    %c1_i32 = arith.constant 1 : i32
    %85 = vector.broadcast %c1_i32 : i32 to vector<8x8xi32>
    %86 = arith.subi %84, %85 : vector<8x8xi32>
    %87 = arith.cmpi eq, %83, %86 : vector<8x8xi32>
    %88 = arith.extui %87 : vector<8x8xi1> to vector<8x8xi32>
    %89 = arith.sitofp %88 : vector<8x8xi32> to vector<8x8xf32>
    %cst_19 = arith.constant dense<0.000000e+00> : vector<8x8xf32>
    %90 = tpu.matmul %81, %89, %cst_19 {dimension_numbers = #tpu.dot_dimension_numbers<[1], [0], [0], [1], [0, 0, 1, 1], [], []>} : vector<8x8xf32>, vector<8x8xf32>, vector<8x8xf32> -> vector<8x8xf32>
    %c1_i32_20 = arith.constant 1 : i32
    %91 = vector.broadcast %c1_i32_20 : i32 to vector<8x8xi32>
    %92 = arith.cmpi slt, %82, %91 : vector<8x8xi32>
    %cst_21 = arith.constant 0.000000e+00 : f32
    %93 = vector.broadcast %cst_21 : f32 to vector<8x8xf32>
    %94 = arith.select %92, %93, %90 : vector<8x8xi1>, vector<8x8xf32>
    %95 = arith.subf %81, %94 : vector<8x8xf32>
    %96 = arith.cmpi sge, %9, %10 : vector<8x8xi32>
    %cst_22 = arith.constant 0.000000e+00 : f32
    %97 = vector.broadcast %cst_22 : f32 to vector<8x8xf32>
    %98 = arith.select %96, %95, %97 : vector<8x8xi1>, vector<8x8xf32>
    %99 = arith.cmpi sle, %9, %10 : vector<8x8xi32>
    %cst_23 = arith.constant 1.000000e+00 : f32
    %100 = vector.broadcast %cst_23 : f32 to vector<8x8xf32>
    %101 = arith.select %99, %36, %100 : vector<8x8xi1>, vector<8x8xf32>
    %102 = tpu.iota {dimensions = array<i32: 1>} : vector<8x8xi32>
    %103 = tpu.iota {dimensions = array<i32: 0>} : vector<8x8xi32>
    %104 = tpu.iota {dimensions = array<i32: 1>} : vector<8x8xi32>
    %c1_i32_24 = arith.constant 1 : i32
    %105 = vector.broadcast %c1_i32_24 : i32 to vector<8x8xi32>
    %106 = arith.subi %104, %105 : vector<8x8xi32>
    %107 = arith.cmpi eq, %103, %106 : vector<8x8xi32>
    %108 = arith.extui %107 : vector<8x8xi1> to vector<8x8xi32>
    %109 = arith.sitofp %108 : vector<8x8xi32> to vector<8x8xf32>
    %cst_25 = arith.constant dense<0.000000e+00> : vector<8x8xf32>
    %110 = tpu.matmul %101, %109, %cst_25 {dimension_numbers = #tpu.dot_dimension_numbers<[1], [0], [0], [1], [0, 0, 1, 1], [], []>} : vector<8x8xf32>, vector<8x8xf32>, vector<8x8xf32> -> vector<8x8xf32>
    %c1_i32_26 = arith.constant 1 : i32
    %111 = vector.broadcast %c1_i32_26 : i32 to vector<8x8xi32>
    %112 = arith.cmpi slt, %102, %111 : vector<8x8xi32>
    %cst_27 = arith.constant 1.000000e+00 : f32
    %113 = vector.broadcast %cst_27 : f32 to vector<8x8xf32>
    %114 = arith.select %112, %113, %110 : vector<8x8xi1>, vector<8x8xf32>
    %115 = tpu.iota {dimensions = array<i32: 1>} : vector<8x8xi32>
    %116 = tpu.iota {dimensions = array<i32: 0>} : vector<8x8xi32>
    %117 = tpu.iota {dimensions = array<i32: 1>} : vector<8x8xi32>
    %c1_i32_28 = arith.constant 1 : i32
    %118 = vector.broadcast %c1_i32_28 : i32 to vector<8x8xi32>
    %119 = arith.subi %117, %118 : vector<8x8xi32>
    %120 = arith.cmpi eq, %116, %119 : vector<8x8xi32>
    %121 = arith.extui %120 : vector<8x8xi1> to vector<8x8xi32>
    %122 = arith.sitofp %121 : vector<8x8xi32> to vector<8x8xf32>
    %cst_29 = arith.constant dense<0.000000e+00> : vector<8x8xf32>
    %123 = tpu.matmul %114, %122, %cst_29 {dimension_numbers = #tpu.dot_dimension_numbers<[1], [0], [0], [1], [0, 0, 1, 1], [], []>} : vector<8x8xf32>, vector<8x8xf32>, vector<8x8xf32> -> vector<8x8xf32>
    %c1_i32_30 = arith.constant 1 : i32
    %124 = vector.broadcast %c1_i32_30 : i32 to vector<8x8xi32>
    %125 = arith.cmpi slt, %115, %124 : vector<8x8xi32>
    %cst_31 = arith.constant 1.000000e+09 : f32
    %126 = vector.broadcast %cst_31 : f32 to vector<8x8xf32>
    %127 = arith.select %125, %126, %123 : vector<8x8xi1>, vector<8x8xf32>
    %128 = arith.minimumf %114, %127 : vector<8x8xf32>
    %129 = tpu.iota {dimensions = array<i32: 1>} : vector<8x8xi32>
    %130 = tpu.iota {dimensions = array<i32: 0>} : vector<8x8xi32>
    %131 = tpu.iota {dimensions = array<i32: 1>} : vector<8x8xi32>
    %c2_i32 = arith.constant 2 : i32
    %132 = vector.broadcast %c2_i32 : i32 to vector<8x8xi32>
    %133 = arith.subi %131, %132 : vector<8x8xi32>
    %134 = arith.cmpi eq, %130, %133 : vector<8x8xi32>
    %135 = arith.extui %134 : vector<8x8xi1> to vector<8x8xi32>
    %136 = arith.sitofp %135 : vector<8x8xi32> to vector<8x8xf32>
    %cst_32 = arith.constant dense<0.000000e+00> : vector<8x8xf32>
    %137 = tpu.matmul %128, %136, %cst_32 {dimension_numbers = #tpu.dot_dimension_numbers<[1], [0], [0], [1], [0, 0, 1, 1], [], []>} : vector<8x8xf32>, vector<8x8xf32>, vector<8x8xf32> -> vector<8x8xf32>
    %c2_i32_33 = arith.constant 2 : i32
    %138 = vector.broadcast %c2_i32_33 : i32 to vector<8x8xi32>
    %139 = arith.cmpi slt, %129, %138 : vector<8x8xi32>
    %cst_34 = arith.constant 1.000000e+09 : f32
    %140 = vector.broadcast %cst_34 : f32 to vector<8x8xf32>
    %141 = arith.select %139, %140, %137 : vector<8x8xi1>, vector<8x8xf32>
    %142 = arith.minimumf %128, %141 : vector<8x8xf32>
    %143 = tpu.iota {dimensions = array<i32: 1>} : vector<8x8xi32>
    %144 = tpu.iota {dimensions = array<i32: 0>} : vector<8x8xi32>
    %145 = tpu.iota {dimensions = array<i32: 1>} : vector<8x8xi32>
    %c4_i32_35 = arith.constant 4 : i32
    %146 = vector.broadcast %c4_i32_35 : i32 to vector<8x8xi32>
    %147 = arith.subi %145, %146 : vector<8x8xi32>
    %148 = arith.cmpi eq, %144, %147 : vector<8x8xi32>
    %149 = arith.extui %148 : vector<8x8xi1> to vector<8x8xi32>
    %150 = arith.sitofp %149 : vector<8x8xi32> to vector<8x8xf32>
    %cst_36 = arith.constant dense<0.000000e+00> : vector<8x8xf32>
    %151 = tpu.matmul %142, %150, %cst_36 {dimension_numbers = #tpu.dot_dimension_numbers<[1], [0], [0], [1], [0, 0, 1, 1], [], []>} : vector<8x8xf32>, vector<8x8xf32>, vector<8x8xf32> -> vector<8x8xf32>
    %c4_i32_37 = arith.constant 4 : i32
    %152 = vector.broadcast %c4_i32_37 : i32 to vector<8x8xi32>
    %153 = arith.cmpi slt, %143, %152 : vector<8x8xi32>
    %cst_38 = arith.constant 1.000000e+09 : f32
    %154 = vector.broadcast %cst_38 : f32 to vector<8x8xf32>
    %155 = arith.select %153, %154, %151 : vector<8x8xi1>, vector<8x8xf32>
    %156 = arith.minimumf %142, %155 : vector<8x8xf32>
    %157 = tpu.iota {dimensions = array<i32: 1>} : vector<8x8xi32>
    %158 = tpu.iota {dimensions = array<i32: 0>} : vector<8x8xi32>
    %159 = tpu.iota {dimensions = array<i32: 1>} : vector<8x8xi32>
    %c-1_i32_39 = arith.constant -1 : i32
    %160 = vector.broadcast %c-1_i32_39 : i32 to vector<8x8xi32>
    %161 = arith.subi %159, %160 : vector<8x8xi32>
    %162 = arith.cmpi eq, %158, %161 : vector<8x8xi32>
    %163 = arith.extui %162 : vector<8x8xi1> to vector<8x8xi32>
    %164 = arith.sitofp %163 : vector<8x8xi32> to vector<8x8xf32>
    %cst_40 = arith.constant dense<0.000000e+00> : vector<8x8xf32>
    %165 = tpu.matmul %156, %164, %cst_40 {dimension_numbers = #tpu.dot_dimension_numbers<[1], [0], [0], [1], [0, 0, 1, 1], [], []>} : vector<8x8xf32>, vector<8x8xf32>, vector<8x8xf32> -> vector<8x8xf32>
    %c7_i32_41 = arith.constant 7 : i32
    %166 = vector.broadcast %c7_i32_41 : i32 to vector<8x8xi32>
    %167 = arith.cmpi sge, %157, %166 : vector<8x8xi32>
    %cst_42 = arith.constant 0.000000e+00 : f32
    %168 = vector.broadcast %cst_42 : f32 to vector<8x8xf32>
    %169 = arith.select %167, %168, %165 : vector<8x8xi1>, vector<8x8xf32>
    %170 = arith.subf %156, %169 : vector<8x8xf32>
    %171 = arith.cmpi sle, %9, %10 : vector<8x8xi32>
    %cst_43 = arith.constant 0.000000e+00 : f32
    %172 = vector.broadcast %cst_43 : f32 to vector<8x8xf32>
    %173 = arith.select %171, %170, %172 : vector<8x8xi1>, vector<8x8xf32>
    %174 = arith.cmpi sle, %9, %10 : vector<8x8xi32>
    %175 = arith.extui %174 : vector<8x8xi1> to vector<8x8xi32>
    %176 = arith.sitofp %175 : vector<8x8xi32> to vector<8x8xf32>
    %177 = arith.cmpi sge, %9, %10 : vector<8x8xi32>
    %178 = arith.extui %177 : vector<8x8xi1> to vector<8x8xi32>
    %179 = arith.sitofp %178 : vector<8x8xi32> to vector<8x8xf32>
    %cst_44 = arith.constant dense<0.000000e+00> : vector<8x8xf32>
    %180 = tpu.matmul %98, %176, %cst_44 {dimension_numbers = #tpu.dot_dimension_numbers<[1], [0], [0], [1], [0, 0, 1, 1], [], []>} : vector<8x8xf32>, vector<8x8xf32>, vector<8x8xf32> -> vector<8x8xf32>
    %cst_45 = arith.constant dense<0.000000e+00> : vector<8x8xf32>
    %181 = tpu.matmul %173, %179, %cst_45 {dimension_numbers = #tpu.dot_dimension_numbers<[1], [0], [0], [1], [0, 0, 1, 1], [], []>} : vector<8x8xf32>, vector<8x8xf32>, vector<8x8xf32> -> vector<8x8xf32>
    %182 = arith.cmpi sge, %9, %10 : vector<8x8xi32>
    %cst_46 = arith.constant 0.000000e+00 : f32
    %183 = vector.broadcast %cst_46 : f32 to vector<8x8xf32>
    %184 = arith.select %182, %180, %183 : vector<8x8xi1>, vector<8x8xf32>
    %185 = arith.cmpi slt, %9, %10 : vector<8x8xi32>
    %cst_47 = arith.constant 0.000000e+00 : f32
    %186 = vector.broadcast %cst_47 : f32 to vector<8x8xf32>
    %187 = arith.select %185, %181, %186 : vector<8x8xi1>, vector<8x8xf32>
    %188 = arith.addf %184, %187 : vector<8x8xf32>
    %c0_48 = arith.constant 0 : index
    %c0_49 = arith.constant 0 : index
    %c0_50 = arith.constant 0 : index
    %189 = vector.load %arg5[%c0_48, %c0_49, %c0_50] : memref<1x8x8xf32, #tpu.memory_space<vmem>>, vector<1x8x8xf32>
    %190 = vector.shape_cast %189 : vector<1x8x8xf32> to vector<8x8xf32>
    %191 = vector.shape_cast %188 : vector<8x8xf32> to vector<1x8x8xf32>
    tpu.vector_store %arg5[%c0_48, %c0_49, %c0_50], %191 {strides = array<i32>} : memref<1x8x8xf32, #tpu.memory_space<vmem>>, vector<1x8x8xf32>,
    %c0_i32 = arith.constant 0 : i32
    %192 = vector.broadcast %c0_i32 : i32 to vector<8x8xi32>
    %193 = arith.cmpi eq, %10, %192 : vector<8x8xi32>
    %cst_51 = arith.constant 0.000000e+00 : f32
    %194 = vector.broadcast %cst_51 : f32 to vector<8x8xf32>
    %195 = arith.select %193, %98, %194 : vector<8x8xi1>, vector<8x8xf32>
    %cst_52 = arith.constant dense<0.000000e+00> : vector<8xf32>
    %196 = vector.multi_reduction <add>, %195, %cst_52 [1] : vector<8x8xf32> to vector<8xf32>
    %197 = vector.shape_cast %196 : vector<8xf32> to vector<8x1xf32>
    %198 = vector.broadcast %197 : vector<8x1xf32> to vector<8x8xf32>
    %199 = arith.mulf %198, %173 : vector<8x8xf32>
    %c0_53 = arith.constant 0 : index
    %c0_54 = arith.constant 0 : index
    %c0_55 = arith.constant 0 : index
    %200 = vector.load %arg4[%c0_53, %c0_54, %c0_55] : memref<1x8x64xf32, #tpu.memory_space<vmem>>, vector<1x8x8xf32>
    %201 = vector.shape_cast %200 : vector<1x8x8xf32> to vector<8x8xf32>
    %202 = vector.shape_cast %199 : vector<8x8xf32> to vector<1x8x8xf32>
    tpu.vector_store %arg4[%c0_53, %c0_54, %c0_55], %202 {strides = array<i32>} : memref<1x8x64xf32, #tpu.memory_space<vmem>>, vector<1x8x8xf32>,
    %c1_i32_56 = arith.constant 1 : i32
    %203 = vector.broadcast %c1_i32_56 : i32 to vector<8x8xi32>
    %204 = arith.cmpi eq, %10, %203 : vector<8x8xi32>
    %cst_57 = arith.constant 0.000000e+00 : f32
    %205 = vector.broadcast %cst_57 : f32 to vector<8x8xf32>
    %206 = arith.select %204, %98, %205 : vector<8x8xi1>, vector<8x8xf32>
    %cst_58 = arith.constant dense<0.000000e+00> : vector<8xf32>
    %207 = vector.multi_reduction <add>, %206, %cst_58 [1] : vector<8x8xf32> to vector<8xf32>
    %208 = vector.shape_cast %207 : vector<8xf32> to vector<8x1xf32>
    %209 = vector.broadcast %208 : vector<8x1xf32> to vector<8x8xf32>
    %210 = arith.mulf %209, %173 : vector<8x8xf32>
    %c0_59 = arith.constant 0 : index
    %c0_60 = arith.constant 0 : index
    %c8 = arith.constant 8 : index
    %211 = vector.load %arg4[%c0_59, %c0_60, %c8] : memref<1x8x64xf32, #tpu.memory_space<vmem>>, vector<1x8x8xf32>
    %212 = vector.shape_cast %211 : vector<1x8x8xf32> to vector<8x8xf32>
    %213 = vector.shape_cast %210 : vector<8x8xf32> to vector<1x8x8xf32>
    tpu.vector_store %arg4[%c0_59, %c0_60, %c8], %213 {strides = array<i32>} : memref<1x8x64xf32, #tpu.memory_space<vmem>>, vector<1x8x8xf32>,
    %c2_i32_61 = arith.constant 2 : i32
    %214 = vector.broadcast %c2_i32_61 : i32 to vector<8x8xi32>
    %215 = arith.cmpi eq, %10, %214 : vector<8x8xi32>
    %cst_62 = arith.constant 0.000000e+00 : f32
    %216 = vector.broadcast %cst_62 : f32 to vector<8x8xf32>
    %217 = arith.select %215, %98, %216 : vector<8x8xi1>, vector<8x8xf32>
    %cst_63 = arith.constant dense<0.000000e+00> : vector<8xf32>
    %218 = vector.multi_reduction <add>, %217, %cst_63 [1] : vector<8x8xf32> to vector<8xf32>
    %219 = vector.shape_cast %218 : vector<8xf32> to vector<8x1xf32>
    %220 = vector.broadcast %219 : vector<8x1xf32> to vector<8x8xf32>
    %221 = arith.mulf %220, %173 : vector<8x8xf32>
    %c0_64 = arith.constant 0 : index
    %c0_65 = arith.constant 0 : index
    %c16 = arith.constant 16 : index
    %222 = vector.load %arg4[%c0_64, %c0_65, %c16] : memref<1x8x64xf32, #tpu.memory_space<vmem>>, vector<1x8x8xf32>
    %223 = vector.shape_cast %222 : vector<1x8x8xf32> to vector<8x8xf32>
    %224 = vector.shape_cast %221 : vector<8x8xf32> to vector<1x8x8xf32>
    tpu.vector_store %arg4[%c0_64, %c0_65, %c16], %224 {strides = array<i32>} : memref<1x8x64xf32, #tpu.memory_space<vmem>>, vector<1x8x8xf32>,
    %c3_i32 = arith.constant 3 : i32
    %225 = vector.broadcast %c3_i32 : i32 to vector<8x8xi32>
    %226 = arith.cmpi eq, %10, %225 : vector<8x8xi32>
    %cst_66 = arith.constant 0.000000e+00 : f32
    %227 = vector.broadcast %cst_66 : f32 to vector<8x8xf32>
    %228 = arith.select %226, %98, %227 : vector<8x8xi1>, vector<8x8xf32>
    %cst_67 = arith.constant dense<0.000000e+00> : vector<8xf32>
    %229 = vector.multi_reduction <add>, %228, %cst_67 [1] : vector<8x8xf32> to vector<8xf32>
    %230 = vector.shape_cast %229 : vector<8xf32> to vector<8x1xf32>
    %231 = vector.broadcast %230 : vector<8x1xf32> to vector<8x8xf32>
    %232 = arith.mulf %231, %173 : vector<8x8xf32>
    %c0_68 = arith.constant 0 : index
    %c0_69 = arith.constant 0 : index
    %c24 = arith.constant 24 : index
    %233 = vector.load %arg4[%c0_68, %c0_69, %c24] : memref<1x8x64xf32, #tpu.memory_space<vmem>>, vector<1x8x8xf32>
    %234 = vector.shape_cast %233 : vector<1x8x8xf32> to vector<8x8xf32>
    %235 = vector.shape_cast %232 : vector<8x8xf32> to vector<1x8x8xf32>
    tpu.vector_store %arg4[%c0_68, %c0_69, %c24], %235 {strides = array<i32>} : memref<1x8x64xf32, #tpu.memory_space<vmem>>, vector<1x8x8xf32>,
    %c4_i32_70 = arith.constant 4 : i32
    %236 = vector.broadcast %c4_i32_70 : i32 to vector<8x8xi32>
    %237 = arith.cmpi eq, %10, %236 : vector<8x8xi32>
    %cst_71 = arith.constant 0.000000e+00 : f32
    %238 = vector.broadcast %cst_71 : f32 to vector<8x8xf32>
    %239 = arith.select %237, %98, %238 : vector<8x8xi1>, vector<8x8xf32>
    %cst_72 = arith.constant dense<0.000000e+00> : vector<8xf32>
    %240 = vector.multi_reduction <add>, %239, %cst_72 [1] : vector<8x8xf32> to vector<8xf32>
    %241 = vector.shape_cast %240 : vector<8xf32> to vector<8x1xf32>
    %242 = vector.broadcast %241 : vector<8x1xf32> to vector<8x8xf32>
    %243 = arith.mulf %242, %173 : vector<8x8xf32>
    %c0_73 = arith.constant 0 : index
    %c0_74 = arith.constant 0 : index
    %c32 = arith.constant 32 : index
    %244 = vector.load %arg4[%c0_73, %c0_74, %c32] : memref<1x8x64xf32, #tpu.memory_space<vmem>>, vector<1x8x8xf32>
    %245 = vector.shape_cast %244 : vector<1x8x8xf32> to vector<8x8xf32>
    %246 = vector.shape_cast %243 : vector<8x8xf32> to vector<1x8x8xf32>
    tpu.vector_store %arg4[%c0_73, %c0_74, %c32], %246 {strides = array<i32>} : memref<1x8x64xf32, #tpu.memory_space<vmem>>, vector<1x8x8xf32>,
    %c5_i32 = arith.constant 5 : i32
    %247 = vector.broadcast %c5_i32 : i32 to vector<8x8xi32>
    %248 = arith.cmpi eq, %10, %247 : vector<8x8xi32>
    %cst_75 = arith.constant 0.000000e+00 : f32
    %249 = vector.broadcast %cst_75 : f32 to vector<8x8xf32>
    %250 = arith.select %248, %98, %249 : vector<8x8xi1>, vector<8x8xf32>
    %cst_76 = arith.constant dense<0.000000e+00> : vector<8xf32>
    %251 = vector.multi_reduction <add>, %250, %cst_76 [1] : vector<8x8xf32> to vector<8xf32>
    %252 = vector.shape_cast %251 : vector<8xf32> to vector<8x1xf32>
    %253 = vector.broadcast %252 : vector<8x1xf32> to vector<8x8xf32>
    %254 = arith.mulf %253, %173 : vector<8x8xf32>
    %c0_77 = arith.constant 0 : index
    %c0_78 = arith.constant 0 : index
    %c40 = arith.constant 40 : index
    %255 = vector.load %arg4[%c0_77, %c0_78, %c40] : memref<1x8x64xf32, #tpu.memory_space<vmem>>, vector<1x8x8xf32>
    %256 = vector.shape_cast %255 : vector<1x8x8xf32> to vector<8x8xf32>
    %257 = vector.shape_cast %254 : vector<8x8xf32> to vector<1x8x8xf32>
    tpu.vector_store %arg4[%c0_77, %c0_78, %c40], %257 {strides = array<i32>} : memref<1x8x64xf32, #tpu.memory_space<vmem>>, vector<1x8x8xf32>,
    %c6_i32_79 = arith.constant 6 : i32
    %258 = vector.broadcast %c6_i32_79 : i32 to vector<8x8xi32>
    %259 = arith.cmpi eq, %10, %258 : vector<8x8xi32>
    %cst_80 = arith.constant 0.000000e+00 : f32
    %260 = vector.broadcast %cst_80 : f32 to vector<8x8xf32>
    %261 = arith.select %259, %98, %260 : vector<8x8xi1>, vector<8x8xf32>
    %cst_81 = arith.constant dense<0.000000e+00> : vector<8xf32>
    %262 = vector.multi_reduction <add>, %261, %cst_81 [1] : vector<8x8xf32> to vector<8xf32>
    %263 = vector.shape_cast %262 : vector<8xf32> to vector<8x1xf32>
    %264 = vector.broadcast %263 : vector<8x1xf32> to vector<8x8xf32>
    %265 = arith.mulf %264, %173 : vector<8x8xf32>
    %c0_82 = arith.constant 0 : index
    %c0_83 = arith.constant 0 : index
    %c48 = arith.constant 48 : index
    %266 = vector.load %arg4[%c0_82, %c0_83, %c48] : memref<1x8x64xf32, #tpu.memory_space<vmem>>, vector<1x8x8xf32>
    %267 = vector.shape_cast %266 : vector<1x8x8xf32> to vector<8x8xf32>
    %268 = vector.shape_cast %265 : vector<8x8xf32> to vector<1x8x8xf32>
    tpu.vector_store %arg4[%c0_82, %c0_83, %c48], %268 {strides = array<i32>} : memref<1x8x64xf32, #tpu.memory_space<vmem>>, vector<1x8x8xf32>,
    %c7_i32_84 = arith.constant 7 : i32
    %269 = vector.broadcast %c7_i32_84 : i32 to vector<8x8xi32>
    %270 = arith.cmpi eq, %10, %269 : vector<8x8xi32>
    %cst_85 = arith.constant 0.000000e+00 : f32
    %271 = vector.broadcast %cst_85 : f32 to vector<8x8xf32>
    %272 = arith.select %270, %98, %271 : vector<8x8xi1>, vector<8x8xf32>
    %cst_86 = arith.constant dense<0.000000e+00> : vector<8xf32>
    %273 = vector.multi_reduction <add>, %272, %cst_86 [1] : vector<8x8xf32> to vector<8xf32>
    %274 = vector.shape_cast %273 : vector<8xf32> to vector<8x1xf32>
    %275 = vector.broadcast %274 : vector<8x1xf32> to vector<8x8xf32>
    %276 = arith.mulf %275, %173 : vector<8x8xf32>
    %c0_87 = arith.constant 0 : index
    %c0_88 = arith.constant 0 : index
    %c56 = arith.constant 56 : index
    %277 = vector.load %arg4[%c0_87, %c0_88, %c56] : memref<1x8x64xf32, #tpu.memory_space<vmem>>, vector<1x8x8xf32>
    %278 = vector.shape_cast %277 : vector<1x8x8xf32> to vector<8x8xf32>
    %279 = vector.shape_cast %276 : vector<8x8xf32> to vector<1x8x8xf32>
    tpu.vector_store %arg4[%c0_87, %c0_88, %c56], %279 {strides = array<i32>} : memref<1x8x64xf32, #tpu.memory_space<vmem>>, vector<1x8x8xf32>,
    %c0_89 = arith.constant 0 : index
    %c0_90 = arith.constant 0 : index
    %c0_91 = arith.constant 0 : index
    %280 = vector.load %arg4[%c0_89, %c0_90, %c0_91] : memref<1x8x64xf32, #tpu.memory_space<vmem>>, vector<1x8x64xf32>
    %281 = vector.shape_cast %280 : vector<1x8x64xf32> to vector<8x64xf32>
    %282 = tpu.iota {dimensions = array<i32: 0>} : vector<64x8xi32>
    %283 = tpu.iota {dimensions = array<i32: 1>} : vector<64x8xi32>
    %c3_i32_92 = arith.constant 3 : i32
    %284 = vector.broadcast %c3_i32_92 : i32 to vector<64x8xi32>
    %285 = arith.shrsi %282, %284 : vector<64x8xi32>
    %c8_i32 = arith.constant 8 : i32
    %286 = vector.broadcast %c8_i32 : i32 to vector<64x8xi32>
    %287 = arith.muli %285, %286 : vector<64x8xi32>
    %288 = arith.subi %282, %287 : vector<64x8xi32>
    %289 = vector.broadcast %1 : f32 to vector<1x8xf32>
    %290 = arith.mulf %8, %289 : vector<1x8xf32>
    %291 = arith.cmpi sge, %283, %285 : vector<64x8xi32>
    %292 = arith.cmpi sle, %283, %288 : vector<64x8xi32>
    %293 = arith.andi %291, %292 : vector<64x8xi1>
    %cst_93 = arith.constant -1.000000e+09 : f32
    %294 = vector.shape_cast %290 : vector<1x8xf32> to vector<1x8xf32>
    %295 = vector.broadcast %294 : vector<1x8xf32> to vector<64x8xf32>
    %296 = vector.broadcast %cst_93 : f32 to vector<64x8xf32>
    %297 = arith.select %293, %295, %296 : vector<64x8xi1>, vector<64x8xf32>
    %cst_94 = arith.constant dense<0xFF800000> : vector<64xf32>
    %298 = vector.multi_reduction <maximumf>, %297, %cst_94 [1] : vector<64x8xf32> to vector<64xf32>
    %299 = vector.shape_cast %298 : vector<64xf32> to vector<64x1xf32>
    %300 = vector.broadcast %299 : vector<64x1xf32> to vector<64x8xf32>
    %301 = arith.subf %297, %300 : vector<64x8xf32>
    %302 = math.exp %301 : vector<64x8xf32>
    %cst_95 = arith.constant dense<0.000000e+00> : vector<64xf32>
    %303 = vector.multi_reduction <add>, %302, %cst_95 [1] : vector<64x8xf32> to vector<64xf32>
    %304 = vector.shape_cast %303 : vector<64xf32> to vector<64x1xf32>
    %305 = vector.broadcast %304 : vector<64x1xf32> to vector<64x8xf32>
    %306 = arith.divf %302, %305 : vector<64x8xf32>
    %c0_96 = arith.constant 0 : index
    %c0_97 = arith.constant 0 : index
    %c0_98 = arith.constant 0 : index
    %307 = vector.load %arg6[%c0_96, %c0_97, %c0_98] : memref<1x64x8xf32, #tpu.memory_space<vmem>>, vector<1x64x8xf32>
    %308 = vector.shape_cast %307 : vector<1x64x8xf32> to vector<64x8xf32>
    %309 = vector.shape_cast %306 : vector<64x8xf32> to vector<1x64x8xf32>
    tpu.vector_store %arg6[%c0_96, %c0_97, %c0_98], %309 {strides = array<i32>} : memref<1x64x8xf32, #tpu.memory_space<vmem>>, vector<1x64x8xf32>,
    %cst_99 = arith.constant dense<0.000000e+00> : vector<8x8xf32>
    %310 = tpu.matmul %281, %306, %cst_99 {dimension_numbers = #tpu.dot_dimension_numbers<[1], [0], [0], [1], [0, 0, 1, 1], [], []>} : vector<8x64xf32>, vector<64x8xf32>, vector<8x8xf32> -> vector<8x8xf32>
    %cst_100 = arith.constant 0.000000e+00 : f32
    %311 = vector.broadcast %cst_100 : f32 to vector<8x8xf32>
    %312 = arith.select %11, %311, %310 : vector<8x8xi1>, vector<8x8xf32>
    %c0_101 = arith.constant 0 : index
    %c0_102 = arith.constant 0 : index
    %c0_103 = arith.constant 0 : index
    %313 = vector.load %arg7[%c0_101, %c0_102, %c0_103] : memref<1x8x8xf32, #tpu.memory_space<vmem>>, vector<1x8x8xf32>
    %314 = vector.shape_cast %313 : vector<1x8x8xf32> to vector<8x8xf32>
    %315 = vector.shape_cast %312 : vector<8x8xf32> to vector<1x8x8xf32>
    tpu.vector_store %arg7[%c0_101, %c0_102, %c0_103], %315 {strides = array<i32>} : memref<1x8x8xf32, #tpu.memory_space<vmem>>, vector<1x8x8xf32>,
    %cst_104 = arith.constant dense<0.000000e+00> : vector<8x8xf32>
    %316 = tpu.matmul %312, %312, %cst_104 {dimension_numbers = #tpu.dot_dimension_numbers<[1], [1], [0], [0], [0, 0, 1, 0], [], []>} : vector<8x8xf32>, vector<8x8xf32>, vector<8x8xf32> -> vector<8x8xf32>
    %cst_105 = arith.constant 0.000000e+00 : f32
    %317 = vector.broadcast %cst_105 : f32 to vector<8x8xf32>
    %318 = arith.select %11, %317, %316 : vector<8x8xi1>, vector<8x8xf32>
    %c0_106 = arith.constant 0 : index
    %c0_107 = arith.constant 0 : index
    %c0_108 = arith.constant 0 : index
    %319 = vector.load %arg8[%c0_106, %c0_107, %c0_108] : memref<1x8x8xf32, #tpu.memory_space<vmem>>, vector<1x8x8xf32>
    %320 = vector.shape_cast %319 : vector<1x8x8xf32> to vector<8x8xf32>
    %321 = vector.shape_cast %318 : vector<8x8xf32> to vector<1x8x8xf32>
    tpu.vector_store %arg8[%c0_106, %c0_107, %c0_108], %321 {strides = array<i32>} : memref<1x8x8xf32, #tpu.memory_space<vmem>>, vector<1x8x8xf32>,
    return
  }
  func.func @transform_0(%arg0: i32) -> i32 {
    %c0_i32 = arith.constant 0 : i32
    %c0_i32_0 = arith.constant 0 : i32
    return %c0_i32 : i32
  }
  func.func @transform_1(%arg0: i32) -> (i32, i32, i32) {
    %c0_i32 = arith.constant 0 : i32
    %c0_i32_0 = arith.constant 0 : i32
    %c0_i32_1 = arith.constant 0 : i32
    return %arg0, %c0_i32, %c0_i32_0 : i32, i32, i32
  }
  func.func @transform_2(%arg0: i32) -> (i32, i32, i32) {
    %c0_i32 = arith.constant 0 : i32
    %c0_i32_0 = arith.constant 0 : i32
    %c0_i32_1 = arith.constant 0 : i32
    return %arg0, %c0_i32, %c0_i32_0 : i32, i32, i32
  }
  func.func @transform_3(%arg0: i32) -> (i32, i32, i32) {
    %c0_i32 = arith.constant 0 : i32
    %c0_i32_0 = arith.constant 0 : i32
    %c0_i32_1 = arith.constant 0 : i32
    return %arg0, %c0_i32, %c0_i32_0 : i32, i32, i32
  }
  func.func @transform_4(%arg0: i32) -> (i32, i32, i32) {
    %c0_i32 = arith.constant 0 : i32
    %c0_i32_0 = arith.constant 0 : i32
    %c0_i32_1 = arith.constant 0 : i32
    return %arg0, %c0_i32, %c0_i32_0 : i32, i32, i32
  }
  func.func @transform_5(%arg0: i32) -> (i32, i32, i32) {
    %c0_i32 = arith.constant 0 : i32
    %c0_i32_0 = arith.constant 0 : i32
    %c0_i32_1 = arith.constant 0 : i32
    return %arg0, %c0_i32, %c0_i32_0 : i32, i32, i32
  }
  func.func @transform_6(%arg0: i32) -> (i32, i32, i32) {
    %c0_i32 = arith.constant 0 : i32
    %c0_i32_0 = arith.constant 0 : i32
    %c0_i32_1 = arith.constant 0 : i32
    return %arg0, %c0_i32, %c0_i32_0 : i32, i32, i32
  }
  func.func @transform_7(%arg0: i32) -> (i32, i32, i32) {
    %c0_i32 = arith.constant 0 : i32
    %c0_i32_0 = arith.constant 0 : i32
    %c0_i32_1 = arith.constant 0 : i32
    return %arg0, %c0_i32, %c0_i32_0 : i32, i32, i32
  }
}

</mosaic_0001>

<bundles_post_ra>
// kernel: squeeze.12
= control target key start
LH: loop header
LB: loop body
LE: loop exit
PB: predicated region body
PF: predicated region fallthrough
CT: control target
= control target key end

     0   :  { %s85_s0 = inlined_call_operand.vmem [shape: f32[16], index: 0, kind: input, shape index: {}]   ;;  %s86_s1 = inlined_call_operand.hbm [shape: f32[2,1,8], index: 1, kind: output, shape index: {}]  }
   0x1   :  { %v5_v0 = vld [vmem:[%s85_s0] sm:$0x1] }
   0x2   :  { %2 = vsyncpa [#allocation1], 0  ;;  %6 = vst [vmem:[#allocation3] sm:$0x1] %v5_v0  ;;  %vm8_vm0 = vcmask 64512   ;;  %s58_s0 = smov 120  }
   0x3   :  { %s59_s8 = smov [#allocation0]  }
   0x4   :  { %s26_s9 = sshll.u32 %s59_s8, 4  ;;  %s27_s9 = int_to_ptr.vmem [resolvable:$true] %s26_s9 }
   0x5   :  { %s34_s10 = scalar_lea.vmem %s27_s9, 32  ;;  %p39_p1 = scmp.lt.s32.totalorder %s27_s9, %s27_s9 }
   0x6   :  { %p35_p0 = scmp.ne.s32.totalorder %s27_s9, %s34_s10  ;;  %p40_p2 = scmp.lt.s32.totalorder %s34_s10, %s34_s10 }
   0x8   :  { %p41_p3 = por %p40_p2, %p39_p1 }
   0x9   :  { %v10_v1 = vld [vmem:[#allocation3] sm:$0x1]  }
   0xa   :  { %v7_v2 = vld [vmem:[#allocation3] sm:$0x1]   ;;  %11 = vrot.lane.b32.xlu0 %v10_v1, %s58_s0  ;;  %p42_p4 = pnand %p41_p3, %p35_p0 }
   0xb   :  { %9 = vst.msk [vmem:[#allocation2] sm:$0x1] %vm8_vm0, %v7_v2  }
  0x7c   :  { %v12_v3 = vpop.permute.xlu0 %11  }
  0x7d   :  { %15 = vst.msk [vmem:[#allocation2 + $0x1] sm:$0x1] %vm8_vm0, %v12_v3  }
  0x84   :  { %v19_v4 = vld [vmem:[#allocation2] sm:$0x3] }
  0x85   :  { %21 = vst [vmem:[#allocation0] sm:$0x3] %v19_v4 }
  0x86   :  { %45 = shalt.err (!%p42_p4)
}
  0x87   :  { %s46_s13 = scalar_lea.hbm %s86_s1, 32 }
  0x88   :  { %p47_p5 = scmp.ne.s32.totalorder %s86_s1, %s46_s13  ;;  %p50_p6 = scmp.lt.u32.totalorder %s46_s13, %s86_s1 }
  0x8a   :  { %p52_p7 = pnand %p50_p6, %p47_p5 }
  0x8c   :  { %55 = shalt.err (!%p52_p7)
}
  0x8d   :  { %29 = dma.vmem_to_hbm [thread:$0]  %s27_s9, 32, %s86_s1, [#allocation1]  }
  0x8e   :  { %56 = dma.done.wait [#allocation1], 32  }
  0x8f   :  { %57 = vsyncadd [#allocation1], 4294967264 }
  0x90   :  { %31 = vsyncpa [#allocation1], 1 }

// kernel: hsi_forward.3
= control target key start
LH: loop header
LB: loop body
LE: loop exit
PB: predicated region body
PF: predicated region fallthrough
CT: control target
= control target key end

     0   :  { %13 = vsyncpa [#allocation5], 0  ;;  %s3426_s0 = inlined_call_operand.hbm [shape: f32[3], index: 0, kind: input, shape index: {}]   ;;  %s3427_s1 = inlined_call_operand.hbm [shape: f32[2,1,8], index: 1, kind: input, shape index: {}]   ;;  %s3428_s2 = inlined_call_operand.hbm [shape: f32[2,1,8], index: 2, kind: input, shape index: {}]   ;;  %s3429_s3 = inlined_call_operand.hbm [shape: f32[2,8,64], index: 3, kind: output, shape index: {0}]   ;;  %s3430_s4 = inlined_call_operand.hbm [shape: f32[2,8,8], index: 4, kind: output, shape index: {1}]   ;;  %s3431_s5 = inlined_call_operand.hbm [shape: f32[2,64,8], index: 5, kind: output, shape index: {2}]   ;;  %s3432_s6 = inlined_call_operand.hbm [shape: f32[2,8,8], index: 6, kind: output, shape index: {3}]   ;;  %s3433_s7 = inlined_call_operand.hbm [shape: f32[2,8,8], index: 7, kind: output, shape index: {4}]  }
   0x1   :  { %14 = vsyncpa [#allocation3], 0 }
   0x2   :  { %16 = vsyncpa [#allocation3 + $0x1], 0 }
   0x3   :  { %17 = vsyncpa [#allocation8], 0 }
   0x4   :  { %19 = vsyncpa [#allocation8 + $0x1], 0 }
   0x5   :  { %20 = vsyncpa [#allocation4], 0 }
   0x6   :  { %22 = vsyncpa [#allocation4 + $0x1], 0 }
   0x7   :  { %23 = vsyncpa [#allocation11], 0 }
   0x8   :  { %25 = vsyncpa [#allocation11 + $0x1], 0 }
   0x9   :  { %26 = vsyncpa [#allocation14], 0 }
   0xa   :  { %28 = vsyncpa [#allocation14 + $0x1], 0  ;;  %s2651_s24 = smov 0   ;;  %s2653_s25 = smov 0  }
   0xb   :  { %s2655_s26 = smov 0   ;;  %s2657_s27 = smov 0  }
   0xc LB: > { %3446 = sst [smem:[#allocation22_spill]] %s2585_s26  ;;  %s2672_s28 = sadd.s32 4294967295, %s2589_s27   ;;  %s2589_s27 = sphi %s2657_s27, %s3483_s27   ;;  %s2585_s26 = sphi %s2655_s26, %s3485_s26   ;;  %s2581_s25 = sphi %s2653_s25, %s3487_s25   ;;  %s2577_s24 = sphi %s2651_s24, %s3486_s24  }
   0xd   : > { %s3435_s29 = sadd.s32 4294967294, %s2589_s27   ;;  %s2676_s30 = sadd.s32 1, %s2589_s27  }
   0xe   : > { %3447 = sst [smem:[#allocation23_spill]] %s2676_s30  ;;  %s62_s8 = sadd.s32 1, %s2585_s26 }
   0xf   : > { %s59_s9 = ssub.s32 %s2589_s27, %s2676_s30  ;;  %p69_p0 = scmp.ne.s32.totalorder %s2585_s26, %s2581_s25 }
  0x10   : > { %p60_p1 = scmp.eq.s32.totalorder %s59_s9, 0  ;;  %p75_p2 = scmp.ne.s32.totalorder %s2581_s25, %s2577_s24 }
  0x11   : > { %p3434_p3 = scmp.eq.s32.totalorder %s2672_s28, 0  ;;  %p125_p4 = scmp.eq.s32.totalorder %s2672_s28, 1 }
  0x12   : > { %s2688_s10 = scalar_select %p60_p1, %s2585_s26, %s62_s8  }
  0x13   : > { %p2692_p5 = por %p3434_p3, %p75_p2  ;;  %p2699_p6 = por %p125_p4, %p69_p0 }
  0x14   : > { %3448 = sst [smem:[#allocation24_spill]] %s2688_s10  ;;  %p131_p7 = scmp.eq.s32.totalorder %s3435_s29, 1 }
  0x15   : > { %s3449_s11 = scalar_select %p2692_p5, 1, 0 }
  0x16   : > { %s3450_s12 = scalar_select %p2699_p6, 1, 0 }
  0x17   : > { %p2001_p8 = scmp.ge.s32.totalorder %s2589_s27, 1  ;;  %p242_p9 = scmp.lt.s32.totalorder %s2589_s27, 3 }
  0x18   : > { %p2707_p10 = por %p131_p7, %p75_p2  ;;  %p70_p13 = scmp.eq.s32.totalorder %s2589_s27, 0 }
  0x19   : > { %p2711_p11 = pnand %p2001_p8, %p242_p9  ;;  %p2238_p1 = scmp.lt.s32.totalorder %s2589_s27, 2 }
  0x1a   : > { %s3451_s13 = scalar_select %p2707_p10, 1, 0 }
  0x1b   : > { %s3453_s14 = scalar_select %p2711_p11, 1, 0 }
  0x1c   : > { %3452 = sst [smem:[#allocation25_spill]] %s3451_s13  ;;  %p2210_p4 = pneg %p2711_p11 }
  0x1d   : > { %s2721_s15 = sand.u32 1, %s2585_s26   ;;  %p2726_p3 = por %p70_p13, %p69_p0 }
  0x1e   : > { %p3455_p2 = scmp.eq.s32.totalorder %s2672_s28, 0  ;;  %s2004_s18 = sshll.u32 %s2589_s27, 4 }
  0x1f   : > { %s267_s19 = scalar_lea.vmem [#allocation6], %s2721_s15  ;;  %s2741_s23 = scalar_lea.hbm %s3427_s1, %s2004_s18 }
  0x20   : > { %p2732_p7 = pnand %p2210_p4, %p3455_p2  ;;  %s274_s20 = sshll.u32 %s267_s19, 4  ;;  %s2759_s20 = int_to_ptr.vmem [resolvable:$true] %s274_s20 }
  0x21   : > { %s2322_s29 = scalar_lea.hbm %s3426_s0, 16 }
  0x22   : > { %p2323_p0 = scmp.ne.s32.totalorder %s3426_s0, %s2322_s29  ;;  %p2324_p8 = pneg %p2732_p7 }
  0x23   : > { %p2329_p4 = scmp.lt.u32.totalorder %s2322_s29, %s3426_s0 }
  0x24   : > { %p2325_p9 = pnand %p2324_p8, %p2323_p0 }
  0x26   : > { %p2326_p13 = pneg %p2325_p9 }
  0x28   : > { %p2331_p2 = pnand %p2329_p4, %p2326_p13 }
  0x2a   : > { %2334 = shalt.err (!%p2331_p2)
}
  0x2b   : > { %s2591_s19 = smov [#allocation2]   ;;  %p2765_p0 = pnand %p2238_p1, %p2726_p3 }
  0x2c   : > { %2213 = dma.hbm_to_smem (!%p2732_p7), %s3426_s0, 16, %s2591_s19, [#allocation5]  }
  0x2d   : > { %s2772_s10 = scalar_lea.hbm %s3428_s2, %s2004_s18  ;;  %s265_s13 = scalar_lea.sflag [#allocation3], %s2721_s15 }
  0x2e   : > { %s2335_s17 = scalar_lea.hbm %s2741_s23, 16  ;;  %p2337_p7 = pneg %p2765_p0 }
  0x2f   : > { %p2336_p8 = scmp.ne.s32.totalorder %s2741_s23, %s2335_s17  ;;  %s2340_s9 = scalar_lea.hbm %s3427_s1, 32 }
  0x30   : > { %p2341_p3 = scmp.lt.u32.totalorder %s2741_s23, %s3427_s1  ;;  %p2342_p1 = scmp.lt.u32.totalorder %s2340_s9, %s2335_s17 }
  0x31   : > { %p2338_p9 = pnand %p2337_p7, %p2336_p8  ;;  %p2344_p2 = scmp.lt.u32.totalorder %s2335_s17, %s2741_s23 }
  0x32   : > { %p2343_p4 = por %p2342_p1, %p2341_p3 }
  0x33   : > { %p2339_p13 = pneg %p2338_p9 }
  0x34   : > { %p2345_p12 = por %p2344_p2, %p2343_p4 }
  0x36   : > { %p2346_p10 = pnand %p2345_p12, %p2339_p13 }
  0x38   : > { %2349 = shalt.err (!%p2346_p10)
}
  0x39   : > { %s2350_s18 = scalar_lea.vmem %s2759_s20, 16  ;;  %s2592_s22 = smov [#allocation6]  }
  0x3a   : > { %p2351_p8 = scmp.ne.s32.totalorder %s2759_s20, %s2350_s18  ;;  %s2355_s29 = sshll.u32 %s2592_s22, 4  ;;  %s2356_s29 = int_to_ptr.vmem [resolvable:$false] %s2355_s29 }
  0x3b   : > { %s2357_s30 = scalar_lea.vmem %s2356_s29, 32  ;;  %p2358_p5 = scmp.lt.s32.totalorder %s2759_s20, %s2356_s29 }
  0x3c   : > { %p2353_p9 = pnand %p2351_p8, %p2337_p7  ;;  %p2359_p3 = scmp.lt.s32.totalorder %s2357_s30, %s2350_s18 }
  0x3e   : > { %p2354_p6 = pneg %p2353_p9  ;;  %p2360_p1 = por %p2359_p3, %p2358_p5 }
  0x40   : > { %p2361_p4 = pnand %p2360_p1, %p2354_p6 }
  0x42   : > { %2364 = shalt.err (!%p2361_p4)
}
  0x43   : > { %2217 = dma.hbm_to_vmem [thread:$0]  (!%p2765_p0), %s2741_s23, 16, %s2759_s20, %s265_s13  }
  0x44   : > { %s284_s17 = scalar_lea.vmem [#allocation7], %s2721_s15  ;;  %s282_s8 = scalar_lea.sflag [#allocation8], %s2721_s15 }
  0x45   : > { %s291_s16 = sshll.u32 %s284_s17, 4  ;;  %s2365_s9 = scalar_lea.hbm %s2772_s10, 16  ;;  %s292_s16 = int_to_ptr.vmem [resolvable:$true] %s291_s16 }
  0x46   : > { %p2366_p5 = scmp.ne.s32.totalorder %s2772_s10, %s2365_s9  ;;  %s2370_s18 = scalar_lea.hbm %s3428_s2, 32 }
  0x47   : > { %p2371_p12 = scmp.lt.u32.totalorder %s2772_s10, %s3428_s2  ;;  %p2372_p13 = scmp.lt.u32.totalorder %s2370_s18, %s2365_s9 }
  0x48   : > { %p2368_p6 = pnand %p2366_p5, %p2337_p7  ;;  %p2374_p8 = scmp.lt.u32.totalorder %s2365_s9, %s2772_s10 }
  0x49   : > { %p2373_p2 = por %p2372_p13, %p2371_p12 }
  0x4a   : > { %p2369_p10 = pneg %p2368_p6 }
  0x4b   : > { %p2375_p9 = por %p2374_p8, %p2373_p2 }
  0x4d   : > { %p2376_p3 = pnand %p2375_p9, %p2369_p10 }
  0x4f   : > { %2379 = shalt.err (!%p2376_p3)
}
  0x50   : > { %s2380_s15 = scalar_lea.vmem %s292_s16, 16  ;;  %s2593_s20 = smov [#allocation7]  }
  0x51   : > { %p2381_p1 = scmp.ne.s32.totalorder %s292_s16, %s2380_s15  ;;  %s2385_s23 = sshll.u32 %s2593_s20, 4  ;;  %s2386_s23 = int_to_ptr.vmem [resolvable:$false] %s2385_s23 }
  0x52   : > { %s2387_s13 = scalar_lea.vmem %s2386_s23, 32  ;;  %p2388_p6 = scmp.lt.s32.totalorder %s292_s16, %s2386_s23 }
  0x53   : > { %p2383_p4 = pnand %p2381_p1, %p2337_p7  ;;  %p2389_p11 = scmp.lt.s32.totalorder %s2387_s13, %s2380_s15 }
  0x55   : > { %p2384_p5 = pneg %p2383_p4  ;;  %p2390_p12 = por %p2389_p11, %p2388_p6 }
  0x57   : > { %p2391_p13 = pnand %p2390_p12, %p2384_p5 }
  0x59   : > { %2394 = shalt.err (!%p2391_p13)
}
  0x5a   : > { %2220 = dma.hbm_to_vmem [thread:$0]  (!%p2765_p0), %s2772_s10, 16, %s292_s16, %s282_s8  }
  0x5b   : > { %p3458_p10 = scmp.ne.s32.totalorder %s3453_s14, 0 }
  0x5c   : > { %p3459_p2 = scmp.eq.s32.totalorder (!%p3458_p10), %s2672_s28, 0 }
  0x5d   : > { %300 = sbr.rel (%p3458_p10) target bundleno = 2392 (0x958), region = 32 }
  0x64   : > { %2552 = dma.done.wait (%p3459_p2), [#allocation5], 16   ;;  %p3460_p7 = pmov %p3459_p2 }
  0x65   : > { %s2828_s30 = sand.u32 1, %s2581_s25   ;;  %p3461_p11 = scmp.ne.s32.totalorder %s3449_s11, 0 }
  0x66   : > { %2554 = vsyncadd (%p3460_p7), [#allocation5], 4294967280  ;;  %s307_s17 = scalar_lea.sflag [#allocation3], %s2828_s30  ;;  %s309_s9 = scalar_lea.vmem [#allocation6], %s2828_s30 }
  0x67   : > { %2556 = dma.done.wait (%p3461_p11), %s307_s17, 16  }
  0x68   : > { %2558 = vsyncadd (%p3461_p11), %s307_s17, 4294967280  ;;  %s315_s14 = scalar_lea.sflag [#allocation8], %s2828_s30  ;;  %s317_s26 = scalar_lea.vmem [#allocation7], %s2828_s30 }
  0x69   : > { %2560 = dma.done.wait (%p3461_p11), %s315_s14, 16  }
  0x6a   : > { %2562 = vsyncadd (%p3461_p11), %s315_s14, 4294967280 }
  0x6b   : > { %322 = sfence }
  0x6c   : > { %v379_v0 = vlaneseq  ;;  %s2013_s10 = sld [smem:[#allocation2 + $0x1]]  ;;  %v378_v3 = vld [vmem:[%s317_s26] sm:$0x1]  ;;  %vm391_vm1 = vcmask 64512   ;;  %v2594_v12 = vmov 0.0   ;;  %vm2595_vm2 = vmmov 0  }
  0x6d   : > { %2101 = vmatprep.subr.mxu0 %v2594_v12  ;;  %2103 = vmatprep.mubr.msk.f32.mxu0 %vm2595_vm2, %v2594_v12  ;;  %v2596_v13 = vmov 1.0   ;;  %s2014_s11 = sld [smem:[#allocation2 + $0x2]]  ;;  %v375_v14 = vld [vmem:[%s309_s9] sm:$0x1]  ;;  %s372_s16 = sld [smem:[#allocation2]] }
  0x6e   : > { %v2842_v1 = vshrl.u32 %v379_v0, 7  ;;  %v2844_v2 = vand.u32 127, %v379_v0  ;;  %2116 = vmatprep.subr.mxu1 %v2594_v12  ;;  %2118 = vmatprep.mubr.msk.f32.mxu1 %vm2595_vm2, %v2594_v12  ;;  %s2010_s8 = sshll.u32 %s2828_s30, 6  ;;  %s3192_s21 = sshll.u32 %s2828_s30, 3 }
  0x6f   : > { %s3153_s19 = scalar_lea.vmem [#allocation12], %s2010_s8  ;;  %s2598_s18 = smov 16  }
  0x70   : > { %v387_v4 = vsub.s32 0, %v2842_v1  ;;  %vm3443_vm0 = vcmp.eq.s32.totalorder %v2842_v1, %v2844_v2  ;;  %v2856_v11 = vadd.s32 1, %v2844_v2  ;;  %vm414_vm4 = vcmp.gt.s32.totalorder %v2842_v1, %v2844_v2  ;;  %s3444_s22 = smov 8   ;;  %s3203_s29 = scalar_lea.vmem [#allocation9], %s3192_s21 }
  0x71   : > { %v2019_v31 = vadd.s32 2, %v2844_v2  ;;  %vm493_vm7 = vcmp.ge.s32.totalorder %v2844_v2, 7  ;;  %v2023_v36 = vadd.s32 4, %v2844_v2  ;;  %v2893_v37 = vadd.s32 4294967295, %v2844_v2  ;;  %s2600_s15 = smov 48   ;;  %s2601_s20 = smov 24  }
  0x72   : > { %v388_v5 = vrot.slane %v378_v3, %v387_v4  ;;  %v1403_v6 = vstv %s2013_s10  ;;  %vm417_vm3 = vcmp.eq.s32.totalorder %v2842_v1, %v2856_v11  ;;  %vm573_vm10 = vcmp.ge.s32.totalorder %v2844_v2, 6  ;;  %s2602_s23 = smov 32   ;;  %s2603_s13 = smov 40  }
  0x73   : > { %v1404_v7 = vmul.f32 %v1403_v6, %v378_v3  ;;  %2102 = vmatpush3.msk.msra.mxu0 %vm417_vm3, %v2596_v13  ;;  %v376_v15 = vstv %s2014_s11  ;;  %v402_v19 = vstv %s372_s16  ;;  %vm497_vm6 = vcmp.eq.s32.totalorder %v2842_v1, %v2019_v31  ;;  %s2604_s17 = smov 56   ;;  %s350_s9 = scalar_lea.vmem [#allocation10], %s3192_s21 }
  0x74   : > { %v390_v8 = vsel %vm3443_vm0, %v388_v5, 0.0  ;;  %2106 = vmatprep.subr.mxu0 %v2594_v12  ;;  %v377_v16 = vsub.f32 %v375_v14, %v376_v15  ;;  %vm577_vm8 = vcmp.eq.s32.totalorder %v2842_v1, %v2023_v36  ;;  %vm657_vm9 = vcmp.eq.s32.totalorder %v2842_v1, %v2893_v37  ;;  %s364_s14 = scalar_lea.vmem [#allocation13], %s3192_s21  ;;  %s3445_s26 = sand.u32 1, %s2672_s28  }
  0x75   : > { %v392_v9 = vsel %vm391_vm1, %v390_v8, 0.0  ;;  %v2853_v10 = vrot.slane %v1404_v7, %v387_v4  ;;  %2117 = vmatpush3.msk.msra.mxu1 %vm657_vm9, %v2596_v13  ;;  %vm738_vm11 = vcmp.le.s32.totalorder %v2842_v1, %v2844_v2  ;;  %v1372_v43 = vadd.s32 8, %v2842_v1  ;;  %s3236_s10 = sshll.u32 %s2672_s28, 7  ;;  %p3475_p8 = scmp.ne.s32.totalorder %s3450_s12, 0 }
  0x76   : > { %393 = vadd.xlane.f32.xlu0 %v392_v9  ;;  %v399_v17 = vrot.slane %v377_v16, %v387_v4  ;;  %2126 = vmatprep.subr.mxu1 %v2594_v12  ;;  %v1379_v44 = vshra.s32 %v2842_v1, 3  ;;  %v1373_v45 = vadd.s32 16, %v2842_v1  ;;  %v1375_v46 = vadd.s32 32, %v2842_v1  ;;  %s3242_s8 = scalar_lea.hbm %s3430_s4, %s3236_s10  ;;  %s2605_s11 = smov [#allocation10]  }
  0x77   : > { %v1377_v47 = vadd.s32 48, %v2842_v1  ;;  %v1374_v48 = vadd.s32 24, %v2842_v1  ;;  %v1376_v49 = vadd.s32 40, %v2842_v1  ;;  %v1380_v50 = vshra.s32 %v1372_v43, 3 }
  0x78   : > { %v1387_v51 = vmul.u32 8, %v1379_v44  ;;  %v1381_v52 = vshra.s32 %v1373_v45, 3  ;;  %vm2930_vm12 = vcmp.ge.s32.totalorder %v2844_v2, %v1379_v44  ;;  %v1383_v54 = vshra.s32 %v1375_v46, 3 }
  0x79   : > { %v1385_v55 = vshra.s32 %v1377_v47, 3  ;;  %v1382_v56 = vshra.s32 %v1374_v48, 3  ;;  %v1388_v57 = vmul.u32 8, %v1380_v50  ;;  %v1384_v60 = vshra.s32 %v1376_v49, 3 }
  0x7a   : > { %v1395_v58 = vsub.s32 %v2842_v1, %v1387_v51  ;;  %v1389_v59 = vmul.u32 8, %v1381_v52  ;;  %vm2936_vm13 = vcmp.ge.s32.totalorder %v2844_v2, %v1380_v50  ;;  %v1391_v62 = vmul.u32 8, %v1383_v54 }
  0x7b   : > { %v1393_v63 = vmul.u32 8, %v1385_v55  ;;  %v1396_v0 = vsub.s32 %v1372_v43, %v1388_v57  ;;  %vm2942_vm15 = vcmp.ge.s32.totalorder %v2844_v2, %v1381_v52  ;;  %v1390_v8 = vmul.u32 8, %v1382_v56 }
  0x7c   : > { %vm1413_vm14 = vcmp.le.s32.totalorder %v2844_v2, %v1395_v58  ;;  %v1397_v3 = vsub.s32 %v1373_v45, %v1389_v59  ;;  %v1399_v5 = vsub.s32 %v1375_v46, %v1391_v62  ;;  %v1392_v14 = vmul.u32 8, %v1384_v60 }
  0x7d   : > { %v1401_v7 = vsub.s32 %v1377_v47, %v1393_v63  ;;  %v2035_v45 = vadd.s32 4294967294, %v2844_v2 }
 0x103   : > { %v394_v18 = vpop.xlane.xlu0 %393 }
 0x104   : > { %v401_v20 = vsub.f32 %v399_v17, %v394_v18  ;;  %v1398_v17 = vsub.s32 %v1374_v48, %v1390_v8 }
 0x106   : > { %v403_v21 = vmul.f32 %v402_v19, %v401_v20  ;;  %v1400_v19 = vsub.s32 %v1376_v49, %v1392_v14 }
 0x108   : > { %v404_v22 = vand.u32 2147483647, %v403_v21  ;;  %vm408_vm5 = vcmp.ge.f32.partialorder %v403_v21, 0.0 }
 0x10a   : > { %v405_v23 = vsub.f32 0.0, %v404_v22 }
 0x10c   : > { %v406_v24 = vmul.f32 1.442695, %v405_v23 }
 0x10e   : > { %2286 = vpow2.f32 %v406_v24 }
 0x118   : > { %v2287_v25 = vpop.eup %2286 }
 0x119   : > { %v409_v26 = vadd.f32 1.0, %v2287_v25 }
 0x11b   : > { %2288 = vrcp.f32 %v409_v26 }
 0x125   : > { %v2289_v27 = vpop.eup %2288 }
 0x126   : > { %v411_v28 = vmul.f32 %v2289_v27, %v2287_v25 }
 0x128   : > { %v413_v29 = vsel %vm408_vm5, %v411_v28, %v2289_v27  ;;  %vm2949_vm5 = vcmp.ge.s32.totalorder %v2844_v2, %v1383_v54 }
 0x129   : > { %v415_v30 = vsel %vm414_vm4, %v413_v29, 1.0  ;;  %v739_v42 = vsel %vm738_vm11, %v413_v29, 1.0  ;;  %vm1421_vm4 = vmand %vm2930_vm12, %vm1413_vm14  ;;  %vm2963_vm12 = vcmp.le.s32.totalorder %v2844_v2, %v1399_v5 }
 0x12a   : > { %2104 = vmatmul.mubr.msk.f32.vlgmr.msra.gmra.mrb[0].mxu0 %vm391_vm1, %v415_v30  ;;  %v2955_v9 = vsel %vm1421_vm4, %v2853_v10, -1e+09  ;;  %vm1408_vm4 = vcmp.ge.s32.totalorder %v2844_v2, %v1382_v56 }
 0x12b   : > { %2108 = vmatprep.mubr.msk.f32.mxu0 %vm2595_vm2, %v2594_v12  ;;  %2107 = vmatpush3.msk.msra.mxu0 %vm497_vm6, %v2596_v13  ;;  %vm1414_vm6 = vcmp.le.s32.totalorder %v2844_v2, %v1396_v0  ;;  %v1443_v15 = vsel %vm391_vm1, %v2955_v9, -inf }
 0x12c   : > { %2111 = vmatprep.subr.mxu0 %v2594_v12  ;;  %1444 = vmax.xlane.f32.xlu0 %v1443_v15 }
 0x1b9   : > { %v1445_v47 = vpop.xlane.xlu0 %1444 }
 0x1ba   : > { %v1467_v49 = vsub.f32 %v2955_v9, %v1445_v47 }
 0x1bc   : > { %v1475_v51 = vmul.f32 1.442695, %v1467_v49 }
 0x1be   : > { %2290 = vpow2.f32 %v1475_v51 }
 0x1c8   : > { %v3085_v11 = vpop.eup %2290 }
 0x1fd   : > { %v489_v32 = vpop.f32.mrb[0].mxu0 }
 0x1fe   : > { %v494_v33 = vsel %vm493_vm7, 1e+09, %v489_v32  ;;  %v2105_v34 = vpop.f32.mrb[1].mxu0 }
 0x1ff   : > { %v495_v35 = vmin.f32 %v415_v30, %v494_v33 }
 0x201   : > { %2109 = vmatmul.mubr.msk.f32.vlgmr.msra.gmra.mrb[2].mxu0 %vm391_vm1, %v495_v35 }
 0x202   : > { %2113 = vmatprep.mubr.msk.f32.mxu0 %vm2595_vm2, %v2594_v12  ;;  %2112 = vmatpush3.msk.msra.mxu0 %vm577_vm8, %v2596_v13  ;;  %vm1415_vm8 = vcmp.le.s32.totalorder %v2844_v2, %v1397_v3 }
 0x203   : > { %2121 = vmatprep.subr.mxu0 %v2594_v12  ;;  %vm1423_vm14 = vmand %vm2942_vm15, %vm1415_vm8  ;;  %vm2985_vm15 = vcmp.ge.s32.totalorder %v2844_v2, %v1385_v55  ;;  %vm1419_vm8 = vcmp.le.s32.totalorder %v2844_v2, %v1401_v7 }
 0x204   : > { %v2976_v21 = vsel %vm1423_vm14, %v2853_v10, -1e+09  ;;  %vm1418_vm14 = vcmp.le.s32.totalorder %v2844_v2, %v1400_v19 }
 0x205   : > { %v1449_v23 = vsel %vm391_vm1, %v2976_v21, -inf }
 0x2d4   : > { %v569_v38 = vpop.f32.mrb[2].mxu0 }
 0x2d5   : > { %v574_v39 = vsel %vm573_vm10, 1e+09, %v569_v38  ;;  %v2110_v40 = vpop.f32.mrb[3].mxu0  ;;  %vm1422_vm10 = vmand %vm2936_vm13, %vm1414_vm6  ;;  %vm1416_vm6 = vcmp.le.s32.totalorder %v2844_v2, %v1398_v17 }
 0x2d6   : > { %v2903_v41 = vmin.f32 %v495_v35, %v574_v39  ;;  %v2968_v18 = vsel %vm1422_vm10, %v2853_v10, -1e+09  ;;  %vm1425_vm13 = vmand %vm2949_vm5, %vm2963_vm12  ;;  %vm1410_vm10 = vcmp.ge.s32.totalorder %v2844_v2, %v1384_v60  ;;  %v1378_v40 = vadd.s32 56, %v2842_v1 }
 0x2d7   : > { %v1446_v20 = vsel %vm391_vm1, %v2968_v18, -inf  ;;  %vm1424_vm0 = vmand %vm1408_vm4, %vm1416_vm6  ;;  %v2994_v24 = vsel %vm1425_vm13, %v2853_v10, -1e+09  ;;  %vm733_vm4 = vcmp.lt.s32.totalorder %v2844_v2, 1 }
 0x2d8   : > { %2114 = vmatmul.mubr.msk.f32.vlgmr.msra.gmra.mrb[4].mxu0 %vm391_vm1, %v2903_v41  ;;  %1447 = vmax.xlane.f32.xlu1 %v1446_v20  ;;  %v2997_v25 = vsel %vm1424_vm0, %v2853_v10, -1e+09  ;;  %vm1426_vm5 = vmand %vm1410_vm10, %vm1418_vm14  ;;  %v1455_v28 = vsel %vm391_vm1, %v2994_v24, -inf  ;;  %vm653_vm0 = vcmp.ge.s32.totalorder %v2844_v2, 4  ;;  %vm890_vm10 = vcmp.eq.s32.totalorder %v2842_v1, %v2035_v45 }
 0x2d9   : > { %2122 = vmatpush3.msk.msra.mxu0 %vm657_vm9, %v2596_v13  ;;  %2123 = vmatprep.mubr.msk.f32.mxu0 %vm2595_vm2, %v2594_v12  ;;  %vm1427_vm12 = vmand %vm2985_vm15, %vm1419_vm8  ;;  %v1452_v26 = vsel %vm391_vm1, %v2997_v25, -inf  ;;  %v3004_v27 = vsel %vm1426_vm5, %v2853_v10, -1e+09  ;;  %vm736_vm15 = vcmp.ge.s32.totalorder %v2842_v1, %v2844_v2  ;;  %vm1299_vm8 = vcmp.eq.s32.totalorder %v2844_v2, 2 }
 0x2da   : > { %2131 = vmatprep.subr.mxu0 %v2594_v12  ;;  %1453 = vmax.xlane.f32.xlu0 %v1452_v26  ;;  %v1458_v29 = vsel %vm391_vm1, %v3004_v27, -inf  ;;  %v3011_v30 = vsel %vm1427_vm12, %v2853_v10, -1e+09  ;;  %vm1287_vm14 = vcmp.eq.s32.totalorder %v2844_v2, 1  ;;  %vm1323_vm5 = vcmp.eq.s32.totalorder %v2844_v2, 4 }
 0x2db   : > { %v1461_v31 = vsel %vm391_vm1, %v3011_v30, -inf  ;;  %vm1311_vm12 = vcmp.eq.s32.totalorder %v2844_v2, 3 }
 0x2dc   : > { %2124 = vmatmul.mubr.msk.f32.vlgmr.msra.gmra.mrb[6].mxu0 %vm391_vm1, %v739_v42  ;;  %1450 = vmax.xlane.f32.xlu1 %v1449_v23 }
 0x2dd   : > { %2133 = vmatprep.mubr.msk.f32.mxu0 %vm2595_vm2, %v2594_v12  ;;  %2132 = vmatpush3.msk.msra.mxu0 %vm890_vm10, %v2596_v13  ;;  %vm1046_vm10 = vcmp.lt.s32.totalorder %v2844_v2, 4 }
 0x2de   : > { %1459 = vmax.xlane.f32.xlu0 %v1458_v29  ;;  %2141 = vmatprep.subr.mxu0 %v2594_v12 }
 0x2e0   : > { %1456 = vmax.xlane.f32.xlu1 %v1455_v28 }
 0x2e4   : > { %1462 = vmax.xlane.f32.xlu1 %v1461_v31 }
 0x365   : > { %v3043_v46 = vpop.xlane.xlu1 %1447 }
 0x369   : > { %v1451_v48 = vpop.xlane.xlu1 %1450 }
 0x36d   : > { %v1457_v50 = vpop.xlane.xlu1 %1456 }
 0x36e   : > { %v1471_v57 = vsub.f32 %v2994_v24, %v1457_v50  ;;  %v1491_v24 = vsel %vm391_vm1, %v3085_v11, 0.0 }
 0x370   : > { %v1483_v6 = vmul.f32 1.442695, %v1471_v57 }
 0x371   : > { %v1463_v60 = vpop.xlane.xlu1 %1462 }
 0x372   : > { %v1473_v9 = vsub.f32 %v3011_v30, %v1463_v60 }
 0x374   : > { %v1487_v16 = vmul.f32 1.442695, %v1473_v9 }
 0x3ab   : > { %v649_v32 = vpop.f32.mrb[4].mxu0 }
 0x3ac   : > { %v654_v33 = vsel %vm653_vm0, 1e+09, %v649_v32  ;;  %v2115_v34 = vpop.f32.mrb[5].mxu0  ;;  %vm1347_vm0 = vcmp.eq.s32.totalorder %v2844_v2, 6 }
 0x3ad   : > { %v655_v35 = vmin.f32 %v2903_v41, %v654_v33  ;;  %v1386_v41 = vshra.s32 %v1378_v40, 3 }
 0x3af   : > { %2119 = vmatmul.mubr.msk.f32.vlgmr.msra.gmra.mrb[0].mxu1 %vm391_vm1, %v655_v35  ;;  %v809_v36 = vpop.f32.mrb[6].mxu0  ;;  %v1394_v42 = vmul.u32 8, %v1386_v41 }
 0x3b0   : > { %v2125_v38 = vpop.f32.mrb[7].mxu0  ;;  %2127 = vmatpush3.msk.msra.mxu1 %vm657_vm9, %v2596_v13  ;;  %2128 = vmatprep.mubr.msk.f32.mxu1 %vm2595_vm2, %v2594_v12  ;;  %v813_v39 = vsel %vm733_vm4, 1.0, %v809_v36  ;;  %vm1412_vm9 = vcmp.ge.s32.totalorder %v2844_v2, %v1386_v41  ;;  %v1454_v41 = vpop.xlane.xlu0 %1453 }
 0x3b1   : > { %2136 = vmatprep.subr.mxu1 %v2594_v12  ;;  %v1402_v43 = vsub.s32 %v1378_v40, %v1394_v42 }
 0x3b3   : > { %2129 = vmatmul.mubr.msk.f32.vlgmr.msra.gmra.mrb[2].mxu1 %vm391_vm1, %v813_v39  ;;  %vm1420_vm13 = vcmp.le.s32.totalorder %v2844_v2, %v1402_v43  ;;  %v1468_v43 = vsub.f32 %v2968_v18, %v3043_v46 }
 0x3b4   : > { %2138 = vmatprep.mubr.msk.f32.mxu1 %vm2595_vm2, %v2594_v12  ;;  %vm1428_vm6 = vmand %vm1412_vm9, %vm1420_vm13  ;;  %vm1359_vm9 = vcmp.eq.s32.totalorder %v2844_v2, 7  ;;  %v1460_v42 = vpop.xlane.xlu0 %1459 }
 0x3b5   : > { %v3035_v37 = vsel %vm1428_vm6, %v2853_v10, -1e+09  ;;  %v1469_v10 = vsub.f32 %v2976_v21, %v1451_v48  ;;  %vm966_vm6 = vcmp.lt.s32.totalorder %v2844_v2, 2  ;;  %v1477_v45 = vmul.f32 1.442695, %v1468_v43 }
 0x3b6   : > { %v1464_v44 = vsel %vm391_vm1, %v3035_v37, -inf  ;;  %v1472_v49 = vsub.f32 %v3004_v27, %v1460_v42 }
 0x3b7   : > { %1465 = vmax.xlane.f32.xlu0 %v1464_v44  ;;  %v1479_v56 = vmul.f32 1.442695, %v1469_v10  ;;  %v1470_v44 = vsub.f32 %v2997_v25, %v1454_v41 }
 0x3b8   : > { %v1485_v10 = vmul.f32 1.442695, %v1472_v49 }
 0x3b9   : > { %2292 = vpow2.f32 %v1479_v56  ;;  %v1481_v48 = vmul.f32 1.442695, %v1470_v44 }
 0x3ba   : > { %2294 = vpow2.f32 %v1483_v6 }
 0x3bb   : > { %2296 = vpow2.f32 %v1487_v16 }
 0x3bc   : > { %2298 = vpow2.f32 %v1477_v45 }
 0x3bd   : > { %2300 = vpow2.f32 %v1481_v48 }
 0x3be   : > { %2302 = vpow2.f32 %v1485_v10 }
 0x3c3   : > { %v3090_v23 = vpop.eup %2292 }
 0x3c4   : > { %v1497_v28 = vsel %vm391_vm1, %v3090_v23, 0.0  ;;  %v3097_v29 = vpop.eup %2294 }
 0x3c5   : > { %v1503_v30 = vsel %vm391_vm1, %v3097_v29, 0.0  ;;  %v3101_v31 = vpop.eup %2296 }
 0x3c6   : > { %v1509_v32 = vsel %vm391_vm1, %v3101_v31, 0.0 }
 0x444   : > { %v1466_v47 = vpop.xlane.xlu0 %1465 }
 0x445   : > { %v1474_v50 = vsub.f32 %v3035_v37, %v1466_v47 }
 0x482   : > { %v729_v52 = vpop.f32.mrb[0].mxu1 }
 0x483   : > { %v734_v53 = vsel %vm733_vm4, 0.0, %v729_v52  ;;  %v2120_v54 = vpop.f32.mrb[1].mxu1  ;;  %v1489_v52 = vmul.f32 1.442695, %v1474_v50 }
 0x484   : > { %v735_v55 = vsub.f32 %v655_v35, %v734_v53  ;;  %v2039_v35 = vadd.s32 4294967292, %v2844_v2  ;;  %v2299_v54 = vpop.eup %2298 }
 0x485   : > { %2304 = vpow2.f32 %v1489_v52  ;;  %v3136_v18 = vpop.eup %2300  ;;  %v1494_v25 = vsel %vm391_vm1, %v2299_v54, 0.0 }
 0x486   : > { %v3057_v58 = vsel %vm736_vm15, %v735_v55, 0.0  ;;  %v883_v59 = vpop.f32.mrb[2].mxu1  ;;  %vm970_vm13 = vcmp.eq.s32.totalorder %v2842_v1, %v2039_v35  ;;  %v1500_v27 = vsel %vm391_vm1, %v3136_v18, 0.0  ;;  %v3143_v55 = vpop.eup %2302 }
 0x487   : > { %v887_v61 = vsel %vm733_vm4, 1e+09, %v883_v59  ;;  %v2130_v62 = vpop.f32.mrb[3].mxu1  ;;  %v1300_v63 = vsel %vm1299_vm8, %v3057_v58, 0.0  ;;  %v1288_v0 = vsel %vm1287_vm14, %v3057_v58, 0.0  ;;  %v1324_v7 = vsel %vm1323_vm5, %v3057_v58, 0.0  ;;  %2137 = vmatpush3.msk.msra.mxu1 %vm970_vm13, %v2596_v13 }
 0x488   : > { %v888_v3 = vmin.f32 %v813_v39, %v887_v61  ;;  %v1301_v4 = vsel %vm391_vm1, %v1300_v63, 0.0  ;;  %v1289_v5 = vsel %vm391_vm1, %v1288_v0, 0.0  ;;  %v1312_v8 = vsel %vm1311_vm12, %v3057_v58, 0.0  ;;  %2146 = vmatprep.subr.mxu1 %v2594_v12 }
 0x489   : > { %1302 = vadd.xlane.f32.xlu0 %v1301_v4  ;;  %1290 = vadd.xlane.f32.xlu1 %v1289_v5  ;;  %vm1335_vm4 = vcmp.eq.s32.totalorder %v2844_v2, 5  ;;  %v1325_v14 = vsel %vm391_vm1, %v1324_v7, 0.0  ;;  %v1313_v15 = vsel %vm391_vm1, %v1312_v8, 0.0  ;;  %v1348_v17 = vsel %vm1347_vm0, %v3057_v58, 0.0 }
 0x48a   : > { %2134 = vmatmul.mubr.msk.f32.vlgmr.msra.gmra.mrb[8].mxu0 %vm391_vm1, %v888_v3  ;;  %v1336_v19 = vsel %vm1335_vm4, %v3057_v58, 0.0  ;;  %v1349_v20 = vsel %vm391_vm1, %v1348_v17, 0.0  ;;  %v1360_v22 = vsel %vm1359_vm9, %v3057_v58, 0.0  ;;  %v1506_v37 = vsel %vm391_vm1, %v3143_v55, 0.0 }
 0x48b   : > { %2142 = vmatpush3.msk.msra.mxu0 %vm417_vm3, %v2596_v13  ;;  %2143 = vmatprep.mubr.msk.f32.mxu0 %vm2595_vm2, %v2594_v12  ;;  %v1337_v21 = vsel %vm391_vm1, %v1336_v19, 0.0  ;;  %v1361_v26 = vsel %vm391_vm1, %v1360_v22, 0.0  ;;  %vm1280_vm3 = vcmp.eq.s32.totalorder %v2844_v2, 0  ;;  %vm1333_vm8 = vcmask 326912  }
 0x48c   : > { %2151 = vmatprep.subr.mxu0 %v2594_v12  ;;  %v1281_v33 = vsel %vm1280_vm3, %v3057_v58, 0.0  ;;  %vm1345_vm14 = vcmask 392512   ;;  %vm1357_vm5 = vcmask 458112   ;;  %vm1369_vm12 = vcmask 523712  }
 0x48d   : > { %1326 = vadd.xlane.f32.xlu0 %v1325_v14  ;;  %1314 = vadd.xlane.f32.xlu1 %v1313_v15  ;;  %v1282_v34 = vsel %vm391_vm1, %v1281_v33, 0.0  ;;  %vm1539_vm0 = vcmask 523264   ;;  %vm1276_vm4 = vcmp.lt.s32.totalorder %v2842_v1, %v2844_v2  ;;  %vm3474_vm9 = vcmp.eq.s32.totalorder %v2842_v1, %v2844_v2 }
 0x48f   : > { %v3147_v56 = vpop.eup %2304 }
 0x491   : > { %1350 = vadd.xlane.f32.xlu0 %v1349_v20  ;;  %1338 = vadd.xlane.f32.xlu1 %v1337_v21 }
 0x495   : > { %1492 = vadd.xlane.f32.xlu0 %v1491_v24  ;;  %1362 = vadd.xlane.f32.xlu1 %v1361_v26 }
 0x499   : > { %1498 = vadd.xlane.f32.xlu0 %v1497_v28  ;;  %1495 = vadd.xlane.f32.xlu1 %v1494_v25 }
 0x49d   : > { %1504 = vadd.xlane.f32.xlu0 %v1503_v30  ;;  %1501 = vadd.xlane.f32.xlu1 %v1500_v27 }
 0x4a1   : > { %1510 = vadd.xlane.f32.xlu0 %v1509_v32  ;;  %1507 = vadd.xlane.f32.xlu1 %v1506_v37 }
 0x4a5   : > { %1283 = vadd.xlane.f32.xlu0 %v1282_v34 }
 0x516   : > { %v3132_v51 = vpop.xlane.xlu0 %1302  ;;  %v1291_v9 = vpop.xlane.xlu1 %1290 }
 0x51a   : > { %v3134_v53 = vpop.xlane.xlu0 %1326  ;;  %v1315_v19 = vpop.xlane.xlu1 %1314 }
 0x51e   : > { %v3139_v46 = vpop.xlane.xlu0 %1350  ;;  %v1339_v21 = vpop.xlane.xlu1 %1338 }
 0x522   : > { %v1493_v57 = vpop.xlane.xlu0 %1492  ;;  %v1363_v22 = vpop.xlane.xlu1 %1362 }
 0x523   : > { %2306 = vrcp.f32 %v1493_v57 }
 0x526   : > { %v1499_v59 = vpop.xlane.xlu0 %1498 }
 0x527   : > { %2308 = vrcp.f32 %v1499_v59 }
 0x52a   : > { %v1505_v60 = vpop.xlane.xlu0 %1504 }
 0x52b   : > { %2310 = vrcp.f32 %v1505_v60 }
 0x52d   : > { %v2307_v61 = vpop.eup %2306 }
 0x52e   : > { %v1511_v62 = vpop.xlane.xlu0 %1510  ;;  %v1516_v63 = vmul.f32 %v2307_v61, %v3085_v11 }
 0x52f   : > { %2312 = vrcp.f32 %v1511_v62 }
 0x530   : > { %1531 = vst.msk [vmem:[%s3153_s19] sm:$0xff] %vm391_vm1, %v1516_v63 }
 0x531   : > { %v2309_v0 = vpop.eup %2308 }
 0x532   : > { %v1520_v4 = vmul.f32 %v2309_v0, %v3090_v23  ;;  %v1496_v23 = vpop.xlane.xlu1 %1495  ;;  %v1284_v47 = vpop.xlane.xlu0 %1283 }
 0x533   : > { %2314 = vrcp.f32 %v1496_v23 }
 0x534   : > { %1533 = vst.msk [vmem:[%s3153_s19 + $0x10] sm:$0xff] %vm391_vm1, %v1520_v4 }
 0x535   : > { %v2311_v5 = vpop.eup %2310 }
 0x536   : > { %v1524_v6 = vmul.f32 %v2311_v5, %v3097_v29  ;;  %v1502_v24 = vpop.xlane.xlu1 %1501 }
 0x537   : > { %2316 = vrcp.f32 %v1502_v24 }
 0x538   : > { %1535 = vst.msk [vmem:[%s3153_s19 + $0x20] sm:$0xff] %vm391_vm1, %v1524_v6 }
 0x539   : > { %v2313_v7 = vpop.eup %2312 }
 0x53a   : > { %v1528_v8 = vmul.f32 %v2313_v7, %v3101_v31  ;;  %v1508_v26 = vpop.xlane.xlu1 %1507 }
 0x53b   : > { %2318 = vrcp.f32 %v1508_v26 }
 0x53c   : > { %1537 = vst.msk [vmem:[%s3153_s19 + $0x30] sm:$0xff] %vm391_vm1, %v1528_v8 }
 0x53d   : > { %v2315_v28 = vpop.eup %2314 }
 0x53e   : > { %v1518_v30 = vmul.f32 %v2315_v28, %v2299_v54 }
 0x540   : > { %1532 = vst.msk [vmem:[%s3153_s19 + $0x8] sm:$0xff] %vm391_vm1, %v1518_v30 }
 0x541   : > { %v2317_v31 = vpop.eup %2316 }
 0x542   : > { %v1522_v32 = vmul.f32 %v2317_v31, %v3136_v18 }
 0x544   : > { %1534 = vst.msk [vmem:[%s3153_s19 + $0x18] sm:$0xff] %vm391_vm1, %v1522_v32  ;;  %v2184_v33 = vpack.c.bf16 %v1522_v32, %v1520_v4 }
 0x545   : > { %v2319_v34 = vpop.eup %2318 }
 0x546   : > { %v1526_v35 = vmul.f32 %v2319_v34, %v3143_v55 }
 0x548   : > { %1536 = vst.msk [vmem:[%s3153_s19 + $0x28] sm:$0xff] %vm391_vm1, %v1526_v35 }
 0x55d   : > { %v962_v36 = vpop.f32.mrb[8].mxu0 }
 0x55e   : > { %v967_v38 = vsel %vm966_vm6, 1e+09, %v962_v36  ;;  %v2135_v39 = vpop.f32.mrb[9].mxu0  ;;  %v2187_v36 = vpack.c.bf16 %v1526_v35, %v1524_v6 }
 0x55f   : > { %v3113_v40 = vmin.f32 %v888_v3, %v967_v38  ;;  %v2597_v3 = vmov 0.0|0.0  }
 0x561   : > { %2139 = vmatmul.mubr.msk.f32.vlgmr.msra.gmra.mrb[4].mxu1 %vm391_vm1, %v3113_v40 }
 0x562   : > { %2147 = vmatpush3.msk.msra.mxu1 %vm738_vm11, %v2596_v13  ;;  %2148 = vmatprep.mubr.msk.f32.mxu1 %vm2595_vm2, %v2594_v12 }
 0x563   : > { %2180 = vmatprep.subr.bf16.mxu1 %v2597_v3 }
 0x565   : > { %2149 = vmatmul.mubr.msk.f32.vlgmr.msra.gmra.mrb[6].mxu1 %vm391_vm1, %v3057_v58  ;;  %v1512_v58 = vsel %vm391_vm1, %v3147_v56, 0.0 }
 0x566   : > { %2172 = vmatprep.mubr.msk.f32.mxu1 %vm2595_vm2, %v2594_v12  ;;  %1513 = vadd.xlane.f32.xlu1 %v1512_v58 }
 0x5f3   : > { %v1514_v29 = vpop.xlane.xlu1 %1513 }
 0x5f4   : > { %2320 = vrcp.f32 %v1514_v29 }
 0x5fe   : > { %v2321_v38 = vpop.eup %2320 }
 0x5ff   : > { %v1530_v39 = vmul.f32 %v2321_v38, %v3147_v56 }
 0x601   : > { %1538 = vst.msk [vmem:[%s3153_s19 + $0x38] sm:$0xff] %vm391_vm1, %v1530_v39 }
 0x634   : > { %v1042_v14 = vpop.f32.mrb[4].mxu1 }
 0x635   : > { %v1047_v15 = vsel %vm1046_vm10, 1e+09, %v1042_v14  ;;  %v2140_v16 = vpop.f32.mrb[5].mxu1 }
 0x636   : > { %v1048_v17 = vmin.f32 %v3113_v40, %v1047_v15  ;;  %v2190_v40 = vpack.c.bf16 %v1530_v39, %v1528_v8 }
 0x638   : > { %2144 = vmatmul.mubr.msk.f32.vlgmr.msra.gmra.mrb[10].mxu0 %vm391_vm1, %v1048_v17  ;;  %v3169_v11 = vpop.f32.mrb[6].mxu1 }
 0x639   : > { %v2150_v20 = vpop.f32.mrb[7].mxu1  ;;  %2152 = vmatpush3.msk.msra.mxu0 %vm736_vm15, %v2596_v13  ;;  %2153 = vmatprep.mubr.msk.f32.mxu0 %vm2595_vm2, %v2594_v12  ;;  %v2181_v13 = vpack.c.bf16 %v1518_v30, %v1516_v63  ;;  %v1275_v58 = vsel %vm736_vm15, %v3169_v11, 0.0 }
 0x63a   : > { %2175 = vmatprep.subr.mxu0 %v2594_v12 }
 0x63b   : > { %2182 = vmatpush3.bf16.msra.mxu1 %v2181_v13 }
 0x63c   : > { %2183 = vmatprep.subr.bf16.mxu1 %v2597_v3 }
 0x63f   : > { %2185 = vmatpush3.bf16.msra.mxu1 %v2184_v33 }
 0x640   : > { %2186 = vmatprep.subr.bf16.mxu1 %v2597_v3 }
 0x643   : > { %2188 = vmatpush3.bf16.msra.mxu1 %v2187_v36 }
 0x644   : > { %2189 = vmatprep.subr.bf16.mxu1 %v2597_v3 }
 0x647   : > { %2191 = vmatpush3.bf16.msra.mxu1 %v2190_v40 }
 0x70b   : > { %v1118_v41 = vpop.f32.mrb[10].mxu0 }
 0x70c   : > { %v1122_v42 = vsel %vm493_vm7, 0.0, %v1118_v41  ;;  %v2145_v43 = vpop.f32.mrb[11].mxu0  ;;  %vm1309_vm7 = vcmask 195712  }
 0x70d   : > { %v1123_v44 = vsub.f32 %v1048_v17, %v1122_v42 }
 0x70f   : > { %v1124_v45 = vsel %vm738_vm11, %v1123_v44, 0.0  ;;  %vm1321_vm11 = vcmask 261312  }
 0x710   : > { %2154 = vmatmul.mubr.msk.f32.vlgmr.msra.gmra.mrb[12].mxu0 %vm391_vm1, %v1124_v45  ;;  %v1304_v48 = vmul.f32 %v3132_v51, %v1124_v45  ;;  %v1292_v49 = vmul.f32 %v1291_v9, %v1124_v45  ;;  %v1285_v10 = vmul.f32 %v1284_v47, %v1124_v45  ;;  %v1352_v50 = vmul.f32 %v3139_v46, %v1124_v45 }
 0x711   : > { %2177 = vmatprep.mubr.msk.f32.mxu0 %vm2595_vm2, %v2594_v12  ;;  %v1316_v52 = vmul.f32 %v1315_v19, %v1124_v45  ;;  %v1328_v12 = vmul.f32 %v3134_v53, %v1124_v45  ;;  %v1340_v51 = vmul.f32 %v1339_v21, %v1124_v45  ;;  %v1364_v54 = vmul.f32 %v1363_v22, %v1124_v45 }
 0x712   : > { %1306 = vrot.lane.b32.xlu0 %v1304_v48, %s2598_s18  ;;  %1294 = vrot.lane.b32.xlu1 %v1292_v49, %s3444_s22  ;;  %1286 = vst.msk [vmem:[%s3203_s29] sm:$0xff] %vm391_vm1, %v1285_v10  ;;  %vm1297_vm2 = vcmask 130112   ;;  %s1737_s18 = sshll.u32 %s350_s9, 4  ;;  %s3244_s18 = int_to_ptr.vmem [resolvable:$true] %s1737_s18 }
 0x716   : > { %1354 = vrot.lane.b32.xlu0 %v1352_v50, %s2600_s15  ;;  %1318 = vrot.lane.b32.xlu1 %v1316_v52, %s2601_s20 }
 0x71a   : > { %1330 = vrot.lane.b32.xlu1 %v1328_v12, %s2602_s23  ;;  %s3250_s23 = scalar_lea.hbm %s3432_s6, %s3236_s10 }
 0x71e   : > { %1342 = vrot.lane.b32.xlu1 %v1340_v51, %s2603_s13  ;;  %s3254_s13 = scalar_lea.sflag [#allocation11], %s3445_s26 }
 0x722   : > { %1366 = vrot.lane.b32.xlu1 %v1364_v54, %s2604_s17  ;;  %s2395_s17 = scalar_lea.vmem %s3244_s18, 128 }
 0x723   : > { %p2396_p0 = scmp.ne.s32.totalorder %s3244_s18, %s2395_s17 }
 0x725   : > { %p2397_p9 = pnand %p2396_p0, %p3475_p8 }
 0x727   : > { %p2398_p3 = pneg %p2397_p9 }
 0x784   : > { %v1307_v18 = vpop.permute.xlu0 %1306  ;;  %v1295_v25 = vpop.permute.xlu1 %1294 }
 0x785   : > { %1298 = vst.msk [vmem:[%s3203_s29] sm:$0xff] %vm1297_vm2, %v1295_v25 }
 0x786   : > { %1310 = vst.msk [vmem:[%s3203_s29] sm:$0xff] %vm1309_vm7, %v1307_v18 }
 0x788   : > { %v1319_v53 = vpop.permute.xlu1 %1318  ;;  %v1355_v55 = vpop.permute.xlu0 %1354 }
 0x789   : > { %1322 = vst.msk [vmem:[%s3203_s29] sm:$0xff] %vm1321_vm11, %v1319_v53 }
 0x78c   : > { %v1331_v46 = vpop.permute.xlu1 %1330 }
 0x78d   : > { %1334 = vst.msk [vmem:[%s3203_s29] sm:$0xff] %vm1333_vm8, %v1331_v46 }
 0x790   : > { %v1343_v27 = vpop.permute.xlu1 %1342 }
 0x791   : > { %1346 = vst.msk [vmem:[%s3203_s29] sm:$0xff] %vm1345_vm14, %v1343_v27 }
 0x792   : > { %1358 = vst.msk [vmem:[%s3203_s29] sm:$0xff] %vm1357_vm5, %v1355_v55 }
 0x794   : > { %v1367_v37 = vpop.permute.xlu1 %1366 }
 0x795   : > { %1370 = vst.msk [vmem:[%s3203_s29] sm:$0xff] %vm1369_vm12, %v1367_v37 }
 0x79c   : > { %v1371_v56 = vld [vmem:[%s3203_s29] sm:$0xff] }
 0x79d   : > { %2173 = vmatmul.mubr.msk.f32.vlgmr.msra.gmra.mrb[8].mxu1 %vm1539_vm0, %v1371_v56 }
 0x7e3   : > { %v1271_v57 = vpop.f32.mrb[12].mxu0 }
 0x7e4   : > { %v1277_v59 = vsel %vm1276_vm4, %v1271_v57, 0.0  ;;  %v2155_v60 = vpop.f32.mrb[13].mxu0 }
 0x7e5   : > { %v1278_v61 = vadd.f32 %v1277_v59, %v1275_v58 }
 0x7e7   : > { %1279 = vst.msk [vmem:[%s350_s9] sm:$0xff] %vm391_vm1, %v1278_v61  ;;  %s2399_s9 = sshll.u32 %s2605_s11, 4  ;;  %s2400_s9 = int_to_ptr.vmem [resolvable:$false] %s2399_s9 }
 0x7e8   : > { %s2401_s16 = scalar_lea.vmem %s2400_s9, 256  ;;  %p2402_p1 = scmp.lt.s32.totalorder %s3244_s18, %s2400_s9 }
 0x7e9   : > { %p2403_p4 = scmp.lt.s32.totalorder %s2401_s16, %s2395_s17 }
 0x7eb   : > { %p2404_p5 = por %p2403_p4, %p2402_p1 }
 0x7ed   : > { %p2405_p6 = pnand %p2404_p5, %p2398_p3 }
 0x870   : > { %v1609_v62 = vpop.f32.mrb[8].mxu1 }
 0x871   : > { %v1613_v63 = vsel %vm3474_vm9, 0.0, %v1609_v62  ;;  %v2174_v0 = vpop.f32.mrb[9].mxu1 }
 0x872   : > { %1614 = vst.msk [vmem:[%s364_s14] sm:$0xff] %vm391_vm1, %v1613_v63  ;;  %2176 = vmatpush3.xpose.msk.msra.mxu0 %vm391_vm1, %v1613_v63 }
 0x875   : > { %2178 = vmatmul.mubr.msk.f32.vlgmr.msra.gmra.mrb[14].mxu0 %vm391_vm1, %v1613_v63 }
 0x876   : > { %2408 = shalt.err (!%p2405_p6)
}
 0x877   : > { %s2409_s15 = scalar_lea.hbm %s3242_s8, 128  ;;  %s2413_s11 = scalar_lea.hbm %s3430_s4, 256 }
 0x878   : > { %p2410_p12 = scmp.ne.s32.totalorder %s3242_s8, %s2409_s15  ;;  %p2414_p2 = scmp.lt.u32.totalorder %s3242_s8, %s3430_s4 }
 0x879   : > { %p2415_p7 = scmp.lt.u32.totalorder %s2413_s11, %s2409_s15  ;;  %p2417_p0 = scmp.lt.u32.totalorder %s2409_s15, %s3242_s8 }
 0x87a   : > { %p2411_p13 = pnand %p2410_p12, %p3475_p8 }
 0x87b   : > { %p2416_p11 = por %p2415_p7, %p2414_p2 }
 0x87c   : > { %p2412_p10 = pneg %p2411_p13 }
 0x87d   : > { %p2418_p9 = por %p2417_p0, %p2416_p11 }
 0x87f   : > { %p2419_p3 = pnand %p2418_p9, %p2412_p10 }
 0x881   : > { %2422 = shalt.err (!%p2419_p3)
}
 0x882   : > { %2201 = dma.vmem_to_hbm [thread:$0]  (%p3475_p8), %s3244_s18, 128, %s3242_s8, %s3254_s13  }
 0x883   : > { %s1766_s22 = sshll.u32 %s364_s14, 4  ;;  %s3286_s16 = scalar_lea.hbm %s3429_s3, %s3236_s10  ;;  %s3280_s22 = int_to_ptr.vmem [resolvable:$true] %s1766_s22 }
 0x884   : > { %s3476_s15 = sand.u32 1, %s2672_s28   ;;  %s2423_s11 = scalar_lea.vmem %s3280_s22, 128 }
 0x885   : > { %s3290_s20 = scalar_lea.sflag [#allocation14], %s3476_s15  ;;  %p2424_p1 = scmp.ne.s32.totalorder %s3280_s22, %s2423_s11 }
 0x886   : > { %s2606_s8 = smov [#allocation13]  }
 0x887   : > { %p2425_p4 = pnand %p2424_p1, %p3475_p8  ;;  %s2427_s14 = sshll.u32 %s2606_s8, 4  ;;  %s2428_s14 = int_to_ptr.vmem [resolvable:$false] %s2427_s14 }
 0x888   : > { %s2429_s18 = scalar_lea.vmem %s2428_s14, 256  ;;  %p2430_p6 = scmp.lt.s32.totalorder %s3280_s22, %s2428_s14 }
 0x889   : > { %p2426_p5 = pneg %p2425_p4  ;;  %p2431_p12 = scmp.lt.s32.totalorder %s2429_s18, %s2423_s11 }
 0x88b   : > { %p2432_p13 = por %p2431_p12, %p2430_p6 }
 0x88d   : > { %p2433_p10 = pnand %p2432_p13, %p2426_p5 }
 0x88f   : > { %2436 = shalt.err (!%p2433_p10)
}
 0x890   : > { %s2437_s9 = scalar_lea.hbm %s3250_s23, 128  ;;  %s2441_s15 = scalar_lea.hbm %s3432_s6, 256 }
 0x891   : > { %p2438_p2 = scmp.ne.s32.totalorder %s3250_s23, %s2437_s9  ;;  %p2442_p0 = scmp.lt.u32.totalorder %s3250_s23, %s3432_s6 }
 0x892   : > { %p2443_p9 = scmp.lt.u32.totalorder %s2441_s15, %s2437_s9  ;;  %p2445_p1 = scmp.lt.u32.totalorder %s2437_s9, %s3250_s23 }
 0x893   : > { %p2439_p7 = pnand %p2438_p2, %p3475_p8 }
 0x894   : > { %p2444_p3 = por %p2443_p9, %p2442_p0 }
 0x895   : > { %p2440_p11 = pneg %p2439_p7 }
 0x896   : > { %p2446_p4 = por %p2445_p1, %p2444_p3 }
 0x898   : > { %p2447_p5 = pnand %p2446_p4, %p2440_p11 }
 0x89a   : > { %2450 = shalt.err (!%p2447_p5)
}
 0x89b   : > { %2203 = dma.vmem_to_hbm [thread:$0]  (%p3475_p8), %s3280_s22, 128, %s3250_s23, %s3290_s20  }
 0x89c   : > { %s1724_s11 = sshll.u32 %s3203_s29, 4  ;;  %s2067_s18 = sshll.u32 %s2672_s28, 10  ;;  %s3316_s11 = int_to_ptr.vmem [resolvable:$true] %s1724_s11 }
 0x89d   : > { %s3321_s9 = scalar_lea.hbm %s3431_s5, %s2067_s18  ;;  %s1691_s15 = scalar_lea.sflag [#allocation4], %s2828_s30 }
 0x89e   : > { %s2451_s8 = scalar_lea.vmem %s3316_s11, 128  ;;  %s2607_s14 = smov [#allocation9]  }
 0x89f   : > { %p2452_p6 = scmp.ne.s32.totalorder %s3316_s11, %s2451_s8  ;;  %s2455_s23 = sshll.u32 %s2607_s14, 4  ;;  %s2456_s23 = int_to_ptr.vmem [resolvable:$false] %s2455_s23 }
 0x8a0   : > { %s2457_s28 = scalar_lea.vmem %s2456_s23, 256  ;;  %p2458_p10 = scmp.lt.s32.totalorder %s3316_s11, %s2456_s23 }
 0x8a1   : > { %p2453_p12 = pnand %p2452_p6, %p3475_p8  ;;  %p2459_p2 = scmp.lt.s32.totalorder %s2457_s28, %s2451_s8 }
 0x8a3   : > { %p2454_p13 = pneg %p2453_p12  ;;  %p2460_p7 = por %p2459_p2, %p2458_p10 }
 0x8a5   : > { %p2461_p11 = pnand %p2460_p7, %p2454_p13 }
 0x8a7   : > { %2464 = shalt.err (!%p2461_p11)
}
 0x8a8   : > { %s2465_s30 = scalar_lea.hbm %s3286_s16, 128  ;;  %s2469_s18 = scalar_lea.hbm %s3429_s3, 256 }
 0x8a9   : > { %p2466_p0 = scmp.ne.s32.totalorder %s3286_s16, %s2465_s30  ;;  %p2470_p1 = scmp.lt.u32.totalorder %s3286_s16, %s3429_s3 }
 0x8aa   : > { %p2471_p4 = scmp.lt.u32.totalorder %s2469_s18, %s2465_s30  ;;  %p2473_p6 = scmp.lt.u32.totalorder %s2465_s30, %s3286_s16 }
 0x8ab   : > { %p2467_p9 = pnand %p2466_p0, %p3475_p8 }
 0x8ac   : > { %p2472_p5 = por %p2471_p4, %p2470_p1 }
 0x8ad   : > { %p2468_p3 = pneg %p2467_p9 }
 0x8ae   : > { %p2474_p12 = por %p2473_p6, %p2472_p5 }
 0x8b0   : > { %p2475_p13 = pnand %p2474_p12, %p2468_p3 }
 0x8b2   : > { %2478 = shalt.err (!%p2475_p13)
}
 0x8b3   : > { %2200 = dma.vmem_to_hbm [thread:$0]  (%p3475_p8), %s3316_s11, 128, %s3286_s16, %s1691_s15  }
 0x8b4   : > { %s1750_s8 = sshll.u32 %s3153_s19, 4  ;;  %s2608_s23 = smov [#allocation12]   ;;  %s3346_s8 = int_to_ptr.vmem [resolvable:$true] %s1750_s8 }
 0x8b5   : > { %s2479_s14 = scalar_lea.vmem %s3346_s8, 1024  ;;  %s2483_s28 = sshll.u32 %s2608_s23, 4  ;;  %s2484_s28 = int_to_ptr.vmem [resolvable:$false] %s2483_s28 }
 0x8b6   : > { %p2480_p10 = scmp.ne.s32.totalorder %s3346_s8, %s2479_s14  ;;  %s2485_s30 = scalar_lea.vmem %s2484_s28, 2048 }
 0x8b7   : > { %p2486_p11 = scmp.lt.s32.totalorder %s3346_s8, %s2484_s28  ;;  %p2487_p0 = scmp.lt.s32.totalorder %s2485_s30, %s2479_s14 }
 0x8b8   : > { %p2481_p2 = pnand %p2480_p10, %p3475_p8 }
 0x8b9   : > { %p2488_p9 = por %p2487_p0, %p2486_p11 }
 0x8ba   : > { %p2482_p7 = pneg %p2481_p2 }
 0x8bc   : > { %p2489_p3 = pnand %p2488_p9, %p2482_p7 }
 0x8be   : > { %2492 = shalt.err (!%p2489_p3)
}
 0x8bf   : > { %s2493_s19 = scalar_lea.hbm %s3321_s9, 1024  ;;  %s2497_s15 = scalar_lea.hbm %s3431_s5, 2048 }
 0x8c0   : > { %p2494_p1 = scmp.ne.s32.totalorder %s3321_s9, %s2493_s19  ;;  %p2498_p6 = scmp.lt.u32.totalorder %s3321_s9, %s3431_s5 }
 0x8c1   : > { %p2499_p12 = scmp.lt.u32.totalorder %s2497_s15, %s2493_s19  ;;  %p2501_p10 = scmp.lt.u32.totalorder %s2493_s19, %s3321_s9 }
 0x8c2   : > { %p2495_p4 = pnand %p2494_p1, %p3475_p8 }
 0x8c3   : > { %p2500_p13 = por %p2499_p12, %p2498_p6 }
 0x8c4   : > { %p2496_p5 = pneg %p2495_p4 }
 0x8c5   : > { %p2502_p2 = por %p2501_p10, %p2500_p13 }
 0x8c7   : > { %p2503_p7 = pnand %p2502_p2, %p2496_p5 }
 0x8c9   : > { %2506 = shalt.err (!%p2503_p7)
}
 0x8ca   : > { %s2609_s18 = smov 128   ;;  %s3477_s26 = smov 8   ;;  %vm3478_vm15 = vmmov %vm3474_vm9 }
 0x8cb   : > { %2202 = dma.vmem_to_hbm [thread:$0]  (%p3475_p8), %s3346_s8, 1024, %s3321_s9, %s3254_s13, %s2609_s18, %s2609_s18, %s3477_s26  }
 0x8cc   : > { %s371_s17 = scalar_lea.vmem [#allocation15], %s3192_s21  ;;  %s3376_s30 = scalar_lea.hbm %s3433_s7, %s3236_s10 }
 0x8cd   : > { %s1779_s14 = sshll.u32 %s371_s17, 4  ;;  %s2610_s13 = smov [#allocation15]   ;;  %s3378_s14 = int_to_ptr.vmem [resolvable:$true] %s1779_s14 }
 0x8ce   : > { %s2507_s21 = scalar_lea.vmem %s3378_s14, 128  ;;  %s2511_s10 = sshll.u32 %s2610_s13, 4  ;;  %s2512_s10 = int_to_ptr.vmem [resolvable:$false] %s2511_s10 }
 0x8cf   : > { %p2508_p11 = scmp.ne.s32.totalorder %s3378_s14, %s2507_s21  ;;  %s2513_s9 = scalar_lea.vmem %s2512_s10, 256 }
 0x8d0   : > { %p2514_p3 = scmp.lt.s32.totalorder %s3378_s14, %s2512_s10  ;;  %p2515_p1 = scmp.lt.s32.totalorder %s2513_s9, %s2507_s21 }
 0x8d1   : > { %p2509_p0 = pnand %p2508_p11, %p3475_p8 }
 0x8d2   : > { %p2516_p4 = por %p2515_p1, %p2514_p3 }
 0x8d3   : > { %p2510_p9 = pneg %p2509_p0 }
 0x8d5   : > { %p2517_p5 = pnand %p2516_p4, %p2510_p9 }
 0x948   : > { %v1684_v3 = vpop.f32.mrb[14].mxu0 }
 0x949   : > { %v1688_v4 = vsel %vm3478_vm15, 0.0, %v1684_v3  ;;  %v2179_v5 = vpop.f32.mrb[15].mxu0 }
 0x94a   : > { %1689 = vst.msk [vmem:[%s371_s17] sm:$0xff] %vm391_vm1, %v1688_v4 }
 0x94b   : > { %2520 = shalt.err (!%p2517_p5)
}
 0x94c   : > { %s2521_s8 = scalar_lea.hbm %s3376_s30, 128  ;;  %s2525_s11 = scalar_lea.hbm %s3433_s7, 256 }
 0x94d   : > { %p2522_p6 = scmp.ne.s32.totalorder %s3376_s30, %s2521_s8  ;;  %p2526_p10 = scmp.lt.u32.totalorder %s3376_s30, %s3433_s7 }
 0x94e   : > { %p2527_p2 = scmp.lt.u32.totalorder %s2525_s11, %s2521_s8  ;;  %p2529_p11 = scmp.lt.u32.totalorder %s2521_s8, %s3376_s30 }
 0x94f   : > { %p2523_p12 = pnand %p2522_p6, %p3475_p8 }
 0x950   : > { %p2528_p7 = por %p2527_p2, %p2526_p10 }
 0x951   : > { %p2524_p13 = pneg %p2523_p12 }
 0x952   : > { %p2530_p0 = por %p2529_p11, %p2528_p7 }
 0x954   : > { %p2531_p9 = pnand %p2530_p0, %p2524_p13 }
 0x956   : > { %2534 = shalt.err (!%p2531_p9)
}
 0x957   : > { %2204 = dma.vmem_to_hbm [thread:$0]  (%p3475_p8), %s3378_s14, 128, %s3376_s30, %s3290_s20  }
 0x958 PF: > { %s3479_s22 = sld [smem:[#allocation25_spill]]  ;;  %s1791_s18 = sand.u32 1, %s2577_s24  }
 0x959   : > { %p3481_p1 = scmp.ge.s32.totalorder %s2589_s27, 2  ;;  %s1792_s26 = scalar_lea.sflag [#allocation4], %s1791_s18 }
 0x95e   : > { %p3480_p3 = scmp.ne.s32.totalorder %s3479_s22, 0 }
 0x960   : > { %p2222_p4 = pnand %p3481_p1, %p3480_p3 }
 0x962   : > { %2564 = dma.done.wait (!%p2222_p4), %s1792_s26, 128  }
 0x963   : > { %2566 = vsyncadd (!%p2222_p4), %s1792_s26, 4294967168  ;;  %s3482_s17 = sadd.s32 4294967294, %s2589_s27  }
 0x964   : > { %s1800_s23 = sand.u32 1, %s3482_s17  }
 0x965   : > { %s1801_s28 = scalar_lea.sflag [#allocation11], %s1800_s23 }
 0x966   : > { %2568 = dma.done.wait (!%p2222_p4), %s1801_s28, 1152  }
 0x967   : > { %2570 = vsyncadd (!%p2222_p4), %s1801_s28, 4294966144  ;;  %s1819_s12 = scalar_lea.sflag [#allocation14], %s1800_s23 }
 0x968   : > { %2572 = dma.done.wait (!%p2222_p4), %s1819_s12, 256  }
 0x969   : > { %2574 = vsyncadd (!%p2222_p4), %s1819_s12, 4294967040  ;;  %s3483_s27 = sld [smem:[#allocation23_spill]]  ;;  %s3484_s20 = sld [smem:[#allocation22_spill]] }
 0x96a   : > { %s3485_s26 = sld [smem:[#allocation24_spill]]  ;;  %s3486_s24 = smov %s2581_s25 }
 0x96f   : > { %p31_p8 = scmp.ge.s32.totalorder %s3483_s27, 4   ;;  %s3487_s25 = smov %s3484_s20 }
 0x971   :  { %33 = sbr.rel (!%p31_p8) target bundleno = 12 (0xc), region = 159 }
 0x978   :  { %1833 = vsyncpa [#allocation3], 1 }
 0x979   :  { %1835 = vsyncpa [#allocation3 + $0x1], 1 }
 0x97a   :  { %1836 = vsyncpa [#allocation8], 1 }
 0x97b   :  { %1838 = vsyncpa [#allocation8 + $0x1], 1 }
 0x97c   :  { %1839 = vsyncpa [#allocation4], 1 }
 0x97d   :  { %1841 = vsyncpa [#allocation4 + $0x1], 1 }
 0x97e   :  { %1842 = vsyncpa [#allocation11], 1 }
 0x97f   :  { %1844 = vsyncpa [#allocation11 + $0x1], 1 }
 0x980   :  { %1845 = vsyncpa [#allocation14], 1 }
 0x981   :  { %1847 = vsyncpa [#allocation14 + $0x1], 1 }
 0x982   :  { %1848 = vsyncpa [#allocation5], 1 }
 0x983   :  { %1850 = vsyncpa [#allocation5 + $0x1], 1 }

// kernel: hsi_forward.2
= control target key start
LH: loop header
LB: loop body
LE: loop exit
PB: predicated region body
PF: predicated region fallthrough
CT: control target
= control target key end

     0   :  { %15 = vsyncpa [#allocation3], 0  ;;  %s2238_s0 = inlined_call_operand.hbm [shape: s32[1,1,16], index: 0, kind: input, shape index: {}]   ;;  %s2239_s1 = inlined_call_operand.hbm [shape: f32[1,16,32], index: 1, kind: input, shape index: {}]   ;;  %s2240_s2 = inlined_call_operand.hbm [shape: f32[32,32], index: 2, kind: input, shape index: {}]   ;;  %s2241_s3 = inlined_call_operand.hbm [shape: f32[32,32], index: 3, kind: input, shape index: {}]   ;;  %s2242_s4 = inlined_call_operand.hbm [shape: f32[1,32], index: 4, kind: input, shape index: {}]   ;;  %s2243_s5 = inlined_call_operand.hbm [shape: f32[1,32], index: 5, kind: input, shape index: {}]   ;;  %s2244_s6 = inlined_call_operand.hbm [shape: f32[32,32], index: 6, kind: input, shape index: {}]   ;;  %s2245_s7 = inlined_call_operand.hbm [shape: f32[1,32], index: 7, kind: input, shape index: {}]   ;;  %s2246_s8 = inlined_call_operand.hbm [shape: f32[1,32], index: 8, kind: input, shape index: {}]   ;;  %s2247_s9 = inlined_call_operand.hbm [shape: f32[2], index: 9, kind: input, shape index: {}]   ;;  %s2248_s10 = inlined_call_operand.hbm [shape: f32[1,3,16], index: 10, kind: output, shape index: {}]  }
   0x1   :  { %16 = vsyncpa [#allocation7], 0 }
   0x2   :  { %17 = vsyncpa [#allocation10], 0 }
   0x3   :  { %18 = vsyncpa [#allocation13], 0 }
   0x4   :  { %19 = vsyncpa [#allocation16], 0 }
   0x5   :  { %20 = vsyncpa [#allocation5], 0 }
   0x6   :  { %21 = vsyncpa [#allocation4], 0  ;;  %s1850_s13 = smov [#allocation6]   ;;  %s1606_s17 = scalar_lea.hbm %s2239_s1, 256 }
   0x7   :  { %s37_s14 = sshll.u32 %s1850_s13, 4  ;;  %p1607_p0 = scmp.ne.s32.totalorder %s2239_s1, %s1606_s17  ;;  %s38_s14 = int_to_ptr.vmem [resolvable:$true] %s37_s14 }
   0x8   :  { %p1610_p1 = scmp.lt.u32.totalorder %s1606_s17, %s2239_s1 }
   0xa   :  { %p1612_p2 = pnand %p1610_p1, %p1607_p0 }
   0xc   :  { %1615 = shalt.err (!%p1612_p2)
}
   0xd   :  { %s1616_s22 = scalar_lea.vmem %s38_s14, 256  ;;  %p1621_p4 = scmp.lt.s32.totalorder %s38_s14, %s38_s14 }
   0xe   :  { %p1617_p3 = scmp.ne.s32.totalorder %s38_s14, %s1616_s22  ;;  %p1622_p5 = scmp.lt.s32.totalorder %s1616_s22, %s1616_s22 }
  0x10   :  { %p1623_p6 = por %p1622_p5, %p1621_p4 }
  0x12   :  { %p1624_p7 = pnand %p1623_p6, %p1617_p3 }
  0x14   :  { %1627 = shalt.err (!%p1624_p7)
}
  0x15   :  { %s1851_s23 = smov 128   ;;  %s1852_s24 = smov 8  }
  0x16   :  { %43 = dma.hbm_to_vmem [thread:$0]  %s2239_s1, 256, %s38_s14, [#allocation7], %s1851_s23, %s1851_s23, %s1852_s24  }
  0x17   :  { %s1853_s27 = smov [#allocation9]   ;;  %s1854_s29 = smov [#allocation12]  }
  0x18   :  { %s61_s28 = sshll.u32 %s1853_s27, 4  ;;  %s84_s30 = sshll.u32 %s1854_s29, 4  ;;  %s62_s28 = int_to_ptr.vmem [resolvable:$true] %s61_s28  ;;  %s85_s30 = int_to_ptr.vmem [resolvable:$true] %s84_s30 }
  0x19   :  { %s1628_s13 = scalar_lea.hbm %s2241_s3, 512 }
  0x1a   :  { %p1629_p8 = scmp.ne.s32.totalorder %s2241_s3, %s1628_s13  ;;  %p1632_p9 = scmp.lt.u32.totalorder %s1628_s13, %s2241_s3 }
  0x1c   :  { %p1634_p10 = pnand %p1632_p9, %p1629_p8 }
  0x1e   :  { %1637 = shalt.err (!%p1634_p10)
}
  0x1f   :  { %s1638_s1 = scalar_lea.vmem %s62_s28, 512  ;;  %p1643_p12 = scmp.lt.s32.totalorder %s62_s28, %s62_s28 }
  0x20   :  { %p1639_p11 = scmp.ne.s32.totalorder %s62_s28, %s1638_s1  ;;  %p1644_p13 = scmp.lt.s32.totalorder %s1638_s1, %s1638_s1 }
  0x22   :  { %p1645_p0 = por %p1644_p13, %p1643_p12 }
  0x24   :  { %p1646_p1 = pnand %p1645_p0, %p1639_p11 }
  0x26   :  { %1649 = shalt.err (!%p1646_p1)
}
  0x27   :  { %67 = dma.hbm_to_vmem [thread:$0]  %s2241_s3, 512, %s62_s28, [#allocation10], %s1851_s23, %s1851_s23, %s1852_s24  }
  0x28   :  { %s1650_s22 = scalar_lea.hbm %s2243_s5, 16 }
  0x29   :  { %p1651_p2 = scmp.ne.s32.totalorder %s2243_s5, %s1650_s22  ;;  %p1654_p3 = scmp.lt.u32.totalorder %s1650_s22, %s2243_s5 }
  0x2b   :  { %p1656_p4 = pnand %p1654_p3, %p1651_p2 }
  0x2d   :  { %1659 = shalt.err (!%p1656_p4)
}
  0x2e   :  { %s1660_s11 = scalar_lea.vmem %s85_s30, 16  ;;  %s1664_s12 = scalar_lea.vmem %s85_s30, 32 }
  0x2f   :  { %p1661_p5 = scmp.ne.s32.totalorder %s85_s30, %s1660_s11  ;;  %p1665_p6 = scmp.lt.s32.totalorder %s85_s30, %s85_s30 }
  0x30   :  { %p1666_p7 = scmp.lt.s32.totalorder %s1664_s12, %s1660_s11 }
  0x32   :  { %p1667_p8 = por %p1666_p7, %p1665_p6 }
  0x34   :  { %p1668_p9 = pnand %p1667_p8, %p1661_p5 }
  0x36   :  { %1671 = shalt.err (!%p1668_p9)
}
  0x37   :  { %87 = dma.hbm_to_vmem [thread:$0]  %s2243_s5, 16, %s85_s30, [#allocation13]  }
  0x38   :  { %s1855_s13 = smov [#allocation15]   ;;  %s1856_s16 = smov [#allocation2]  }
  0x39   :  { %s106_s15 = sshll.u32 %s1855_s13, 4  ;;  %s28_s17 = sshll.u32 %s1856_s16, 4  ;;  %s107_s15 = int_to_ptr.vmem [resolvable:$true] %s106_s15  ;;  %s29_s17 = int_to_ptr.vmem [resolvable:$true] %s28_s17 }
  0x3a   :  { %s1672_s14 = scalar_lea.hbm %s2245_s7, 16 }
  0x3b   :  { %p1673_p10 = scmp.ne.s32.totalorder %s2245_s7, %s1672_s14  ;;  %p1676_p11 = scmp.lt.u32.totalorder %s1672_s14, %s2245_s7 }
  0x3d   :  { %p1678_p12 = pnand %p1676_p11, %p1673_p10 }
  0x3f   :  { %1681 = shalt.err (!%p1678_p12)
}
  0x40   :  { %s1682_s5 = scalar_lea.vmem %s107_s15, 16  ;;  %s1686_s30 = scalar_lea.vmem %s107_s15, 32 }
  0x41   :  { %p1683_p13 = scmp.ne.s32.totalorder %s107_s15, %s1682_s5  ;;  %p1687_p0 = scmp.lt.s32.totalorder %s107_s15, %s107_s15 }
  0x42   :  { %p1688_p1 = scmp.lt.s32.totalorder %s1686_s30, %s1682_s5 }
  0x44   :  { %p1689_p2 = por %p1688_p1, %p1687_p0 }
  0x46   :  { %p1690_p3 = pnand %p1689_p2, %p1683_p13 }
  0x48   :  { %1693 = shalt.err (!%p1690_p3)
}
  0x49   :  { %109 = dma.hbm_to_vmem [thread:$0]  %s2245_s7, 16, %s107_s15, [#allocation16]  }
  0x4a   :  { %s1694_s11 = scalar_lea.hbm %s2238_s0, 16 }
  0x4b   :  { %p1695_p4 = scmp.ne.s32.totalorder %s2238_s0, %s1694_s11  ;;  %p1698_p5 = scmp.lt.u32.totalorder %s1694_s11, %s2238_s0 }
  0x4d   :  { %p1700_p6 = pnand %p1698_p5, %p1695_p4 }
  0x4f   :  { %1703 = shalt.err (!%p1700_p6)
}
  0x50   :  { %s1704_s16 = scalar_lea.vmem %s29_s17, 16  ;;  %s1708_s18 = scalar_lea.vmem %s29_s17, 32 }
  0x51   :  { %p1705_p7 = scmp.ne.s32.totalorder %s29_s17, %s1704_s16  ;;  %p1709_p8 = scmp.lt.s32.totalorder %s29_s17, %s29_s17 }
  0x52   :  { %p1710_p9 = scmp.lt.s32.totalorder %s1708_s18, %s1704_s16 }
  0x54   :  { %p1711_p10 = por %p1710_p9, %p1709_p8 }
  0x56   :  { %p1712_p11 = pnand %p1711_p10, %p1705_p7 }
  0x58   :  { %1715 = shalt.err (!%p1712_p11)
}
  0x59   :  { %31 = dma.hbm_to_vmem [thread:$0]  %s2238_s0, 16, %s29_s17, [#allocation3]  }
  0x5a   :  { %s1857_s1 = smov [#allocation8]   ;;  %s1858_s19 = smov [#allocation11]  }
  0x5b   :  { %s49_s14 = sshll.u32 %s1857_s1, 4  ;;  %s74_s20 = sshll.u32 %s1858_s19, 4  ;;  %s50_s14 = int_to_ptr.vmem [resolvable:$true] %s49_s14  ;;  %s75_s20 = int_to_ptr.vmem [resolvable:$true] %s74_s20 }
  0x5c   :  { %s1716_s5 = scalar_lea.hbm %s2240_s2, 512 }
  0x5d   :  { %p1717_p12 = scmp.ne.s32.totalorder %s2240_s2, %s1716_s5  ;;  %p1720_p13 = scmp.lt.u32.totalorder %s1716_s5, %s2240_s2 }
  0x5f   :  { %p1722_p0 = pnand %p1720_p13, %p1717_p12 }
  0x61   :  { %1725 = shalt.err (!%p1722_p0)
}
  0x62   :  { %s1726_s0 = scalar_lea.vmem %s50_s14, 512  ;;  %p1731_p2 = scmp.lt.s32.totalorder %s50_s14, %s50_s14 }
  0x63   :  { %p1727_p1 = scmp.ne.s32.totalorder %s50_s14, %s1726_s0  ;;  %p1732_p3 = scmp.lt.s32.totalorder %s1726_s0, %s1726_s0 }
  0x65   :  { %p1733_p4 = por %p1732_p3, %p1731_p2 }
  0x67   :  { %p1734_p5 = pnand %p1733_p4, %p1727_p1 }
  0x69   :  { %1737 = shalt.err (!%p1734_p5)
}
  0x6a   :  { %55 = dma.hbm_to_vmem [thread:$0]  %s2240_s2, 512, %s50_s14, [#allocation7], %s1851_s23, %s1851_s23, %s1852_s24  }
  0x6b   :  { %s1738_s3 = scalar_lea.hbm %s2242_s4, 16 }
  0x6c   :  { %p1739_p6 = scmp.ne.s32.totalorder %s2242_s4, %s1738_s3  ;;  %p1742_p7 = scmp.lt.u32.totalorder %s1738_s3, %s2242_s4 }
  0x6e   :  { %p1744_p8 = pnand %p1742_p7, %p1739_p6 }
  0x70   :  { %1747 = shalt.err (!%p1744_p8)
}
  0x71   :  { %s1748_s7 = scalar_lea.vmem %s75_s20, 16  ;;  %s1752_s15 = scalar_lea.vmem %s75_s20, 32 }
  0x72   :  { %p1749_p9 = scmp.ne.s32.totalorder %s75_s20, %s1748_s7  ;;  %p1753_p10 = scmp.lt.s32.totalorder %s75_s20, %s75_s20 }
  0x73   :  { %p1754_p11 = scmp.lt.s32.totalorder %s1752_s15, %s1748_s7 }
  0x75   :  { %p1755_p12 = por %p1754_p11, %p1753_p10 }
  0x77   :  { %p1756_p13 = pnand %p1755_p12, %p1749_p9 }
  0x79   :  { %1759 = shalt.err (!%p1756_p13)
}
  0x7a   :  { %77 = dma.hbm_to_vmem [thread:$0]  %s2242_s4, 16, %s75_s20, [#allocation10]  }
  0x7b   :  { %s1859_s14 = smov [#allocation14]   ;;  %s1860_s21 = smov [#allocation17]  }
  0x7c   :  { %s93_s19 = sshll.u32 %s1859_s14, 4  ;;  %s116_s22 = sshll.u32 %s1860_s21, 4  ;;  %s94_s19 = int_to_ptr.vmem [resolvable:$true] %s93_s19  ;;  %s117_s22 = int_to_ptr.vmem [resolvable:$true] %s116_s22 }
  0x7d   :  { %s1760_s25 = scalar_lea.hbm %s2244_s6, 512 }
  0x7e   :  { %p1761_p0 = scmp.ne.s32.totalorder %s2244_s6, %s1760_s25  ;;  %p1764_p1 = scmp.lt.u32.totalorder %s1760_s25, %s2244_s6 }
  0x80   :  { %p1766_p2 = pnand %p1764_p1, %p1761_p0 }
  0x82   :  { %1769 = shalt.err (!%p1766_p2)
}
  0x83   :  { %s1770_s4 = scalar_lea.vmem %s94_s19, 512  ;;  %p1775_p4 = scmp.lt.s32.totalorder %s94_s19, %s94_s19 }
  0x84   :  { %p1771_p3 = scmp.ne.s32.totalorder %s94_s19, %s1770_s4  ;;  %p1776_p5 = scmp.lt.s32.totalorder %s1770_s4, %s1770_s4 }
  0x86   :  { %p1777_p6 = por %p1776_p5, %p1775_p4 }
  0x88   :  { %p1778_p7 = pnand %p1777_p6, %p1771_p3 }
  0x8a   :  { %1781 = shalt.err (!%p1778_p7)
}
  0x8b   :  { %99 = dma.hbm_to_vmem [thread:$0]  %s2244_s6, 512, %s94_s19, [#allocation13], %s1851_s23, %s1851_s23, %s1852_s24  }
  0x8c   :  { %s1782_s3 = scalar_lea.hbm %s2246_s8, 16 }
  0x8d   :  { %p1783_p8 = scmp.ne.s32.totalorder %s2246_s8, %s1782_s3  ;;  %p1786_p9 = scmp.lt.u32.totalorder %s1782_s3, %s2246_s8 }
  0x8f   :  { %p1788_p10 = pnand %p1786_p9, %p1783_p8 }
  0x91   :  { %1791 = shalt.err (!%p1788_p10)
}
  0x92   :  { %s1792_s7 = scalar_lea.vmem %s117_s22, 16  ;;  %s1796_s15 = scalar_lea.vmem %s117_s22, 32 }
  0x93   :  { %p1793_p11 = scmp.ne.s32.totalorder %s117_s22, %s1792_s7  ;;  %p1797_p12 = scmp.lt.s32.totalorder %s117_s22, %s117_s22 }
  0x94   :  { %p1798_p13 = scmp.lt.s32.totalorder %s1796_s15, %s1792_s7 }
  0x96   :  { %p1799_p0 = por %p1798_p13, %p1797_p12 }
  0x98   :  { %p1800_p1 = pnand %p1799_p0, %p1793_p11 }
  0x9a   :  { %1803 = shalt.err (!%p1800_p1)
}
  0x9b   :  { %119 = dma.hbm_to_vmem [thread:$0]  %s2246_s8, 16, %s117_s22, [#allocation16]  }
  0x9c   :  { %s1804_s1 = scalar_lea.hbm %s2247_s9, 16 }
  0x9d   :  { %p1805_p2 = scmp.ne.s32.totalorder %s2247_s9, %s1804_s1  ;;  %p1808_p3 = scmp.lt.u32.totalorder %s1804_s1, %s2247_s9 }
  0x9f   :  { %p1810_p4 = pnand %p1808_p3, %p1805_p2 }
  0xa1   :  { %1813 = shalt.err (!%p1810_p4)
}
  0xa2   :  { %s1861_s30 = smov [#allocation18]  }
  0xa3   :  { %127 = dma.hbm_to_smem %s2247_s9, 16, %s1861_s30, [#allocation5]  }
  0xa4   :  { %1836 = dma.done.wait [#allocation3], 16  }
  0xa5   :  { %1837 = vsyncadd [#allocation3], 4294967280 }
  0xa6   :  { %1838 = dma.done.wait [#allocation7], 768  }
  0xa7   :  { %1839 = vsyncadd [#allocation7], 4294966528 }
  0xa8   :  { %1840 = dma.done.wait [#allocation10], 528  }
  0xa9   :  { %1841 = vsyncadd [#allocation10], 4294966768 }
  0xaa   :  { %1842 = dma.done.wait [#allocation13], 528  }
  0xab   :  { %1843 = vsyncadd [#allocation13], 4294966768 }
  0xac   :  { %1844 = dma.done.wait [#allocation16], 32  }
  0xad   :  { %1845 = vsyncadd [#allocation16], 4294967264 }
  0xae   :  { %1846 = dma.done.wait [#allocation5], 16  }
  0xaf   :  { %1847 = vsyncadd [#allocation5], 4294967280 }
  0xb0   :  { %158 = sfence }
  0xb1   :  { %v2054_v0 = vld [vmem:[#allocation6] sm:$0xff]  ;;  %v2056_v1 = vld [vmem:[#allocation6 + $0x8] sm:$0xff]  ;;  %v161_v2 = vlaneseq  ;;  %v274_v3 = vld [vmem:[#allocation9] sm:$0xff]  ;;  %vm182_vm0 = vcmask 130048   ;;  %v1862_v15 = vmov 0.0   ;;  %vm278_vm5 = vcmask 261120  }
  0xb2   :  { %v1516_v4 = vpack.c.bf16 %v2056_v1, %v2054_v0  ;;  %v275_v5 = vld [vmem:[#allocation9 + $0x8] sm:$0xff]  ;;  %v276_v6 = vld [vmem:[#allocation9 + $0x10] sm:$0xff]  ;;  %v277_v7 = vld [vmem:[#allocation9 + $0x18] sm:$0xff]  ;;  %v1863_v51 = vmov 0.0|0.0   ;;  %vm1864_vm6 = vmmov 0   ;;  %s480_s8 = sld [smem:[#allocation18]] }
  0xb3   :  { %v2060_v8 = vshrl.u32 %v161_v2, 7  ;;  %v2062_v9 = vand.u32 127, %v161_v2  ;;  %v1520_v10 = vpack.c.bf16 %v275_v5, %v274_v3  ;;  %v1524_v11 = vpack.c.bf16 %v277_v7, %v276_v6  ;;  %v270_v18 = vld [vmem:[#allocation8] sm:$0xff]  ;;  %v271_v19 = vld [vmem:[#allocation8 + $0x8] sm:$0xff]  ;;  %v272_v27 = vld [vmem:[#allocation8 + $0x10] sm:$0xff]  ;;  %s1339_s9 = sld [smem:[#allocation18 + $0x1]] }
  0xb4   :  { %1517 = vmatprep.subr.bf16.mxu0 %v1516_v4  ;;  %v1528_v20 = vpack.c.bf16 %v271_v19, %v270_v18  ;;  %v273_v28 = vld [vmem:[#allocation8 + $0x18] sm:$0xff]  ;;  %v1332_v34 = vld [vmem:[#allocation11] ss:$0 sm:$0xff]  ;;  %v561_v62 = vld [vmem:[#allocation14] sm:$0xff]  ;;  %vm1300_vm14 = vcmask 122880   ;;  %s1866_s22 = smov [#allocation19]  }
  0xb5   :  { %1519 = vmatpush3.bf16.msra.mxu0 %v1516_v4  ;;  %v174_v12 = vadd.s32 1, %v2060_v8  ;;  %v2066_v13 = vadd.s32 8, %v2060_v8  ;;  %1521 = vmatprep.subr.bf16.mxu1 %v1520_v10  ;;  %v164_v21 = vshra.s32 %v2060_v8, 3  ;;  %v1532_v32 = vpack.c.bf16 %v273_v28, %v272_v27  ;;  %v562_v63 = vld [vmem:[#allocation14 + $0x8] sm:$0xff]  ;;  %vm2105_vm7 = vmpackc.low %vm278_vm5, %vm278_vm5  ;;  %v563_v7 = vld [vmem:[#allocation14 + $0x10] sm:$0xff]  ;;  %s1310_s27 = sshll.u32 %s1866_s22, 4  ;;  %s1311_s27 = int_to_ptr.vmem [resolvable:$true] %s1310_s27 }
  0xb6   :  { %1523 = vmatpush3.bf16.msra.mxu1 %v1520_v10  ;;  %1536 = vmatprep.subr.bf16.mxu0 %v1863_v51  ;;  %v1540_v5 = vpack.c.bf16 %v562_v63, %v561_v62  ;;  %v564_v10 = vld [vmem:[#allocation14 + $0x18] sm:$0xff]  ;;  %v2128_v18 = vshra.s32 %v2062_v9, 3  ;;  %vm846_vm12 = vcmp.ge.s32.totalorder %v2062_v9, 15  ;;  %s1814_s0 = scalar_lea.vmem %s1311_s27, 64  ;;  %p1819_p6 = scmp.lt.s32.totalorder %s1311_s27, %s1311_s27 }
  0xb7   :  { %vm176_vm1 = vcmp.eq.s32.totalorder %v2062_v9, %v174_v12  ;;  %v175_v14 = vadd.s32 1, %v2066_v13  ;;  %1525 = vmatprep.subr.bf16.mxu1 %v1524_v11  ;;  %v165_v22 = vshra.s32 %v2066_v13, 3  ;;  %v166_v23 = vmul.u32 8, %v164_v21  ;;  %p1815_p5 = scmp.ne.s32.totalorder %s1311_s27, %s1814_s0  ;;  %p1820_p7 = scmp.lt.s32.totalorder %s1814_s0, %s1814_s0 }
  0xb8   :  { %v1324_v16 = vsel %vm176_vm1, 1.0, %v1862_v15  ;;  %v1544_v12 = vpack.c.bf16 %v564_v10, %v563_v7 }
  0xb9   :  { %1431 = vmatprep.mubr.msk.f32.mxu0 %vm182_vm0, %v1324_v16  ;;  %vm177_vm2 = vcmp.eq.s32.totalorder %v2062_v9, %v175_v14  ;;  %v167_v24 = vmul.u32 8, %v165_v22  ;;  %v2082_v25 = vsub.s32 %v2060_v8, %v166_v23  ;;  %v1344_v14 = vadd.s32 1, %v2062_v9  ;;  %v762_v16 = vld [vmem:[#allocation2] sm:$0x1]  ;;  %v1336_v23 = vld [vmem:[#allocation15] ss:$0 sm:$0xff]  ;;  %p1821_p8 = por %p1820_p7, %p1819_p6 }
  0xba   :  { %v1325_v17 = vsel %vm177_vm2, 1.0, %v1862_v15  ;;  %1527 = vmatpush3.bf16.msra.mxu1 %v1524_v11  ;;  %v479_v11 = vld [vmem:[#allocation12] sm:$0x1]  ;;  %vm763_vm11 = vcmp.ne.s32.totalorder %v762_v16, 0 }
  0xbb   :  { %1432 = vmatmul.mubr.msk.f32.vlgmr.msra.gmra.mrb[0].mxu0 %vm182_vm0, %v1325_v17  ;;  %1529 = vmatprep.subr.bf16.mxu1 %v1528_v20  ;;  %v2085_v26 = vsub.s32 %v2066_v13, %v167_v24  ;;  %vm170_vm3 = vcmp.eq.s32.totalorder %v2082_v25, 7  ;;  %vm767_vm8 = vcmp.eq.s32.totalorder %v2060_v8, %v1344_v14  ;;  %vm768_vm9 = vcmp.eq.s32.totalorder %v2066_v13, %v1344_v14  ;;  %p1822_p9 = pnand %p1821_p8, %p1815_p5 }
  0xbc   :  { %1460 = vmatprep.mubr.msk.f32.mxu0 %vm1864_vm6, %v1862_v15  ;;  %vm1553_vm10 = vmpackc.low %vm768_vm9, %vm767_vm8  ;;  %v1865_v17 = vmov 1.0|1.0   ;;  %v677_v14 = vstv %s1339_s9 }
  0xbd   :  { %vm171_vm4 = vcmp.eq.s32.totalorder %v2085_v26, 7 }
 0x18e   :  { %v1433_v29 = vpop.f32.mrb[0].mxu0 }
 0x18f   :  { %v255_v30 = vpop.f32.mrb[1].mxu0  ;;  %v269_v33 = vsel %vm171_vm4, 0.0, %v1433_v29 }
 0x190   :  { %v268_v31 = vsel %vm170_vm3, 0.0, %v255_v30 }
 0x191   :  { %1442 = vmatprep.mubr.msk.f32.mxu1 %vm278_vm5, %v268_v31 }
 0x192   :  { %1443 = vmatmul.mubr.msk.f32.vlgmr.msra.gmra.mrb[0].mxu1 %vm278_vm5, %v269_v33 }
 0x193   :  { %1531 = vmatpush3.bf16.msra.mxu1 %v1528_v20  ;;  %1453 = vmatprep.mubr.msk.f32.mxu1 %vm278_vm5, %v2054_v0 }
 0x194   :  { %1533 = vmatprep.subr.bf16.mxu1 %v1532_v32 }
 0x197   :  { %1535 = vmatpush3.bf16.msra.mxu1 %v1532_v32 }
 0x198   :  { %1548 = vmatprep.subr.bf16.mxu1 %v1863_v51 }
 0x19a   :  { %1454 = vmatmul.mubr.msk.f32.vlgmr.msra.gmra.mrb[0].mxu1 %vm278_vm5, %v2056_v1 }
 0x19b   :  { %1478 = vmatprep.mubr.msk.f32.mxu1 %vm1864_vm6, %v1862_v15 }
 0x26d   :  { %v1455_v35 = vpop.f32.mrb[0].mxu1 }
 0x26e   :  { %v432_v36 = vpop.f32.mrb[1].mxu1  ;;  %v449_v38 = vadd.f32 %v1455_v35, %v1332_v34 }
 0x26f   :  { %v448_v37 = vadd.f32 %v1332_v34, %v432_v36 }
 0x270   :  { %v453_v40 = vsel %vm278_vm5, %v449_v38, 0.0 }
 0x271   :  { %v450_v39 = vsel %vm278_vm5, %v448_v37, 0.0 }
 0x272   :  { %451 = vadd.xlane.f32.xlu0 %v450_v39  ;;  %v2140_v39 = vsub.s32 0, %v2060_v8 }
 0x276   :  { %454 = vadd.xlane.f32.xlu0 %v453_v40 }
 0x2ff   :  { %v452_v41 = vpop.xlane.xlu0 %451 }
 0x300   :  { %v457_v42 = vmul.f32 0.03125, %v452_v41 }
 0x302   :  { %v459_v43 = vsub.f32 %v448_v37, %v457_v42 }
 0x303   :  { %v455_v44 = vpop.xlane.xlu0 %454 }
 0x304   :  { %v458_v45 = vmul.f32 0.03125, %v455_v44  ;;  %v461_v46 = vmul.f32 %v459_v43, %v459_v43 }
 0x306   :  { %v460_v47 = vsub.f32 %v449_v38, %v458_v45  ;;  %v463_v48 = vsel %vm278_vm5, %v461_v46, 0.0  ;;  %v1378_v45 = vadd.s32 4294967295, %v2060_v8 }
 0x307   :  { %464 = vadd.xlane.f32.xlu1 %v463_v48 }
 0x308   :  { %v462_v49 = vmul.f32 %v460_v47, %v460_v47  ;;  %vm1238_vm2 = vcmp.eq.s32.totalorder %v2062_v9, %v1378_v45 }
 0x30a   :  { %v466_v50 = vsel %vm278_vm5, %v462_v49, 0.0 }
 0x30b   :  { %467 = vadd.xlane.f32.xlu1 %v466_v50 }
 0x394   :  { %v465_v52 = vpop.xlane.xlu1 %464 }
 0x395   :  { %v469_v53 = vmul.f32 0.03125, %v465_v52 }
 0x397   :  { %v471_v54 = vadd.f32 1e-05, %v469_v53 }
 0x398   :  { %v468_v55 = vpop.xlane.xlu1 %467 }
 0x399   :  { %1590 = vrsqrt.f32 %v471_v54  ;;  %v470_v56 = vmul.f32 0.03125, %v468_v55 }
 0x39b   :  { %v472_v57 = vadd.f32 1e-05, %v470_v56 }
 0x39d   :  { %1592 = vrsqrt.f32 %v472_v57 }
 0x3a3   :  { %v1591_v58 = vpop.eup %1590 }
 0x3a4   :  { %v475_v59 = vmul.f32 %v1591_v58, %v459_v43  ;;  %v1379_v43 = vadd.s32 4294967295, %v2066_v13 }
 0x3a6   :  { %1594 = vtanh.f32 %v475_v59  ;;  %vm1239_vm1 = vcmp.eq.s32.totalorder %v2062_v9, %v1379_v43 }
 0x3a7   :  { %v1593_v60 = vpop.eup %1592 }
 0x3a8   :  { %v476_v61 = vmul.f32 %v1593_v60, %v460_v47 }
 0x3aa   :  { %1596 = vtanh.f32 %v476_v61 }
 0x3b0   :  { %v1595_v2 = vpop.eup %1594 }
 0x3b4   :  { %v1597_v3 = vpop.eup %1596 }
 0x3b5   :  { %v1537_v6 = vpack.c.bf16 %v1597_v3, %v1595_v2 }
 0x3b7   :  { %1539 = vmatpush3.bf16.xpose.msk.msra.mxu0 %vm2105_vm7, %v1537_v6 }
 0x3b8   :  { %1541 = vmatprep.subr.bf16.mxu0 %v1540_v5 }
 0x3be   :  { %1461 = vmatmul.mubr.msk.f32.vlgmr.msra.gmra.mrb[2].mxu0 %vm278_vm5, %v479_v11  ;;  %v675_v11 = vld [vmem:[#allocation17] sm:$0x1] }
 0x3bf   :  { %1543 = vmatpush3.bf16.msra.mxu0 %v1540_v5  ;;  %1471 = vmatprep.mubr.msk.f32.mxu0 %vm278_vm5, %v2054_v0  ;;  %v2123_v0 = vsel %vm763_vm11, 1.0, %v1862_v15 }
 0x3c0   :  { %1545 = vmatprep.subr.bf16.mxu0 %v1544_v12  ;;  %vm850_vm8 = vcmp.gt.f32.partialorder %v2123_v0, 0.5 }
 0x3c3   :  { %1547 = vmatpush3.bf16.msra.mxu0 %v1544_v12  ;;  %v1350_v12 = vadd.s32 4294967295, %v2062_v9 }
 0x3c4   :  { %1552 = vmatprep.subr.bf16.mxu0 %v1863_v51 }
 0x3c5   :  { %vm865_vm3 = vcmp.eq.s32.totalorder %v2060_v8, %v1350_v12  ;;  %vm866_vm4 = vcmp.eq.s32.totalorder %v2066_v13, %v1350_v12 }
 0x3c6   :  { %1472 = vmatmul.mubr.msk.f32.vlgmr.msra.gmra.mrb[4].mxu0 %vm278_vm5, %v2056_v1  ;;  %v760_v1 = vmul.u32 8, %v2128_v18 }
 0x3c7   :  { %1554 = vmatpush3.bf16.msk.msra.mxu0 %vm1553_vm10, %v1865_v17  ;;  %1485 = vmatprep.mubr.msk.f32.mxu0 %vm1864_vm6, %v1862_v15  ;;  %v481_v15 = vstv %s480_s8  ;;  %vm1555_vm6 = vmpackc.low %vm866_vm4, %vm865_vm3 }
 0x3c8   :  { %v761_v24 = vsub.s32 %v2062_v9, %v760_v1  ;;  %1556 = vmatprep.subr.msk.bf16.mxu0 %vm1555_vm6, %v1865_v17 }
 0x3ca   :  { %1486 = vmatmul.mubr.msk.f32.vlgmr.msra.gmra.mrb[6].mxu0 %vm182_vm0, %v2123_v0  ;;  %vm848_vm13 = vcmp.eq.s32.totalorder %v761_v24, 7 }
 0x3cb   :  { %1558 = vmatpush3.bf16.msk.msra.mxu0 %vm1555_vm6, %v1865_v17 }
 0x491   :  { %v557_v19 = vpop.f32.mrb[2].mxu0 }
 0x492   :  { %v1462_v20 = vpop.f32.mrb[3].mxu0  ;;  %v558_v36 = vadd.f32 %v557_v19, %v481_v15 }
 0x499   :  { %v1473_v27 = vpop.f32.mrb[4].mxu0 }
 0x49a   :  { %v644_v28 = vadd.f32 %v1473_v27, %v1336_v23  ;;  %v638_v29 = vpop.f32.mrb[5].mxu0  ;;  %v1357_v27 = vadd.s32 4294967294, %v2062_v9 }
 0x49b   :  { %v639_v30 = vadd.f32 %v1336_v23, %v638_v29 }
 0x49c   :  { %v650_v31 = vsel %vm278_vm5, %v644_v28, 0.0  ;;  %vm958_vm9 = vcmp.eq.s32.totalorder %v2060_v8, %v1357_v27  ;;  %vm959_vm10 = vcmp.eq.s32.totalorder %v2066_v13, %v1357_v27 }
 0x49d   :  { %651 = vadd.xlane.f32.xlu1 %v650_v31  ;;  %v842_v32 = vpop.f32.mrb[6].mxu0  ;;  %v647_v33 = vsel %vm278_vm5, %v639_v30, 0.0  ;;  %vm1559_vm11 = vmpackc.low %vm959_vm10, %vm958_vm9  ;;  %vm1252_vm9 = vcmp.eq.s32.totalorder %v2082_v25, 0  ;;  %vm759_vm10 = vcmp.eq.s32.totalorder %v165_v22, %v2128_v18 }
 0x49e   :  { %v847_v34 = vsel %vm846_vm12, 0.0, %v842_v32  ;;  %648 = vadd.xlane.f32.xlu0 %v647_v33  ;;  %v1487_v35 = vpop.f32.mrb[7].mxu0  ;;  %vm952_vm12 = vcmp.lt.s32.totalorder %v2062_v9, 1  ;;  %v1364_v33 = vadd.s32 4294967292, %v2062_v9 }
 0x49f   :  { %v2135_v37 = vsel %vm848_vm13, 0.0, %v847_v34 }
 0x4a0   :  { %vm852_vm15 = vcmp.gt.f32.partialorder %v2135_v37, 0.5  ;;  %vm1051_vm13 = vcmp.eq.s32.totalorder %v2060_v8, %v1364_v33 }
 0x4a1   :  { %v853_v38 = vsel %vm852_vm15, %v558_v36, 1e+09  ;;  %vm1052_vm15 = vcmp.eq.s32.totalorder %v2066_v13, %v1364_v33 }
 0x4a2   :  { %1302 = vst.msk [vmem:[#allocation19 + $0x1] sm:$0x1] %vm1300_vm14, %v853_v38  ;;  %v2145_v47 = vrot.slane %v853_v38, %v2140_v39 }
 0x4a4   :  { %v1245_v53 = vsel %vm1239_vm1, %v2145_v47, 0.0  ;;  %v1244_v54 = vsel %vm1238_vm2, %v2145_v47, 0.0  ;;  %vm1563_vm1 = vmpackc.low %vm1052_vm15, %vm1051_vm13  ;;  %vm1045_vm2 = vcmp.lt.s32.totalorder %v2062_v9, 2  ;;  %vm1266_vm13 = vcmp.le.s32.totalorder %v2060_v8, %v2062_v9 }
 0x4a5   :  { %v1249_v55 = vsel %vm182_vm0, %v1245_v53, 0.0  ;;  %v1246_v56 = vsel %vm182_vm0, %v1244_v54, 0.0  ;;  %1564 = vmatprep.subr.msk.bf16.mxu0 %vm1563_vm1, %v1865_v17  ;;  %v1275_v54 = vrot.slane %v2135_v37, %v2140_v39 }
 0x52a   :  { %v652_v40 = vpop.xlane.xlu1 %651 }
 0x52b   :  { %v654_v41 = vmul.f32 0.03125, %v652_v40  ;;  %v649_v42 = vpop.xlane.xlu0 %648 }
 0x52c   :  { %v653_v44 = vmul.f32 0.03125, %v649_v42  ;;  %v1371_v42 = vadd.s32 4294967288, %v2062_v9 }
 0x52d   :  { %v656_v46 = vsub.f32 %v644_v28, %v654_v41 }
 0x52e   :  { %v655_v48 = vsub.f32 %v639_v30, %v653_v44  ;;  %vm1144_vm3 = vcmp.eq.s32.totalorder %v2060_v8, %v1371_v42  ;;  %vm1145_vm4 = vcmp.eq.s32.totalorder %v2066_v13, %v1371_v42 }
 0x52f   :  { %v658_v49 = vmul.f32 %v656_v46, %v656_v46  ;;  %vm1567_vm6 = vmpackc.low %vm1145_vm4, %vm1144_vm3 }
 0x530   :  { %v657_v50 = vmul.f32 %v655_v48, %v655_v48 }
 0x531   :  { %v662_v51 = vsel %vm278_vm5, %v658_v49, 0.0 }
 0x532   :  { %663 = vadd.xlane.f32.xlu1 %v662_v51  ;;  %v659_v52 = vsel %vm278_vm5, %v657_v50, 0.0 }
 0x533   :  { %660 = vadd.xlane.f32.xlu0 %v659_v52 }
 0x536   :  { %1250 = vadd.xlane.f32.xlu1 %v1249_v55 }
 0x537   :  { %1247 = vadd.xlane.f32.xlu0 %v1246_v56 }
 0x5bf   :  { %v664_v57 = vpop.xlane.xlu1 %663 }
 0x5c0   :  { %v666_v58 = vmul.f32 0.03125, %v664_v57  ;;  %v661_v59 = vpop.xlane.xlu0 %660 }
 0x5c1   :  { %v665_v60 = vmul.f32 0.03125, %v661_v59 }
 0x5c2   :  { %v668_v61 = vadd.f32 1e-05, %v666_v58 }
 0x5c3   :  { %v667_v62 = vadd.f32 1e-05, %v665_v60  ;;  %v1251_v50 = vpop.xlane.xlu1 %1250  ;;  %v1279_v60 = vrot.slane %v2123_v0, %v2140_v39 }
 0x5c4   :  { %1598 = vrsqrt.f32 %v668_v61 }
 0x5c5   :  { %1600 = vrsqrt.f32 %v667_v62 }
 0x5ce   :  { %v1599_v63 = vpop.eup %1598 }
 0x5cf   :  { %v1601_v2 = vpop.eup %1600  ;;  %v672_v3 = vmul.f32 %v1599_v63, %v656_v46 }
 0x5d0   :  { %v671_v5 = vmul.f32 %v1601_v2, %v655_v48 }
 0x5d1   :  { %1602 = vtanh.f32 %v672_v3 }
 0x5d2   :  { %1604 = vtanh.f32 %v671_v5 }
 0x5db   :  { %v1603_v6 = vpop.eup %1602 }
 0x5dc   :  { %v1605_v7 = vpop.eup %1604 }
 0x5dd   :  { %v1549_v10 = vpack.c.bf16 %v1603_v6, %v1605_v7 }
 0x5df   :  { %1551 = vmatpush3.bf16.xpose.msk.msra.mxu1 %vm2105_vm7, %v1549_v10  ;;  %vm854_vm7 = vcmp.ge.s32.totalorder %v2062_v9, %v2060_v8 }
 0x5e0   :  { %1560 = vmatprep.subr.msk.bf16.mxu1 %vm1559_vm11, %v1865_v17 }
 0x5e6   :  { %1479 = vmatmul.mubr.msk.f32.vlgmr.msra.gmra.mrb[2].mxu1 %vm278_vm5, %v675_v11  ;;  %vm855_vm5 = vcmp.ge.s32.totalorder %v2062_v9, %v2066_v13 }
 0x5e7   :  { %1562 = vmatpush3.bf16.msk.msra.mxu1 %vm1559_vm11, %v1865_v17  ;;  %vm1267_vm11 = vcmp.le.s32.totalorder %v2066_v13, %v2062_v9  ;;  %v1281_v13 = vsel %vm1252_vm9, %v1275_v54, %v1279_v60 }
 0x5e8   :  { %1568 = vmatprep.subr.msk.bf16.mxu1 %vm1567_vm6, %v1865_v17  ;;  %vm1269_vm15 = vmand %vm759_vm10, %vm1267_vm11  ;;  %vm1283_vm3 = vcmp.gt.f32.partialorder %v1281_v13, 0.5 }
 0x6b9   :  { %v753_v16 = vpop.f32.mrb[2].mxu1 }
 0x6ba   :  { %v754_v4 = vadd.f32 %v753_v16, %v677_v14  ;;  %v1480_v19 = vpop.f32.mrb[3].mxu1 }
 0x6bc   :  { %v851_v20 = vsel %vm850_vm8, %v754_v4, -1e+09  ;;  %vm1138_vm8 = vcmp.lt.s32.totalorder %v2062_v9, 4 }
 0x6bd   :  { %v860_v1 = vrot.slane %v851_v20, %v2140_v39  ;;  %1301 = vst.msk [vmem:[#allocation19] sm:$0x1] %vm1300_vm14, %v851_v20 }
 0x6bf   :  { %v863_v23 = vsel %vm855_vm5, %v860_v1, -1e+09  ;;  %v862_v24 = vsel %vm854_vm7, %v860_v1, -1e+09  ;;  %vm1231_vm5 = vcmp.lt.s32.totalorder %v2062_v9, 8  ;;  %vm1253_vm7 = vcmp.eq.s32.totalorder %v2085_v26, 0 }
 0x6c0   :  { %1492 = vmatprep.mubr.msk.f32.mxu0 %vm182_vm0, %v862_v24  ;;  %v1255_v57 = vsel %vm1253_vm7, 1e+09, %v1251_v50  ;;  %v1282_v22 = vsel %vm1253_vm7, %v1275_v54, %v1279_v60 }
 0x6c1   :  { %1493 = vmatmul.mubr.msk.f32.vlgmr.msra.gmra.mrb[8].mxu0 %vm182_vm0, %v863_v23 }
 0x6c2   :  { %1566 = vmatpush3.bf16.msk.msra.mxu0 %vm1563_vm1, %v1865_v17 }
 0x794   :  { %v1494_v28 = vpop.f32.mrb[8].mxu0 }
 0x795   :  { %v954_v29 = vsel %vm952_vm12, -1e+09, %v1494_v28  ;;  %v943_v30 = vpop.f32.mrb[9].mxu0 }
 0x796   :  { %v953_v15 = vsel %vm952_vm12, -1e+09, %v943_v30  ;;  %v956_v32 = vmax.f32 %v863_v23, %v954_v29  ;;  %vm758_vm12 = vcmp.eq.s32.totalorder %v164_v21, %v2128_v18 }
 0x797   :  { %v955_v31 = vmax.f32 %v862_v24, %v953_v15  ;;  %vm1268_vm1 = vmand %vm758_vm12, %vm1266_vm13 }
 0x799   :  { %1499 = vmatprep.mubr.msk.f32.mxu1 %vm182_vm0, %v955_v31 }
 0x79a   :  { %1500 = vmatmul.mubr.msk.f32.vlgmr.msra.gmra.mrb[4].mxu1 %vm182_vm0, %v956_v32 }
 0x79b   :  { %1570 = vmatpush3.bf16.msk.msra.mxu1 %vm1567_vm6, %v1865_v17  ;;  %v1248_v17 = vpop.xlane.xlu0 %1247 }
 0x79c   :  { %v1254_v58 = vsel %vm1252_vm9, 1e+09, %v1248_v17 }
 0x86d   :  { %v1501_v34 = vpop.f32.mrb[4].mxu1 }
 0x86e   :  { %v1047_v35 = vsel %vm1045_vm2, -1e+09, %v1501_v34  ;;  %v1036_v36 = vpop.f32.mrb[5].mxu1 }
 0x86f   :  { %v1046_v38 = vsel %vm1045_vm2, -1e+09, %v1036_v36  ;;  %v1049_v41 = vmax.f32 %v956_v32, %v1047_v35  ;;  %vm1284_vm2 = vcmp.gt.f32.partialorder %v1282_v22, 0.5 }
 0x870   :  { %v1048_v40 = vmax.f32 %v955_v31, %v1046_v38 }
 0x872   :  { %1506 = vmatprep.mubr.msk.f32.mxu0 %vm182_vm0, %v1048_v40 }
 0x873   :  { %1507 = vmatmul.mubr.msk.f32.vlgmr.msra.gmra.mrb[10].mxu0 %vm182_vm0, %v1049_v41 }
 0x946   :  { %v1508_v43 = vpop.f32.mrb[10].mxu0 }
 0x947   :  { %v1140_v44 = vsel %vm1138_vm8, -1e+09, %v1508_v43  ;;  %v1129_v45 = vpop.f32.mrb[11].mxu0 }
 0x948   :  { %v1139_v46 = vsel %vm1138_vm8, -1e+09, %v1129_v45  ;;  %v1142_v49 = vmax.f32 %v1049_v41, %v1140_v44 }
 0x949   :  { %v1141_v48 = vmax.f32 %v1048_v40, %v1139_v46 }
 0x94b   :  { %1513 = vmatprep.mubr.msk.f32.mxu1 %vm182_vm0, %v1141_v48 }
 0x94c   :  { %1514 = vmatmul.mubr.msk.f32.vlgmr.msra.gmra.mrb[6].mxu1 %vm182_vm0, %v1142_v49 }
 0xa1f   :  { %v1515_v51 = vpop.f32.mrb[6].mxu1 }
 0xa20   :  { %v1233_v52 = vsel %vm1231_vm5, -1e+09, %v1515_v51  ;;  %v1222_v53 = vpop.f32.mrb[7].mxu1 }
 0xa21   :  { %v1235_v55 = vmax.f32 %v1142_v49, %v1233_v52  ;;  %v1232_v56 = vsel %vm1231_vm5, -1e+09, %v1222_v53 }
 0xa22   :  { %v1234_v59 = vmax.f32 %v1141_v48, %v1232_v56 }
 0xa23   :  { %v1257_v61 = vsub.f32 %v1255_v57, %v1235_v55  ;;  %v1261_v62 = vsub.f32 %v2145_v47, %v1235_v55 }
 0xa24   :  { %v1256_v37 = vsub.f32 %v1254_v58, %v1234_v59  ;;  %v1260_v63 = vsub.f32 %v2145_v47, %v1234_v59 }
 0xa25   :  { %v1259_v0 = vmax.f32 %v1257_v61, 0.0  ;;  %v1263_v39 = vmax.f32 %v1261_v62, 0.0 }
 0xa26   :  { %v1258_v2 = vmax.f32 %v1256_v37, 0.0  ;;  %v1262_v3 = vmax.f32 %v1260_v63, 0.0 }
 0xa27   :  { %v1265_v5 = vmin.f32 %v1259_v0, %v1263_v39 }
 0xa28   :  { %v1264_v47 = vmin.f32 %v1258_v2, %v1262_v3 }
 0xa29   :  { %v1271_v6 = vsel %vm1269_vm15, %v1265_v5, 0.0 }
 0xa2a   :  { %v1286_v21 = vsel %vm1284_vm2, %v1271_v6, 0.0  ;;  %v1270_v18 = vsel %vm1268_vm1, %v1264_v47, 0.0 }
 0xa2b   :  { %v1290_v8 = vsel %vm182_vm0, %v1286_v21, -inf  ;;  %v1285_v9 = vsel %vm1283_vm3, %v1270_v18, 0.0 }
 0xa2c   :  { %1291 = vmax.xlane.f32.xlu1 %v1290_v8  ;;  %v1287_v7 = vsel %vm182_vm0, %v1285_v9, -inf }
 0xa2d   :  { %1288 = vmax.xlane.f32.xlu0 %v1287_v7 }
 0xab9   :  { %v1292_v26 = vpop.xlane.xlu1 %1291 }
 0xaba   :  { %v1289_v10 = vpop.xlane.xlu0 %1288 }
 0xabb   :  { %v1293_v11 = vmax.f32 %v1289_v10, %v1292_v26 }
 0xabd   :  { %v1294_v12 = vrot.slane %v1293_v11, 4 }
 0xabf   :  { %v1295_v14 = vmax.f32 %v1293_v11, %v1294_v12 }
 0xac1   :  { %v1296_v25 = vrot.slane %v1295_v14, 2 }
 0xac3   :  { %v1297_v16 = vmax.f32 %v1295_v14, %v1296_v25 }
 0xac5   :  { %v1298_v4 = vrot.slane %v1297_v16, 1 }
 0xac7   :  { %v1299_v19 = vmax.f32 %v1297_v16, %v1298_v4 }
 0xac9   :  { %1303 = vst.msk [vmem:[#allocation19 + $0x2] sm:$0x1] %vm1300_vm14, %v1299_v19 }
 0xaca   :  { %1825 = shalt.err (!%p1822_p9)
}
 0xacb   :  { %s1826_s20 = scalar_lea.hbm %s2248_s10, 64 }
 0xacc   :  { %p1827_p10 = scmp.ne.s32.totalorder %s2248_s10, %s1826_s20  ;;  %p1830_p11 = scmp.lt.u32.totalorder %s1826_s20, %s2248_s10 }
 0xace   :  { %p1832_p12 = pnand %p1830_p11, %p1827_p10 }
 0xad0   :  { %1835 = shalt.err (!%p1832_p12)
}
 0xad1   :  { %1313 = dma.vmem_to_hbm [thread:$0]  %s1311_s27, 64, %s2248_s10, [#allocation4]  }
 0xad2   :  { %1848 = dma.done.wait [#allocation4], 64  }
 0xad3   :  { %1849 = vsyncadd [#allocation4], 4294967232 }
 0xad4   :  { %1317 = vsyncpa [#allocation3], 1 }
 0xad5   :  { %1318 = vsyncpa [#allocation7], 1 }
 0xad6   :  { %1319 = vsyncpa [#allocation10], 1 }
 0xad7   :  { %1320 = vsyncpa [#allocation13], 1 }
 0xad8   :  { %1321 = vsyncpa [#allocation16], 1 }
 0xad9   :  { %1322 = vsyncpa [#allocation4], 1 }
 0xada   :  { %1323 = vsyncpa [#allocation5], 1 }

</bundles_post_ra>
